<compile_context>
chip_gen: v7x
topology: tpu7x:2x2x1
jax: 0.10.0
libtpu: 0.0.40
codegen_flags: <defaults>
</compile_context>

<pallas_src>
import random
import numpy as np
import jax
import jax.numpy as jnp
from jax.experimental import pallas as pl
from jax.experimental.pallas import tpu as pltpu

# ----------------------------- small BERT config -----------------------------
VOCAB = 128          # large enough to hold the 101 ([CLS]) / 102 ([SEP]) ids
HIDDEN = 32
N_LAYERS = 3         # rbt3 has 3 encoder layers
N_HEADS = 4
HEAD_DIM = HIDDEN // N_HEADS
INTERMEDIATE = 64
MAX_POS = 16
SEQ = 8
BATCH = 2
LN_EPS = 1e-12
CUTOFF_RATE = 0.15


# ------------------------------ kernel helpers --------------------------------
def _ln(x, g, b):
    mean = jnp.mean(x, axis=-1, keepdims=True)
    var = jnp.mean(jnp.square(x - mean), axis=-1, keepdims=True)
    return (x - mean) * jax.lax.rsqrt(var + LN_EPS) * g + b


def _gelu(x):
    # TODO(synk): HF BERT default is erf-based gelu; tanh approximation used here.
    return 0.5 * x * (1.0 + jnp.tanh(0.7978845608028654 * (x + 0.044715 * x * x * x)))


# --------------------------- fused encoder kernel ------------------------------
def fused_encoder_kernel(emb_ref, mask_ref, eg_ref, eb_ref,
                         wqkv_ref, bqkv_ref, wo_ref, bo_ref,
                         ln1g_ref, ln1b_ref, w1_ref, b1_ref,
                         w2_ref, b2_ref, ln2g_ref, ln2b_ref, o_ref):
    Bb, S, H = emb_ref.shape
    BS = Bb * S
    D = H // N_HEADS
    scale = 1.0 / float(np.sqrt(D))

    # --- embedding LayerNorm (2-D layout for lane-dense elementwise/matmul) ---
    x = emb_ref[...].astype(jnp.float32).reshape(BS, H)
    h = _ln(x, eg_ref[...], eb_ref[...])                      # (BS, H)

    # hoisted additive attention mask, already shaped (Bb, 1, S)
    add_mask = mask_ref[...].astype(jnp.float32)

    for l in range(N_LAYERS):                                 # unrolled, 3 iters
        # --- fused QKV projection: one (BS, H) x (H, 3H) matmul ---
        qkv = jnp.dot(h, wqkv_ref[l],
                      preferred_element_type=jnp.float32) + bqkv_ref[l]
        q = qkv[:, 0:H] * scale                               # fold softmax scale
        k = qkv[:, H:2 * H]
        v = qkv[:, 2 * H:3 * H]
        q3 = q.reshape(Bb, S, H)
        k3 = k.reshape(Bb, S, H)
        v3 = v.reshape(Bb, S, H)

        wo = wo_ref[l]                                        # (H, H)

        # --- per-head attention; output projection accumulated split-K style
        #     (no lane-axis concatenate).
        attn = None
        for hd in range(N_HEADS):
            sl = slice(hd * D, (hd + 1) * D)
            s = jnp.einsum('bqd,bkd->bqk', q3[:, :, sl], k3[:, :, sl],
                           preferred_element_type=jnp.float32)
            s = s + add_mask
            s = s - jnp.max(s, axis=-1, keepdims=True)
            p = jnp.exp(s)
            p = p * pl.reciprocal(jnp.sum(p, axis=-1, keepdims=True), approx=True)
            ctx = jnp.einsum('bqk,bkd->bqd', p, v3[:, :, sl],
                             preferred_element_type=jnp.float32)   # (Bb, S, D)
            contrib = jnp.dot(ctx.reshape(BS, D), wo[sl, :],
                              preferred_element_type=jnp.float32)  # (BS, H)
            attn = contrib if attn is None else attn + contrib
        attn = attn + bo_ref[l]

        h = _ln(attn + h, ln1g_ref[l], ln1b_ref[l])

        # --- feed forward ---
        ffn = _gelu(jnp.dot(h, w1_ref[l],
                            preferred_element_type=jnp.float32) + b1_ref[l])
        ffn_out = jnp.dot(ffn, w2_ref[l],
                          preferred_element_type=jnp.float32) + b2_ref[l]
        h = _ln(ffn_out + h, ln2g_ref[l], ln2b_ref[l])

    # only the [CLS] rows leave the kernel
    h3 = h.reshape(Bb, S, H)
    o_ref[...] = h3[:, 0:1, :].astype(o_ref.dtype)


# ------------------------------ pallas_call wrapper ----------------------------
def _bert_cls_impl(params, input_ids, attention_mask):
    """Returns last_hidden_state[:, 0] (the [CLS] embedding) for every row."""
    B, S = input_ids.shape

    # glue: embedding gather + sum (not the hot path, stays in XLA)
    emb = (jnp.take(params['word_emb'], input_ids, axis=0)
           + params['pos_emb'][None, :S, :]
           + params['type_emb'][0][None, None, :]).astype(jnp.float32)

    # HF-style extended attention mask: 0 -> -10000, 1 -> 0 (additive), (B,1,S)
    add_mask = ((1.0 - attention_mask.astype(jnp.float32)) * -10000.0)[:, None, :]

    bblk = 2 if B % 2 == 0 else 1
    L = N_LAYERS

    def wspec(shape):
        return pl.BlockSpec(shape, lambda i: (0,) * len(shape))

    in_specs = [
        pl.BlockSpec((bblk, S, HIDDEN), lambda i: (i, 0, 0)),   # emb
        pl.BlockSpec((bblk, 1, S), lambda i: (i, 0, 0)),        # add_mask
        wspec((1, HIDDEN)), wspec((1, HIDDEN)),                 # emb LN
        wspec((L, HIDDEN, 3 * HIDDEN)), wspec((L, 1, 3 * HIDDEN)),  # wqkv/bqkv
        wspec((L, HIDDEN, HIDDEN)), wspec((L, 1, HIDDEN)),          # wo/bo
        wspec((L, 1, HIDDEN)), wspec((L, 1, HIDDEN)),               # ln1 g/b
        wspec((L, HIDDEN, INTERMEDIATE)), wspec((L, 1, INTERMEDIATE)),  # w1/b1
        wspec((L, INTERMEDIATE, HIDDEN)), wspec((L, 1, HIDDEN)),        # w2/b2
        wspec((L, 1, HIDDEN)), wspec((L, 1, HIDDEN)),               # ln2 g/b
    ]

    cls = pl.pallas_call(
        fused_encoder_kernel,
        out_shape=jax.ShapeDtypeStruct((B, 1, HIDDEN), jnp.float32),
        grid=(B // bblk,),
        in_specs=in_specs,
        out_specs=pl.BlockSpec((bblk, 1, HIDDEN), lambda i: (i, 0, 0)),
        compiler_params=pltpu.CompilerParams(
            dimension_semantics=("parallel",)),
    )(emb, add_mask,
      params['emb_ln_g'], params['emb_ln_b'],
      params['wqkv'], params['bqkv'], params['wo'], params['bo'],
      params['ln1_g'], params['ln1_b'], params['w1'], params['b1'],
      params['w2'], params['b2'], params['ln2_g'], params['ln2_b'])

    return cls[:, 0, :]


bert_cls = jax.jit(_bert_cls_impl)


# ------------------------------ parameter init ---------------------------------
def init_params(key):
    keys = iter(jax.random.split(key, 8))

    def w(shape):
        return (0.02 * jax.random.normal(next(keys), shape)).astype(jnp.float32)

    L = N_LAYERS
    return {
        'word_emb': w((VOCAB, HIDDEN)),
        'pos_emb': w((MAX_POS, HIDDEN)),
        'type_emb': w((2, HIDDEN)),
        'emb_ln_g': jnp.ones((1, HIDDEN), jnp.float32),
        'emb_ln_b': jnp.zeros((1, HIDDEN), jnp.float32),
        # stacked per-layer weights (layer axis leading)
        'wqkv': w((L, HIDDEN, 3 * HIDDEN)),
        'bqkv': jnp.zeros((L, 1, 3 * HIDDEN), jnp.float32),
        'wo': w((L, HIDDEN, HIDDEN)),
        'bo': jnp.zeros((L, 1, HIDDEN), jnp.float32),
        'ln1_g': jnp.ones((L, 1, HIDDEN), jnp.float32),
        'ln1_b': jnp.zeros((L, 1, HIDDEN), jnp.float32),
        'w1': w((L, HIDDEN, INTERMEDIATE)),
        'b1': jnp.zeros((L, 1, INTERMEDIATE), jnp.float32),
        'w2': w((L, INTERMEDIATE, HIDDEN)),
        'b2': jnp.zeros((L, 1, HIDDEN), jnp.float32),
        'ln2_g': jnp.ones((L, 1, HIDDEN), jnp.float32),
        'ln2_b': jnp.zeros((L, 1, HIDDEN), jnp.float32),
    }


# -------------------------- shuffle_and_cutoff (host) ---------------------------
def shuffle_and_cutoff(input_ids, attention_mask, cutoff_rate=CUTOFF_RATE):
    """Exact host-side reproduction of Model.shuffle_and_cutoff (numpy)."""
    input_ids = np.asarray(input_ids)
    attention_mask = np.asarray(attention_mask)
    bsz, seq_len = input_ids.shape
    shuffled_input_ids, cutoff_attention_mask = [], []
    for b in range(bsz):
        sample_mask = attention_mask[b].copy()
        num_tokens = int(sample_mask.sum())
        cur_input_ids = input_ids[b]
        if 102 not in cur_input_ids:
            indexes = list(range(num_tokens))[1:]
            random.shuffle(indexes)
            indexes = [0] + indexes
        else:
            indexes = list(range(num_tokens))[1:-1]
            random.shuffle(indexes)
            indexes = [0] + indexes + [num_tokens - 1]
        rest_indexes = list(range(num_tokens, seq_len))
        total_indexes = indexes + rest_indexes
        shuffled_input_id = cur_input_ids[total_indexes].copy()
        if cutoff_rate > 0.0:
            sample_len = max(int(num_tokens * (1 - cutoff_rate)), 1)
            start_id = np.random.randint(1, high=num_tokens - sample_len + 1)
            cutoff_mask = np.ones(seq_len, dtype=bool)
            cutoff_mask[start_id:start_id + sample_len] = False
            cutoff_mask[0] = False
            cutoff_mask[num_tokens - 1] = False
            shuffled_input_id = np.where(cutoff_mask, 0, shuffled_input_id)
            sample_mask = np.where(cutoff_mask, 0, sample_mask)
        shuffled_input_ids.append(shuffled_input_id[None, :])
        cutoff_attention_mask.append(sample_mask[None, :])
    return (np.concatenate(shuffled_input_ids, axis=0).astype(np.int32),
            np.concatenate(cutoff_attention_mask, axis=0).astype(np.int32))


# ------------------------------ model forward ----------------------------------
def model_forward(params, input_ids1, attention_mask1):
    input_ids1 = np.asarray(input_ids1)
    attention_mask1 = np.asarray(attention_mask1)
    B = input_ids1.shape[0]

    # view 2: shuffle + cutoff augmentation (host-side, same as reference).
    # close_dropout: encoder runs without dropout (inference) -> already no-op.
    input_ids2 = np.array(input_ids1, copy=True)
    attention_mask2 = np.array(attention_mask1, copy=True)
    shuffle_ids, cutoff_mask = shuffle_and_cutoff(input_ids2, attention_mask2)

    # run both views through the encoder in ONE fused kernel launch
    ids = np.concatenate([input_ids1, shuffle_ids], axis=0).astype(np.int32)
    masks = np.concatenate([attention_mask1, cutoff_mask], axis=0).astype(np.int32)
    cls = bert_cls(params, jnp.asarray(ids), jnp.asarray(masks))

    return cls[:B], cls[B:]


# ----------------------------------- main ---------------------------------------
if __name__ == "__main__":
    random.seed(0)
    np.random.seed(0)

    params = init_params(jax.random.PRNGKey(0))

    # deterministic small inputs: [CLS]=101 ... [SEP]=102, zero padding
    input_ids = np.array([[101, 7, 15, 23, 42, 55, 102, 0],
                          [101, 11, 19, 27, 102, 0, 0, 0]], dtype=np.int32)
    attention_mask = np.array([[1, 1, 1, 1, 1, 1, 1, 0],
                               [1, 1, 1, 1, 1, 0, 0, 0]], dtype=np.int32)
    assert input_ids.shape == (BATCH, SEQ)

    s1, s2 = model_forward(params, input_ids, attention_mask)
    jax.block_until_ready((s1, s2))
    assert s1.shape == (BATCH, HIDDEN) and s2.shape == (BATCH, HIDDEN)
    assert np.all(np.isfinite(np.asarray(s1))) and np.all(np.isfinite(np.asarray(s2)))
    print("KERNEL_OK")
</pallas_src>

<mosaic_0001>
module attributes {stable_mosaic.version = 11 : i64} {
  func.func @fused_encoder_kernel(%arg0: i32, %arg1: memref<2x8x32xf32, #tpu.memory_space<vmem>>, %arg2: memref<2x1x8xf32, #tpu.memory_space<vmem>>, %arg3: memref<1x32xf32, #tpu.memory_space<vmem>>, %arg4: memref<1x32xf32, #tpu.memory_space<vmem>>, %arg5: memref<3x32x96xf32, #tpu.memory_space<vmem>>, %arg6: memref<3x1x96xf32, #tpu.memory_space<vmem>>, %arg7: memref<3x32x32xf32, #tpu.memory_space<vmem>>, %arg8: memref<3x1x32xf32, #tpu.memory_space<vmem>>, %arg9: memref<3x1x32xf32, #tpu.memory_space<vmem>>, %arg10: memref<3x1x32xf32, #tpu.memory_space<vmem>>, %arg11: memref<3x32x64xf32, #tpu.memory_space<vmem>>, %arg12: memref<3x1x64xf32, #tpu.memory_space<vmem>>, %arg13: memref<3x64x32xf32, #tpu.memory_space<vmem>>, %arg14: memref<3x1x32xf32, #tpu.memory_space<vmem>>, %arg15: memref<3x1x32xf32, #tpu.memory_space<vmem>>, %arg16: memref<3x1x32xf32, #tpu.memory_space<vmem>>, %arg17: memref<2x1x32xf32, #tpu.memory_space<vmem>>) attributes {dimension_semantics = [#tpu.dimension_semantics<parallel>], iteration_bounds = array<i64: 2>, scalar_prefetch = 0 : i64, scratch_operands = 0 : i64, tpu.core_type = #tpu.core_type<tc>, window_params = [{transform_indices = @transform_0, window_bounds = array<i64: 2, 8, 32>}, {transform_indices = @transform_1, window_bounds = array<i64: 2, 1, 8>}, {pipeline_mode = #tpu.pipeline_mode<synchronous>, transform_indices = @transform_2, window_bounds = array<i64: 1, 32>}, {pipeline_mode = #tpu.pipeline_mode<synchronous>, transform_indices = @transform_3, window_bounds = array<i64: 1, 32>}, {pipeline_mode = #tpu.pipeline_mode<synchronous>, transform_indices = @transform_4, window_bounds = array<i64: 3, 32, 96>}, {pipeline_mode = #tpu.pipeline_mode<synchronous>, transform_indices = @transform_5, window_bounds = array<i64: 3, 1, 96>}, {pipeline_mode = #tpu.pipeline_mode<synchronous>, transform_indices = @transform_6, window_bounds = array<i64: 3, 32, 32>}, {pipeline_mode = #tpu.pipeline_mode<synchronous>, transform_indices = @transform_7, window_bounds = array<i64: 3, 1, 32>}, {pipeline_mode = #tpu.pipeline_mode<synchronous>, transform_indices = @transform_8, window_bounds = array<i64: 3, 1, 32>}, {pipeline_mode = #tpu.pipeline_mode<synchronous>, transform_indices = @transform_9, window_bounds = array<i64: 3, 1, 32>}, {pipeline_mode = #tpu.pipeline_mode<synchronous>, transform_indices = @transform_10, window_bounds = array<i64: 3, 32, 64>}, {pipeline_mode = #tpu.pipeline_mode<synchronous>, transform_indices = @transform_11, window_bounds = array<i64: 3, 1, 64>}, {pipeline_mode = #tpu.pipeline_mode<synchronous>, transform_indices = @transform_12, window_bounds = array<i64: 3, 64, 32>}, {pipeline_mode = #tpu.pipeline_mode<synchronous>, transform_indices = @transform_13, window_bounds = array<i64: 3, 1, 32>}, {pipeline_mode = #tpu.pipeline_mode<synchronous>, transform_indices = @transform_14, window_bounds = array<i64: 3, 1, 32>}, {pipeline_mode = #tpu.pipeline_mode<synchronous>, transform_indices = @transform_15, window_bounds = array<i64: 3, 1, 32>}, {transform_indices = @transform_16, window_bounds = array<i64: 2, 1, 32>}]} {
    %c0 = arith.constant 0 : index
    %c0_0 = arith.constant 0 : index
    %c0_1 = arith.constant 0 : index
    %0 = vector.load %arg1[%c0, %c0_0, %c0_1] : memref<2x8x32xf32, #tpu.memory_space<vmem>>, vector<2x8x32xf32>
    %1 = vector.shape_cast %0 : vector<2x8x32xf32> to vector<16x32xf32>
    %c0_2 = arith.constant 0 : index
    %c0_3 = arith.constant 0 : index
    %2 = vector.load %arg3[%c0_2, %c0_3] : memref<1x32xf32, #tpu.memory_space<vmem>>, vector<1x32xf32>
    %c0_4 = arith.constant 0 : index
    %c0_5 = arith.constant 0 : index
    %3 = vector.load %arg4[%c0_4, %c0_5] : memref<1x32xf32, #tpu.memory_space<vmem>>, vector<1x32xf32>
    %cst = arith.constant dense<0.000000e+00> : vector<16xf32>
    %4 = vector.multi_reduction <add>, %1, %cst [1] : vector<16x32xf32> to vector<16xf32>
    %5 = vector.shape_cast %4 : vector<16xf32> to vector<16x1xf32>
    %cst_6 = arith.constant 3.200000e+01 : f32
    %6 = vector.broadcast %cst_6 : f32 to vector<16x1xf32>
    %7 = arith.divf %5, %6 : vector<16x1xf32>
    %8 = vector.broadcast %7 : vector<16x1xf32> to vector<16x32xf32>
    %9 = arith.subf %1, %8 : vector<16x32xf32>
    %10 = arith.mulf %9, %9 : vector<16x32xf32>
    %cst_7 = arith.constant dense<0.000000e+00> : vector<16xf32>
    %11 = vector.multi_reduction <add>, %10, %cst_7 [1] : vector<16x32xf32> to vector<16xf32>
    %12 = vector.shape_cast %11 : vector<16xf32> to vector<16x1xf32>
    %cst_8 = arith.constant 3.200000e+01 : f32
    %13 = vector.broadcast %cst_8 : f32 to vector<16x1xf32>
    %14 = arith.divf %12, %13 : vector<16x1xf32>
    %15 = vector.broadcast %7 : vector<16x1xf32> to vector<16x32xf32>
    %16 = arith.subf %1, %15 : vector<16x32xf32>
    %cst_9 = arith.constant 9.99999996E-13 : f32
    %17 = vector.broadcast %cst_9 : f32 to vector<16x1xf32>
    %18 = arith.addf %14, %17 : vector<16x1xf32>
    %19 = math.rsqrt %18 : vector<16x1xf32>
    %20 = vector.broadcast %19 : vector<16x1xf32> to vector<16x32xf32>
    %21 = arith.mulf %16, %20 : vector<16x32xf32>
    %22 = vector.broadcast %2 : vector<1x32xf32> to vector<16x32xf32>
    %23 = arith.mulf %21, %22 : vector<16x32xf32>
    %24 = vector.broadcast %3 : vector<1x32xf32> to vector<16x32xf32>
    %25 = arith.addf %23, %24 : vector<16x32xf32>
    %c0_10 = arith.constant 0 : index
    %c0_11 = arith.constant 0 : index
    %c0_12 = arith.constant 0 : index
    %26 = vector.load %arg2[%c0_10, %c0_11, %c0_12] : memref<2x1x8xf32, #tpu.memory_space<vmem>>, vector<2x1x8xf32>
    %c0_13 = arith.constant 0 : index
    %c0_14 = arith.constant 0 : index
    %c0_15 = arith.constant 0 : index
    %27 = vector.load %arg5[%c0_13, %c0_14, %c0_15] : memref<3x32x96xf32, #tpu.memory_space<vmem>>, vector<1x32x96xf32>
    %28 = vector.shape_cast %27 : vector<1x32x96xf32> to vector<32x96xf32>
    %cst_16 = arith.constant dense<0.000000e+00> : vector<16x96xf32>
    %29 = tpu.matmul %25, %28, %cst_16 {dimension_numbers = #tpu.dot_dimension_numbers<[1], [0], [0], [1], [0, 0, 1, 1], [], []>} : vector<16x32xf32>, vector<32x96xf32>, vector<16x96xf32> -> vector<16x96xf32>
    %c0_17 = arith.constant 0 : index
    %c0_18 = arith.constant 0 : index
    %c0_19 = arith.constant 0 : index
    %30 = vector.load %arg6[%c0_17, %c0_18, %c0_19] : memref<3x1x96xf32, #tpu.memory_space<vmem>>, vector<1x1x96xf32>
    %31 = vector.shape_cast %30 : vector<1x1x96xf32> to vector<1x96xf32>
    %32 = vector.broadcast %31 : vector<1x96xf32> to vector<16x96xf32>
    %33 = arith.addf %29, %32 : vector<16x96xf32>
    %34 = vector.extract_strided_slice %33 {offsets = [0, 0], sizes = [16, 32], strides = [1, 1]} : vector<16x96xf32> to vector<16x32xf32>
    %cst_20 = arith.constant 0.353553385 : f32
    %35 = vector.broadcast %cst_20 : f32 to vector<16x32xf32>
    %36 = arith.mulf %34, %35 : vector<16x32xf32>
    %37 = vector.extract_strided_slice %33 {offsets = [0, 32], sizes = [16, 32], strides = [1, 1]} : vector<16x96xf32> to vector<16x32xf32>
    %38 = vector.extract_strided_slice %33 {offsets = [0, 64], sizes = [16, 32], strides = [1, 1]} : vector<16x96xf32> to vector<16x32xf32>
    %39 = vector.shape_cast %36 : vector<16x32xf32> to vector<2x8x32xf32>
    %40 = vector.shape_cast %37 : vector<16x32xf32> to vector<2x8x32xf32>
    %41 = vector.shape_cast %38 : vector<16x32xf32> to vector<2x8x32xf32>
    %c0_21 = arith.constant 0 : index
    %c0_22 = arith.constant 0 : index
    %c0_23 = arith.constant 0 : index
    %42 = vector.load %arg7[%c0_21, %c0_22, %c0_23] : memref<3x32x32xf32, #tpu.memory_space<vmem>>, vector<1x32x32xf32>
    %43 = vector.shape_cast %42 : vector<1x32x32xf32> to vector<32x32xf32>
    %44 = vector.extract_strided_slice %39 {offsets = [0, 0, 0], sizes = [2, 8, 8], strides = [1, 1, 1]} : vector<2x8x32xf32> to vector<2x8x8xf32>
    %45 = vector.extract_strided_slice %40 {offsets = [0, 0, 0], sizes = [2, 8, 8], strides = [1, 1, 1]} : vector<2x8x32xf32> to vector<2x8x8xf32>
    "tpu.trace_start"() <{level = 10 : i32, message = "bqd,bkd->bqk"}> : () -> ()
    %cst_24 = arith.constant dense<0.000000e+00> : vector<2x8x8xf32>
    %46 = tpu.matmul %44, %45, %cst_24 {dimension_numbers = #tpu.dot_dimension_numbers<[2], [2], [1], [1], [0, 0, 0, 1, 1, 1], [0], [0]>} : vector<2x8x8xf32>, vector<2x8x8xf32>, vector<2x8x8xf32> -> vector<2x8x8xf32>
    "tpu.trace_stop"() : () -> ()
    %47 = vector.broadcast %26 : vector<2x1x8xf32> to vector<2x8x8xf32>
    %48 = arith.addf %46, %47 : vector<2x8x8xf32>
    %cst_25 = arith.constant dense<0xFF800000> : vector<2x8xf32>
    %49 = vector.multi_reduction <maximumf>, %48, %cst_25 [2] : vector<2x8x8xf32> to vector<2x8xf32>
    %50 = vector.shape_cast %49 : vector<2x8xf32> to vector<2x8x1xf32>
    %51 = vector.broadcast %50 : vector<2x8x1xf32> to vector<2x8x8xf32>
    %52 = arith.subf %48, %51 : vector<2x8x8xf32>
    %53 = math.exp %52 : vector<2x8x8xf32>
    %cst_26 = arith.constant dense<0.000000e+00> : vector<2x8xf32>
    %54 = vector.multi_reduction <add>, %53, %cst_26 [2] : vector<2x8x8xf32> to vector<2x8xf32>
    %55 = vector.shape_cast %54 : vector<2x8xf32> to vector<2x8x1xf32>
    %56 = tpu.reciprocal %55 {approx = true} : vector<2x8x1xf32> -> vector<2x8x1xf32>
    %57 = vector.broadcast %56 : vector<2x8x1xf32> to vector<2x8x8xf32>
    %58 = arith.mulf %53, %57 : vector<2x8x8xf32>
    %59 = vector.extract_strided_slice %41 {offsets = [0, 0, 0], sizes = [2, 8, 8], strides = [1, 1, 1]} : vector<2x8x32xf32> to vector<2x8x8xf32>
    "tpu.trace_start"() <{level = 10 : i32, message = "bqk,bkd->bqd"}> : () -> ()
    %cst_27 = arith.constant dense<0.000000e+00> : vector<2x8x8xf32>
    %60 = tpu.matmul %58, %59, %cst_27 {dimension_numbers = #tpu.dot_dimension_numbers<[2], [1], [1], [2], [0, 0, 0, 1, 1, 2], [0], [0]>} : vector<2x8x8xf32>, vector<2x8x8xf32>, vector<2x8x8xf32> -> vector<2x8x8xf32>
    "tpu.trace_stop"() : () -> ()
    %61 = vector.shape_cast %60 : vector<2x8x8xf32> to vector<16x8xf32>
    %62 = vector.extract_strided_slice %43 {offsets = [0, 0], sizes = [8, 32], strides = [1, 1]} : vector<32x32xf32> to vector<8x32xf32>
    %cst_28 = arith.constant dense<0.000000e+00> : vector<16x32xf32>
    %63 = tpu.matmul %61, %62, %cst_28 {dimension_numbers = #tpu.dot_dimension_numbers<[1], [0], [0], [1], [0, 0, 1, 1], [], []>} : vector<16x8xf32>, vector<8x32xf32>, vector<16x32xf32> -> vector<16x32xf32>
    %64 = vector.extract_strided_slice %39 {offsets = [0, 0, 8], sizes = [2, 8, 8], strides = [1, 1, 1]} : vector<2x8x32xf32> to vector<2x8x8xf32>
    %65 = vector.extract_strided_slice %40 {offsets = [0, 0, 8], sizes = [2, 8, 8], strides = [1, 1, 1]} : vector<2x8x32xf32> to vector<2x8x8xf32>
    "tpu.trace_start"() <{level = 10 : i32, message = "bqd,bkd->bqk"}> : () -> ()
    %cst_29 = arith.constant dense<0.000000e+00> : vector<2x8x8xf32>
    %66 = tpu.matmul %64, %65, %cst_29 {dimension_numbers = #tpu.dot_dimension_numbers<[2], [2], [1], [1], [0, 0, 0, 1, 1, 1], [0], [0]>} : vector<2x8x8xf32>, vector<2x8x8xf32>, vector<2x8x8xf32> -> vector<2x8x8xf32>
    "tpu.trace_stop"() : () -> ()
    %67 = vector.broadcast %26 : vector<2x1x8xf32> to vector<2x8x8xf32>
    %68 = arith.addf %66, %67 : vector<2x8x8xf32>
    %cst_30 = arith.constant dense<0xFF800000> : vector<2x8xf32>
    %69 = vector.multi_reduction <maximumf>, %68, %cst_30 [2] : vector<2x8x8xf32> to vector<2x8xf32>
    %70 = vector.shape_cast %69 : vector<2x8xf32> to vector<2x8x1xf32>
    %71 = vector.broadcast %70 : vector<2x8x1xf32> to vector<2x8x8xf32>
    %72 = arith.subf %68, %71 : vector<2x8x8xf32>
    %73 = math.exp %72 : vector<2x8x8xf32>
    %cst_31 = arith.constant dense<0.000000e+00> : vector<2x8xf32>
    %74 = vector.multi_reduction <add>, %73, %cst_31 [2] : vector<2x8x8xf32> to vector<2x8xf32>
    %75 = vector.shape_cast %74 : vector<2x8xf32> to vector<2x8x1xf32>
    %76 = tpu.reciprocal %75 {approx = true} : vector<2x8x1xf32> -> vector<2x8x1xf32>
    %77 = vector.broadcast %76 : vector<2x8x1xf32> to vector<2x8x8xf32>
    %78 = arith.mulf %73, %77 : vector<2x8x8xf32>
    %79 = vector.extract_strided_slice %41 {offsets = [0, 0, 8], sizes = [2, 8, 8], strides = [1, 1, 1]} : vector<2x8x32xf32> to vector<2x8x8xf32>
    "tpu.trace_start"() <{level = 10 : i32, message = "bqk,bkd->bqd"}> : () -> ()
    %cst_32 = arith.constant dense<0.000000e+00> : vector<2x8x8xf32>
    %80 = tpu.matmul %78, %79, %cst_32 {dimension_numbers = #tpu.dot_dimension_numbers<[2], [1], [1], [2], [0, 0, 0, 1, 1, 2], [0], [0]>} : vector<2x8x8xf32>, vector<2x8x8xf32>, vector<2x8x8xf32> -> vector<2x8x8xf32>
    "tpu.trace_stop"() : () -> ()
    %81 = vector.shape_cast %80 : vector<2x8x8xf32> to vector<16x8xf32>
    %82 = vector.extract_strided_slice %43 {offsets = [8, 0], sizes = [8, 32], strides = [1, 1]} : vector<32x32xf32> to vector<8x32xf32>
    %cst_33 = arith.constant dense<0.000000e+00> : vector<16x32xf32>
    %83 = tpu.matmul %81, %82, %cst_33 {dimension_numbers = #tpu.dot_dimension_numbers<[1], [0], [0], [1], [0, 0, 1, 1], [], []>} : vector<16x8xf32>, vector<8x32xf32>, vector<16x32xf32> -> vector<16x32xf32>
    %84 = arith.addf %63, %83 : vector<16x32xf32>
    %85 = vector.extract_strided_slice %39 {offsets = [0, 0, 16], sizes = [2, 8, 8], strides = [1, 1, 1]} : vector<2x8x32xf32> to vector<2x8x8xf32>
    %86 = vector.extract_strided_slice %40 {offsets = [0, 0, 16], sizes = [2, 8, 8], strides = [1, 1, 1]} : vector<2x8x32xf32> to vector<2x8x8xf32>
    "tpu.trace_start"() <{level = 10 : i32, message = "bqd,bkd->bqk"}> : () -> ()
    %cst_34 = arith.constant dense<0.000000e+00> : vector<2x8x8xf32>
    %87 = tpu.matmul %85, %86, %cst_34 {dimension_numbers = #tpu.dot_dimension_numbers<[2], [2], [1], [1], [0, 0, 0, 1, 1, 1], [0], [0]>} : vector<2x8x8xf32>, vector<2x8x8xf32>, vector<2x8x8xf32> -> vector<2x8x8xf32>
    "tpu.trace_stop"() : () -> ()
    %88 = vector.broadcast %26 : vector<2x1x8xf32> to vector<2x8x8xf32>
    %89 = arith.addf %87, %88 : vector<2x8x8xf32>
    %cst_35 = arith.constant dense<0xFF800000> : vector<2x8xf32>
    %90 = vector.multi_reduction <maximumf>, %89, %cst_35 [2] : vector<2x8x8xf32> to vector<2x8xf32>
    %91 = vector.shape_cast %90 : vector<2x8xf32> to vector<2x8x1xf32>
    %92 = vector.broadcast %91 : vector<2x8x1xf32> to vector<2x8x8xf32>
    %93 = arith.subf %89, %92 : vector<2x8x8xf32>
    %94 = math.exp %93 : vector<2x8x8xf32>
    %cst_36 = arith.constant dense<0.000000e+00> : vector<2x8xf32>
    %95 = vector.multi_reduction <add>, %94, %cst_36 [2] : vector<2x8x8xf32> to vector<2x8xf32>
    %96 = vector.shape_cast %95 : vector<2x8xf32> to vector<2x8x1xf32>
    %97 = tpu.reciprocal %96 {approx = true} : vector<2x8x1xf32> -> vector<2x8x1xf32>
    %98 = vector.broadcast %97 : vector<2x8x1xf32> to vector<2x8x8xf32>
    %99 = arith.mulf %94, %98 : vector<2x8x8xf32>
    %100 = vector.extract_strided_slice %41 {offsets = [0, 0, 16], sizes = [2, 8, 8], strides = [1, 1, 1]} : vector<2x8x32xf32> to vector<2x8x8xf32>
    "tpu.trace_start"() <{level = 10 : i32, message = "bqk,bkd->bqd"}> : () -> ()
    %cst_37 = arith.constant dense<0.000000e+00> : vector<2x8x8xf32>
    %101 = tpu.matmul %99, %100, %cst_37 {dimension_numbers = #tpu.dot_dimension_numbers<[2], [1], [1], [2], [0, 0, 0, 1, 1, 2], [0], [0]>} : vector<2x8x8xf32>, vector<2x8x8xf32>, vector<2x8x8xf32> -> vector<2x8x8xf32>
    "tpu.trace_stop"() : () -> ()
    %102 = vector.shape_cast %101 : vector<2x8x8xf32> to vector<16x8xf32>
    %103 = vector.extract_strided_slice %43 {offsets = [16, 0], sizes = [8, 32], strides = [1, 1]} : vector<32x32xf32> to vector<8x32xf32>
    %cst_38 = arith.constant dense<0.000000e+00> : vector<16x32xf32>
    %104 = tpu.matmul %102, %103, %cst_38 {dimension_numbers = #tpu.dot_dimension_numbers<[1], [0], [0], [1], [0, 0, 1, 1], [], []>} : vector<16x8xf32>, vector<8x32xf32>, vector<16x32xf32> -> vector<16x32xf32>
    %105 = arith.addf %84, %104 : vector<16x32xf32>
    %106 = vector.extract_strided_slice %39 {offsets = [0, 0, 24], sizes = [2, 8, 8], strides = [1, 1, 1]} : vector<2x8x32xf32> to vector<2x8x8xf32>
    %107 = vector.extract_strided_slice %40 {offsets = [0, 0, 24], sizes = [2, 8, 8], strides = [1, 1, 1]} : vector<2x8x32xf32> to vector<2x8x8xf32>
    "tpu.trace_start"() <{level = 10 : i32, message = "bqd,bkd->bqk"}> : () -> ()
    %cst_39 = arith.constant dense<0.000000e+00> : vector<2x8x8xf32>
    %108 = tpu.matmul %106, %107, %cst_39 {dimension_numbers = #tpu.dot_dimension_numbers<[2], [2], [1], [1], [0, 0, 0, 1, 1, 1], [0], [0]>} : vector<2x8x8xf32>, vector<2x8x8xf32>, vector<2x8x8xf32> -> vector<2x8x8xf32>
    "tpu.trace_stop"() : () -> ()
    %109 = vector.broadcast %26 : vector<2x1x8xf32> to vector<2x8x8xf32>
    %110 = arith.addf %108, %109 : vector<2x8x8xf32>
    %cst_40 = arith.constant dense<0xFF800000> : vector<2x8xf32>
    %111 = vector.multi_reduction <maximumf>, %110, %cst_40 [2] : vector<2x8x8xf32> to vector<2x8xf32>
    %112 = vector.shape_cast %111 : vector<2x8xf32> to vector<2x8x1xf32>
    %113 = vector.broadcast %112 : vector<2x8x1xf32> to vector<2x8x8xf32>
    %114 = arith.subf %110, %113 : vector<2x8x8xf32>
    %115 = math.exp %114 : vector<2x8x8xf32>
    %cst_41 = arith.constant dense<0.000000e+00> : vector<2x8xf32>
    %116 = vector.multi_reduction <add>, %115, %cst_41 [2] : vector<2x8x8xf32> to vector<2x8xf32>
    %117 = vector.shape_cast %116 : vector<2x8xf32> to vector<2x8x1xf32>
    %118 = tpu.reciprocal %117 {approx = true} : vector<2x8x1xf32> -> vector<2x8x1xf32>
    %119 = vector.broadcast %118 : vector<2x8x1xf32> to vector<2x8x8xf32>
    %120 = arith.mulf %115, %119 : vector<2x8x8xf32>
    %121 = vector.extract_strided_slice %41 {offsets = [0, 0, 24], sizes = [2, 8, 8], strides = [1, 1, 1]} : vector<2x8x32xf32> to vector<2x8x8xf32>
    "tpu.trace_start"() <{level = 10 : i32, message = "bqk,bkd->bqd"}> : () -> ()
    %cst_42 = arith.constant dense<0.000000e+00> : vector<2x8x8xf32>
    %122 = tpu.matmul %120, %121, %cst_42 {dimension_numbers = #tpu.dot_dimension_numbers<[2], [1], [1], [2], [0, 0, 0, 1, 1, 2], [0], [0]>} : vector<2x8x8xf32>, vector<2x8x8xf32>, vector<2x8x8xf32> -> vector<2x8x8xf32>
    "tpu.trace_stop"() : () -> ()
    %123 = vector.shape_cast %122 : vector<2x8x8xf32> to vector<16x8xf32>
    %124 = vector.extract_strided_slice %43 {offsets = [24, 0], sizes = [8, 32], strides = [1, 1]} : vector<32x32xf32> to vector<8x32xf32>
    %cst_43 = arith.constant dense<0.000000e+00> : vector<16x32xf32>
    %125 = tpu.matmul %123, %124, %cst_43 {dimension_numbers = #tpu.dot_dimension_numbers<[1], [0], [0], [1], [0, 0, 1, 1], [], []>} : vector<16x8xf32>, vector<8x32xf32>, vector<16x32xf32> -> vector<16x32xf32>
    %126 = arith.addf %105, %125 : vector<16x32xf32>
    %c0_44 = arith.constant 0 : index
    %c0_45 = arith.constant 0 : index
    %c0_46 = arith.constant 0 : index
    %127 = vector.load %arg8[%c0_44, %c0_45, %c0_46] : memref<3x1x32xf32, #tpu.memory_space<vmem>>, vector<1x1x32xf32>
    %128 = vector.shape_cast %127 : vector<1x1x32xf32> to vector<1x32xf32>
    %129 = vector.broadcast %128 : vector<1x32xf32> to vector<16x32xf32>
    %130 = arith.addf %126, %129 : vector<16x32xf32>
    %131 = arith.addf %130, %25 : vector<16x32xf32>
    %c0_47 = arith.constant 0 : index
    %c0_48 = arith.constant 0 : index
    %c0_49 = arith.constant 0 : index
    %132 = vector.load %arg9[%c0_47, %c0_48, %c0_49] : memref<3x1x32xf32, #tpu.memory_space<vmem>>, vector<1x1x32xf32>
    %133 = vector.shape_cast %132 : vector<1x1x32xf32> to vector<1x32xf32>
    %c0_50 = arith.constant 0 : index
    %c0_51 = arith.constant 0 : index
    %c0_52 = arith.constant 0 : index
    %134 = vector.load %arg10[%c0_50, %c0_51, %c0_52] : memref<3x1x32xf32, #tpu.memory_space<vmem>>, vector<1x1x32xf32>
    %135 = vector.shape_cast %134 : vector<1x1x32xf32> to vector<1x32xf32>
    %cst_53 = arith.constant dense<0.000000e+00> : vector<16xf32>
    %136 = vector.multi_reduction <add>, %131, %cst_53 [1] : vector<16x32xf32> to vector<16xf32>
    %137 = vector.shape_cast %136 : vector<16xf32> to vector<16x1xf32>
    %cst_54 = arith.constant 3.200000e+01 : f32
    %138 = vector.broadcast %cst_54 : f32 to vector<16x1xf32>
    %139 = arith.divf %137, %138 : vector<16x1xf32>
    %140 = vector.broadcast %139 : vector<16x1xf32> to vector<16x32xf32>
    %141 = arith.subf %131, %140 : vector<16x32xf32>
    %142 = arith.mulf %141, %141 : vector<16x32xf32>
    %cst_55 = arith.constant dense<0.000000e+00> : vector<16xf32>
    %143 = vector.multi_reduction <add>, %142, %cst_55 [1] : vector<16x32xf32> to vector<16xf32>
    %144 = vector.shape_cast %143 : vector<16xf32> to vector<16x1xf32>
    %cst_56 = arith.constant 3.200000e+01 : f32
    %145 = vector.broadcast %cst_56 : f32 to vector<16x1xf32>
    %146 = arith.divf %144, %145 : vector<16x1xf32>
    %147 = vector.broadcast %139 : vector<16x1xf32> to vector<16x32xf32>
    %148 = arith.subf %131, %147 : vector<16x32xf32>
    %cst_57 = arith.constant 9.99999996E-13 : f32
    %149 = vector.broadcast %cst_57 : f32 to vector<16x1xf32>
    %150 = arith.addf %146, %149 : vector<16x1xf32>
    %151 = math.rsqrt %150 : vector<16x1xf32>
    %152 = vector.broadcast %151 : vector<16x1xf32> to vector<16x32xf32>
    %153 = arith.mulf %148, %152 : vector<16x32xf32>
    %154 = vector.broadcast %133 : vector<1x32xf32> to vector<16x32xf32>
    %155 = arith.mulf %153, %154 : vector<16x32xf32>
    %156 = vector.broadcast %135 : vector<1x32xf32> to vector<16x32xf32>
    %157 = arith.addf %155, %156 : vector<16x32xf32>
    %c0_58 = arith.constant 0 : index
    %c0_59 = arith.constant 0 : index
    %c0_60 = arith.constant 0 : index
    %158 = vector.load %arg11[%c0_58, %c0_59, %c0_60] : memref<3x32x64xf32, #tpu.memory_space<vmem>>, vector<1x32x64xf32>
    %159 = vector.shape_cast %158 : vector<1x32x64xf32> to vector<32x64xf32>
    %cst_61 = arith.constant dense<0.000000e+00> : vector<16x64xf32>
    %160 = tpu.matmul %157, %159, %cst_61 {dimension_numbers = #tpu.dot_dimension_numbers<[1], [0], [0], [1], [0, 0, 1, 1], [], []>} : vector<16x32xf32>, vector<32x64xf32>, vector<16x64xf32> -> vector<16x64xf32>
    %c0_62 = arith.constant 0 : index
    %c0_63 = arith.constant 0 : index
    %c0_64 = arith.constant 0 : index
    %161 = vector.load %arg12[%c0_62, %c0_63, %c0_64] : memref<3x1x64xf32, #tpu.memory_space<vmem>>, vector<1x1x64xf32>
    %162 = vector.shape_cast %161 : vector<1x1x64xf32> to vector<1x64xf32>
    %163 = vector.broadcast %162 : vector<1x64xf32> to vector<16x64xf32>
    %164 = arith.addf %160, %163 : vector<16x64xf32>
    %cst_65 = arith.constant 5.000000e-01 : f32
    %165 = vector.broadcast %cst_65 : f32 to vector<16x64xf32>
    %166 = arith.mulf %165, %164 : vector<16x64xf32>
    %cst_66 = arith.constant 4.471500e-02 : f32
    %167 = vector.broadcast %cst_66 : f32 to vector<16x64xf32>
    %168 = arith.mulf %167, %164 : vector<16x64xf32>
    %169 = arith.mulf %168, %164 : vector<16x64xf32>
    %170 = arith.mulf %169, %164 : vector<16x64xf32>
    %171 = arith.addf %164, %170 : vector<16x64xf32>
    %cst_67 = arith.constant 0.797884583 : f32
    %172 = vector.broadcast %cst_67 : f32 to vector<16x64xf32>
    %173 = arith.mulf %172, %171 : vector<16x64xf32>
    %174 = math.tanh %173 : vector<16x64xf32>
    %cst_68 = arith.constant 1.000000e+00 : f32
    %175 = vector.broadcast %cst_68 : f32 to vector<16x64xf32>
    %176 = arith.addf %175, %174 : vector<16x64xf32>
    %177 = arith.mulf %166, %176 : vector<16x64xf32>
    %c0_69 = arith.constant 0 : index
    %c0_70 = arith.constant 0 : index
    %c0_71 = arith.constant 0 : index
    %178 = vector.load %arg13[%c0_69, %c0_70, %c0_71] : memref<3x64x32xf32, #tpu.memory_space<vmem>>, vector<1x64x32xf32>
    %179 = vector.shape_cast %178 : vector<1x64x32xf32> to vector<64x32xf32>
    %cst_72 = arith.constant dense<0.000000e+00> : vector<16x32xf32>
    %180 = tpu.matmul %177, %179, %cst_72 {dimension_numbers = #tpu.dot_dimension_numbers<[1], [0], [0], [1], [0, 0, 1, 1], [], []>} : vector<16x64xf32>, vector<64x32xf32>, vector<16x32xf32> -> vector<16x32xf32>
    %c0_73 = arith.constant 0 : index
    %c0_74 = arith.constant 0 : index
    %c0_75 = arith.constant 0 : index
    %181 = vector.load %arg14[%c0_73, %c0_74, %c0_75] : memref<3x1x32xf32, #tpu.memory_space<vmem>>, vector<1x1x32xf32>
    %182 = vector.shape_cast %181 : vector<1x1x32xf32> to vector<1x32xf32>
    %183 = vector.broadcast %182 : vector<1x32xf32> to vector<16x32xf32>
    %184 = arith.addf %180, %183 : vector<16x32xf32>
    %185 = arith.addf %184, %157 : vector<16x32xf32>
    %c0_76 = arith.constant 0 : index
    %c0_77 = arith.constant 0 : index
    %c0_78 = arith.constant 0 : index
    %186 = vector.load %arg15[%c0_76, %c0_77, %c0_78] : memref<3x1x32xf32, #tpu.memory_space<vmem>>, vector<1x1x32xf32>
    %187 = vector.shape_cast %186 : vector<1x1x32xf32> to vector<1x32xf32>
    %c0_79 = arith.constant 0 : index
    %c0_80 = arith.constant 0 : index
    %c0_81 = arith.constant 0 : index
    %188 = vector.load %arg16[%c0_79, %c0_80, %c0_81] : memref<3x1x32xf32, #tpu.memory_space<vmem>>, vector<1x1x32xf32>
    %189 = vector.shape_cast %188 : vector<1x1x32xf32> to vector<1x32xf32>
    %cst_82 = arith.constant dense<0.000000e+00> : vector<16xf32>
    %190 = vector.multi_reduction <add>, %185, %cst_82 [1] : vector<16x32xf32> to vector<16xf32>
    %191 = vector.shape_cast %190 : vector<16xf32> to vector<16x1xf32>
    %cst_83 = arith.constant 3.200000e+01 : f32
    %192 = vector.broadcast %cst_83 : f32 to vector<16x1xf32>
    %193 = arith.divf %191, %192 : vector<16x1xf32>
    %194 = vector.broadcast %193 : vector<16x1xf32> to vector<16x32xf32>
    %195 = arith.subf %185, %194 : vector<16x32xf32>
    %196 = arith.mulf %195, %195 : vector<16x32xf32>
    %cst_84 = arith.constant dense<0.000000e+00> : vector<16xf32>
    %197 = vector.multi_reduction <add>, %196, %cst_84 [1] : vector<16x32xf32> to vector<16xf32>
    %198 = vector.shape_cast %197 : vector<16xf32> to vector<16x1xf32>
    %cst_85 = arith.constant 3.200000e+01 : f32
    %199 = vector.broadcast %cst_85 : f32 to vector<16x1xf32>
    %200 = arith.divf %198, %199 : vector<16x1xf32>
    %201 = vector.broadcast %193 : vector<16x1xf32> to vector<16x32xf32>
    %202 = arith.subf %185, %201 : vector<16x32xf32>
    %cst_86 = arith.constant 9.99999996E-13 : f32
    %203 = vector.broadcast %cst_86 : f32 to vector<16x1xf32>
    %204 = arith.addf %200, %203 : vector<16x1xf32>
    %205 = math.rsqrt %204 : vector<16x1xf32>
    %206 = vector.broadcast %205 : vector<16x1xf32> to vector<16x32xf32>
    %207 = arith.mulf %202, %206 : vector<16x32xf32>
    %208 = vector.broadcast %187 : vector<1x32xf32> to vector<16x32xf32>
    %209 = arith.mulf %207, %208 : vector<16x32xf32>
    %210 = vector.broadcast %189 : vector<1x32xf32> to vector<16x32xf32>
    %211 = arith.addf %209, %210 : vector<16x32xf32>
    %c1 = arith.constant 1 : index
    %c0_87 = arith.constant 0 : index
    %c0_88 = arith.constant 0 : index
    %212 = vector.load %arg5[%c1, %c0_87, %c0_88] : memref<3x32x96xf32, #tpu.memory_space<vmem>>, vector<1x32x96xf32>
    %213 = vector.shape_cast %212 : vector<1x32x96xf32> to vector<32x96xf32>
    %cst_89 = arith.constant dense<0.000000e+00> : vector<16x96xf32>
    %214 = tpu.matmul %211, %213, %cst_89 {dimension_numbers = #tpu.dot_dimension_numbers<[1], [0], [0], [1], [0, 0, 1, 1], [], []>} : vector<16x32xf32>, vector<32x96xf32>, vector<16x96xf32> -> vector<16x96xf32>
    %c1_90 = arith.constant 1 : index
    %c0_91 = arith.constant 0 : index
    %c0_92 = arith.constant 0 : index
    %215 = vector.load %arg6[%c1_90, %c0_91, %c0_92] : memref<3x1x96xf32, #tpu.memory_space<vmem>>, vector<1x1x96xf32>
    %216 = vector.shape_cast %215 : vector<1x1x96xf32> to vector<1x96xf32>
    %217 = vector.broadcast %216 : vector<1x96xf32> to vector<16x96xf32>
    %218 = arith.addf %214, %217 : vector<16x96xf32>
    %219 = vector.extract_strided_slice %218 {offsets = [0, 0], sizes = [16, 32], strides = [1, 1]} : vector<16x96xf32> to vector<16x32xf32>
    %cst_93 = arith.constant 0.353553385 : f32
    %220 = vector.broadcast %cst_93 : f32 to vector<16x32xf32>
    %221 = arith.mulf %219, %220 : vector<16x32xf32>
    %222 = vector.extract_strided_slice %218 {offsets = [0, 32], sizes = [16, 32], strides = [1, 1]} : vector<16x96xf32> to vector<16x32xf32>
    %223 = vector.extract_strided_slice %218 {offsets = [0, 64], sizes = [16, 32], strides = [1, 1]} : vector<16x96xf32> to vector<16x32xf32>
    %224 = vector.shape_cast %221 : vector<16x32xf32> to vector<2x8x32xf32>
    %225 = vector.shape_cast %222 : vector<16x32xf32> to vector<2x8x32xf32>
    %226 = vector.shape_cast %223 : vector<16x32xf32> to vector<2x8x32xf32>
    %c1_94 = arith.constant 1 : index
    %c0_95 = arith.constant 0 : index
    %c0_96 = arith.constant 0 : index
    %227 = vector.load %arg7[%c1_94, %c0_95, %c0_96] : memref<3x32x32xf32, #tpu.memory_space<vmem>>, vector<1x32x32xf32>
    %228 = vector.shape_cast %227 : vector<1x32x32xf32> to vector<32x32xf32>
    %229 = vector.extract_strided_slice %224 {offsets = [0, 0, 0], sizes = [2, 8, 8], strides = [1, 1, 1]} : vector<2x8x32xf32> to vector<2x8x8xf32>
    %230 = vector.extract_strided_slice %225 {offsets = [0, 0, 0], sizes = [2, 8, 8], strides = [1, 1, 1]} : vector<2x8x32xf32> to vector<2x8x8xf32>
    "tpu.trace_start"() <{level = 10 : i32, message = "bqd,bkd->bqk"}> : () -> ()
    %cst_97 = arith.constant dense<0.000000e+00> : vector<2x8x8xf32>
    %231 = tpu.matmul %229, %230, %cst_97 {dimension_numbers = #tpu.dot_dimension_numbers<[2], [2], [1], [1], [0, 0, 0, 1, 1, 1], [0], [0]>} : vector<2x8x8xf32>, vector<2x8x8xf32>, vector<2x8x8xf32> -> vector<2x8x8xf32>
    "tpu.trace_stop"() : () -> ()
    %232 = vector.broadcast %26 : vector<2x1x8xf32> to vector<2x8x8xf32>
    %233 = arith.addf %231, %232 : vector<2x8x8xf32>
    %cst_98 = arith.constant dense<0xFF800000> : vector<2x8xf32>
    %234 = vector.multi_reduction <maximumf>, %233, %cst_98 [2] : vector<2x8x8xf32> to vector<2x8xf32>
    %235 = vector.shape_cast %234 : vector<2x8xf32> to vector<2x8x1xf32>
    %236 = vector.broadcast %235 : vector<2x8x1xf32> to vector<2x8x8xf32>
    %237 = arith.subf %233, %236 : vector<2x8x8xf32>
    %238 = math.exp %237 : vector<2x8x8xf32>
    %cst_99 = arith.constant dense<0.000000e+00> : vector<2x8xf32>
    %239 = vector.multi_reduction <add>, %238, %cst_99 [2] : vector<2x8x8xf32> to vector<2x8xf32>
    %240 = vector.shape_cast %239 : vector<2x8xf32> to vector<2x8x1xf32>
    %241 = tpu.reciprocal %240 {approx = true} : vector<2x8x1xf32> -> vector<2x8x1xf32>
    %242 = vector.broadcast %241 : vector<2x8x1xf32> to vector<2x8x8xf32>
    %243 = arith.mulf %238, %242 : vector<2x8x8xf32>
    %244 = vector.extract_strided_slice %226 {offsets = [0, 0, 0], sizes = [2, 8, 8], strides = [1, 1, 1]} : vector<2x8x32xf32> to vector<2x8x8xf32>
    "tpu.trace_start"() <{level = 10 : i32, message = "bqk,bkd->bqd"}> : () -> ()
    %cst_100 = arith.constant dense<0.000000e+00> : vector<2x8x8xf32>
    %245 = tpu.matmul %243, %244, %cst_100 {dimension_numbers = #tpu.dot_dimension_numbers<[2], [1], [1], [2], [0, 0, 0, 1, 1, 2], [0], [0]>} : vector<2x8x8xf32>, vector<2x8x8xf32>, vector<2x8x8xf32> -> vector<2x8x8xf32>
    "tpu.trace_stop"() : () -> ()
    %246 = vector.shape_cast %245 : vector<2x8x8xf32> to vector<16x8xf32>
    %247 = vector.extract_strided_slice %228 {offsets = [0, 0], sizes = [8, 32], strides = [1, 1]} : vector<32x32xf32> to vector<8x32xf32>
    %cst_101 = arith.constant dense<0.000000e+00> : vector<16x32xf32>
    %248 = tpu.matmul %246, %247, %cst_101 {dimension_numbers = #tpu.dot_dimension_numbers<[1], [0], [0], [1], [0, 0, 1, 1], [], []>} : vector<16x8xf32>, vector<8x32xf32>, vector<16x32xf32> -> vector<16x32xf32>
    %249 = vector.extract_strided_slice %224 {offsets = [0, 0, 8], sizes = [2, 8, 8], strides = [1, 1, 1]} : vector<2x8x32xf32> to vector<2x8x8xf32>
    %250 = vector.extract_strided_slice %225 {offsets = [0, 0, 8], sizes = [2, 8, 8], strides = [1, 1, 1]} : vector<2x8x32xf32> to vector<2x8x8xf32>
    "tpu.trace_start"() <{level = 10 : i32, message = "bqd,bkd->bqk"}> : () -> ()
    %cst_102 = arith.constant dense<0.000000e+00> : vector<2x8x8xf32>
    %251 = tpu.matmul %249, %250, %cst_102 {dimension_numbers = #tpu.dot_dimension_numbers<[2], [2], [1], [1], [0, 0, 0, 1, 1, 1], [0], [0]>} : vector<2x8x8xf32>, vector<2x8x8xf32>, vector<2x8x8xf32> -> vector<2x8x8xf32>
    "tpu.trace_stop"() : () -> ()
    %252 = vector.broadcast %26 : vector<2x1x8xf32> to vector<2x8x8xf32>
    %253 = arith.addf %251, %252 : vector<2x8x8xf32>
    %cst_103 = arith.constant dense<0xFF800000> : vector<2x8xf32>
    %254 = vector.multi_reduction <maximumf>, %253, %cst_103 [2] : vector<2x8x8xf32> to vector<2x8xf32>
    %255 = vector.shape_cast %254 : vector<2x8xf32> to vector<2x8x1xf32>
    %256 = vector.broadcast %255 : vector<2x8x1xf32> to vector<2x8x8xf32>
    %257 = arith.subf %253, %256 : vector<2x8x8xf32>
    %258 = math.exp %257 : vector<2x8x8xf32>
    %cst_104 = arith.constant dense<0.000000e+00> : vector<2x8xf32>
    %259 = vector.multi_reduction <add>, %258, %cst_104 [2] : vector<2x8x8xf32> to vector<2x8xf32>
    %260 = vector.shape_cast %259 : vector<2x8xf32> to vector<2x8x1xf32>
    %261 = tpu.reciprocal %260 {approx = true} : vector<2x8x1xf32> -> vector<2x8x1xf32>
    %262 = vector.broadcast %261 : vector<2x8x1xf32> to vector<2x8x8xf32>
    %263 = arith.mulf %258, %262 : vector<2x8x8xf32>
    %264 = vector.extract_strided_slice %226 {offsets = [0, 0, 8], sizes = [2, 8, 8], strides = [1, 1, 1]} : vector<2x8x32xf32> to vector<2x8x8xf32>
    "tpu.trace_start"() <{level = 10 : i32, message = "bqk,bkd->bqd"}> : () -> ()
    %cst_105 = arith.constant dense<0.000000e+00> : vector<2x8x8xf32>
    %265 = tpu.matmul %263, %264, %cst_105 {dimension_numbers = #tpu.dot_dimension_numbers<[2], [1], [1], [2], [0, 0, 0, 1, 1, 2], [0], [0]>} : vector<2x8x8xf32>, vector<2x8x8xf32>, vector<2x8x8xf32> -> vector<2x8x8xf32>
    "tpu.trace_stop"() : () -> ()
    %266 = vector.shape_cast %265 : vector<2x8x8xf32> to vector<16x8xf32>
    %267 = vector.extract_strided_slice %228 {offsets = [8, 0], sizes = [8, 32], strides = [1, 1]} : vector<32x32xf32> to vector<8x32xf32>
    %cst_106 = arith.constant dense<0.000000e+00> : vector<16x32xf32>
    %268 = tpu.matmul %266, %267, %cst_106 {dimension_numbers = #tpu.dot_dimension_numbers<[1], [0], [0], [1], [0, 0, 1, 1], [], []>} : vector<16x8xf32>, vector<8x32xf32>, vector<16x32xf32> -> vector<16x32xf32>
    %269 = arith.addf %248, %268 : vector<16x32xf32>
    %270 = vector.extract_strided_slice %224 {offsets = [0, 0, 16], sizes = [2, 8, 8], strides = [1, 1, 1]} : vector<2x8x32xf32> to vector<2x8x8xf32>
    %271 = vector.extract_strided_slice %225 {offsets = [0, 0, 16], sizes = [2, 8, 8], strides = [1, 1, 1]} : vector<2x8x32xf32> to vector<2x8x8xf32>
    "tpu.trace_start"() <{level = 10 : i32, message = "bqd,bkd->bqk"}> : () -> ()
    %cst_107 = arith.constant dense<0.000000e+00> : vector<2x8x8xf32>
    %272 = tpu.matmul %270, %271, %cst_107 {dimension_numbers = #tpu.dot_dimension_numbers<[2], [2], [1], [1], [0, 0, 0, 1, 1, 1], [0], [0]>} : vector<2x8x8xf32>, vector<2x8x8xf32>, vector<2x8x8xf32> -> vector<2x8x8xf32>
    "tpu.trace_stop"() : () -> ()
    %273 = vector.broadcast %26 : vector<2x1x8xf32> to vector<2x8x8xf32>
    %274 = arith.addf %272, %273 : vector<2x8x8xf32>
    %cst_108 = arith.constant dense<0xFF800000> : vector<2x8xf32>
    %275 = vector.multi_reduction <maximumf>, %274, %cst_108 [2] : vector<2x8x8xf32> to vector<2x8xf32>
    %276 = vector.shape_cast %275 : vector<2x8xf32> to vector<2x8x1xf32>
    %277 = vector.broadcast %276 : vector<2x8x1xf32> to vector<2x8x8xf32>
    %278 = arith.subf %274, %277 : vector<2x8x8xf32>
    %279 = math.exp %278 : vector<2x8x8xf32>
    %cst_109 = arith.constant dense<0.000000e+00> : vector<2x8xf32>
    %280 = vector.multi_reduction <add>, %279, %cst_109 [2] : vector<2x8x8xf32> to vector<2x8xf32>
    %281 = vector.shape_cast %280 : vector<2x8xf32> to vector<2x8x1xf32>
    %282 = tpu.reciprocal %281 {approx = true} : vector<2x8x1xf32> -> vector<2x8x1xf32>
    %283 = vector.broadcast %282 : vector<2x8x1xf32> to vector<2x8x8xf32>
    %284 = arith.mulf %279, %283 : vector<2x8x8xf32>
    %285 = vector.extract_strided_slice %226 {offsets = [0, 0, 16], sizes = [2, 8, 8], strides = [1, 1, 1]} : vector<2x8x32xf32> to vector<2x8x8xf32>
    "tpu.trace_start"() <{level = 10 : i32, message = "bqk,bkd->bqd"}> : () -> ()
    %cst_110 = arith.constant dense<0.000000e+00> : vector<2x8x8xf32>
    %286 = tpu.matmul %284, %285, %cst_110 {dimension_numbers = #tpu.dot_dimension_numbers<[2], [1], [1], [2], [0, 0, 0, 1, 1, 2], [0], [0]>} : vector<2x8x8xf32>, vector<2x8x8xf32>, vector<2x8x8xf32> -> vector<2x8x8xf32>
    "tpu.trace_stop"() : () -> ()
    %287 = vector.shape_cast %286 : vector<2x8x8xf32> to vector<16x8xf32>
    %288 = vector.extract_strided_slice %228 {offsets = [16, 0], sizes = [8, 32], strides = [1, 1]} : vector<32x32xf32> to vector<8x32xf32>
    %cst_111 = arith.constant dense<0.000000e+00> : vector<16x32xf32>
    %289 = tpu.matmul %287, %288, %cst_111 {dimension_numbers = #tpu.dot_dimension_numbers<[1], [0], [0], [1], [0, 0, 1, 1], [], []>} : vector<16x8xf32>, vector<8x32xf32>, vector<16x32xf32> -> vector<16x32xf32>
    %290 = arith.addf %269, %289 : vector<16x32xf32>
    %291 = vector.extract_strided_slice %224 {offsets = [0, 0, 24], sizes = [2, 8, 8], strides = [1, 1, 1]} : vector<2x8x32xf32> to vector<2x8x8xf32>
    %292 = vector.extract_strided_slice %225 {offsets = [0, 0, 24], sizes = [2, 8, 8], strides = [1, 1, 1]} : vector<2x8x32xf32> to vector<2x8x8xf32>
    "tpu.trace_start"() <{level = 10 : i32, message = "bqd,bkd->bqk"}> : () -> ()
    %cst_112 = arith.constant dense<0.000000e+00> : vector<2x8x8xf32>
    %293 = tpu.matmul %291, %292, %cst_112 {dimension_numbers = #tpu.dot_dimension_numbers<[2], [2], [1], [1], [0, 0, 0, 1, 1, 1], [0], [0]>} : vector<2x8x8xf32>, vector<2x8x8xf32>, vector<2x8x8xf32> -> vector<2x8x8xf32>
    "tpu.trace_stop"() : () -> ()
    %294 = vector.broadcast %26 : vector<2x1x8xf32> to vector<2x8x8xf32>
    %295 = arith.addf %293, %294 : vector<2x8x8xf32>
    %cst_113 = arith.constant dense<0xFF800000> : vector<2x8xf32>
    %296 = vector.multi_reduction <maximumf>, %295, %cst_113 [2] : vector<2x8x8xf32> to vector<2x8xf32>
    %297 = vector.shape_cast %296 : vector<2x8xf32> to vector<2x8x1xf32>
    %298 = vector.broadcast %297 : vector<2x8x1xf32> to vector<2x8x8xf32>
    %299 = arith.subf %295, %298 : vector<2x8x8xf32>
    %300 = math.exp %299 : vector<2x8x8xf32>
    %cst_114 = arith.constant dense<0.000000e+00> : vector<2x8xf32>
    %301 = vector.multi_reduction <add>, %300, %cst_114 [2] : vector<2x8x8xf32> to vector<2x8xf32>
    %302 = vector.shape_cast %301 : vector<2x8xf32> to vector<2x8x1xf32>
    %303 = tpu.reciprocal %302 {approx = true} : vector<2x8x1xf32> -> vector<2x8x1xf32>
    %304 = vector.broadcast %303 : vector<2x8x1xf32> to vector<2x8x8xf32>
    %305 = arith.mulf %300, %304 : vector<2x8x8xf32>
    %306 = vector.extract_strided_slice %226 {offsets = [0, 0, 24], sizes = [2, 8, 8], strides = [1, 1, 1]} : vector<2x8x32xf32> to vector<2x8x8xf32>
    "tpu.trace_start"() <{level = 10 : i32, message = "bqk,bkd->bqd"}> : () -> ()
    %cst_115 = arith.constant dense<0.000000e+00> : vector<2x8x8xf32>
    %307 = tpu.matmul %305, %306, %cst_115 {dimension_numbers = #tpu.dot_dimension_numbers<[2], [1], [1], [2], [0, 0, 0, 1, 1, 2], [0], [0]>} : vector<2x8x8xf32>, vector<2x8x8xf32>, vector<2x8x8xf32> -> vector<2x8x8xf32>
    "tpu.trace_stop"() : () -> ()
    %308 = vector.shape_cast %307 : vector<2x8x8xf32> to vector<16x8xf32>
    %309 = vector.extract_strided_slice %228 {offsets = [24, 0], sizes = [8, 32], strides = [1, 1]} : vector<32x32xf32> to vector<8x32xf32>
    %cst_116 = arith.constant dense<0.000000e+00> : vector<16x32xf32>
    %310 = tpu.matmul %308, %309, %cst_116 {dimension_numbers = #tpu.dot_dimension_numbers<[1], [0], [0], [1], [0, 0, 1, 1], [], []>} : vector<16x8xf32>, vector<8x32xf32>, vector<16x32xf32> -> vector<16x32xf32>
    %311 = arith.addf %290, %310 : vector<16x32xf32>
    %c1_117 = arith.constant 1 : index
    %c0_118 = arith.constant 0 : index
    %c0_119 = arith.constant 0 : index
    %312 = vector.load %arg8[%c1_117, %c0_118, %c0_119] : memref<3x1x32xf32, #tpu.memory_space<vmem>>, vector<1x1x32xf32>
    %313 = vector.shape_cast %312 : vector<1x1x32xf32> to vector<1x32xf32>
    %314 = vector.broadcast %313 : vector<1x32xf32> to vector<16x32xf32>
    %315 = arith.addf %311, %314 : vector<16x32xf32>
    %316 = arith.addf %315, %211 : vector<16x32xf32>
    %c1_120 = arith.constant 1 : index
    %c0_121 = arith.constant 0 : index
    %c0_122 = arith.constant 0 : index
    %317 = vector.load %arg9[%c1_120, %c0_121, %c0_122] : memref<3x1x32xf32, #tpu.memory_space<vmem>>, vector<1x1x32xf32>
    %318 = vector.shape_cast %317 : vector<1x1x32xf32> to vector<1x32xf32>
    %c1_123 = arith.constant 1 : index
    %c0_124 = arith.constant 0 : index
    %c0_125 = arith.constant 0 : index
    %319 = vector.load %arg10[%c1_123, %c0_124, %c0_125] : memref<3x1x32xf32, #tpu.memory_space<vmem>>, vector<1x1x32xf32>
    %320 = vector.shape_cast %319 : vector<1x1x32xf32> to vector<1x32xf32>
    %cst_126 = arith.constant dense<0.000000e+00> : vector<16xf32>
    %321 = vector.multi_reduction <add>, %316, %cst_126 [1] : vector<16x32xf32> to vector<16xf32>
    %322 = vector.shape_cast %321 : vector<16xf32> to vector<16x1xf32>
    %cst_127 = arith.constant 3.200000e+01 : f32
    %323 = vector.broadcast %cst_127 : f32 to vector<16x1xf32>
    %324 = arith.divf %322, %323 : vector<16x1xf32>
    %325 = vector.broadcast %324 : vector<16x1xf32> to vector<16x32xf32>
    %326 = arith.subf %316, %325 : vector<16x32xf32>
    %327 = arith.mulf %326, %326 : vector<16x32xf32>
    %cst_128 = arith.constant dense<0.000000e+00> : vector<16xf32>
    %328 = vector.multi_reduction <add>, %327, %cst_128 [1] : vector<16x32xf32> to vector<16xf32>
    %329 = vector.shape_cast %328 : vector<16xf32> to vector<16x1xf32>
    %cst_129 = arith.constant 3.200000e+01 : f32
    %330 = vector.broadcast %cst_129 : f32 to vector<16x1xf32>
    %331 = arith.divf %329, %330 : vector<16x1xf32>
    %332 = vector.broadcast %324 : vector<16x1xf32> to vector<16x32xf32>
    %333 = arith.subf %316, %332 : vector<16x32xf32>
    %cst_130 = arith.constant 9.99999996E-13 : f32
    %334 = vector.broadcast %cst_130 : f32 to vector<16x1xf32>
    %335 = arith.addf %331, %334 : vector<16x1xf32>
    %336 = math.rsqrt %335 : vector<16x1xf32>
    %337 = vector.broadcast %336 : vector<16x1xf32> to vector<16x32xf32>
    %338 = arith.mulf %333, %337 : vector<16x32xf32>
    %339 = vector.broadcast %318 : vector<1x32xf32> to vector<16x32xf32>
    %340 = arith.mulf %338, %339 : vector<16x32xf32>
    %341 = vector.broadcast %320 : vector<1x32xf32> to vector<16x32xf32>
    %342 = arith.addf %340, %341 : vector<16x32xf32>
    %c1_131 = arith.constant 1 : index
    %c0_132 = arith.constant 0 : index
    %c0_133 = arith.constant 0 : index
    %343 = vector.load %arg11[%c1_131, %c0_132, %c0_133] : memref<3x32x64xf32, #tpu.memory_space<vmem>>, vector<1x32x64xf32>
    %344 = vector.shape_cast %343 : vector<1x32x64xf32> to vector<32x64xf32>
    %cst_134 = arith.constant dense<0.000000e+00> : vector<16x64xf32>
    %345 = tpu.matmul %342, %344, %cst_134 {dimension_numbers = #tpu.dot_dimension_numbers<[1], [0], [0], [1], [0, 0, 1, 1], [], []>} : vector<16x32xf32>, vector<32x64xf32>, vector<16x64xf32> -> vector<16x64xf32>
    %c1_135 = arith.constant 1 : index
    %c0_136 = arith.constant 0 : index
    %c0_137 = arith.constant 0 : index
    %346 = vector.load %arg12[%c1_135, %c0_136, %c0_137] : memref<3x1x64xf32, #tpu.memory_space<vmem>>, vector<1x1x64xf32>
    %347 = vector.shape_cast %346 : vector<1x1x64xf32> to vector<1x64xf32>
    %348 = vector.broadcast %347 : vector<1x64xf32> to vector<16x64xf32>
    %349 = arith.addf %345, %348 : vector<16x64xf32>
    %cst_138 = arith.constant 5.000000e-01 : f32
    %350 = vector.broadcast %cst_138 : f32 to vector<16x64xf32>
    %351 = arith.mulf %350, %349 : vector<16x64xf32>
    %cst_139 = arith.constant 4.471500e-02 : f32
    %352 = vector.broadcast %cst_139 : f32 to vector<16x64xf32>
    %353 = arith.mulf %352, %349 : vector<16x64xf32>
    %354 = arith.mulf %353, %349 : vector<16x64xf32>
    %355 = arith.mulf %354, %349 : vector<16x64xf32>
    %356 = arith.addf %349, %355 : vector<16x64xf32>
    %cst_140 = arith.constant 0.797884583 : f32
    %357 = vector.broadcast %cst_140 : f32 to vector<16x64xf32>
    %358 = arith.mulf %357, %356 : vector<16x64xf32>
    %359 = math.tanh %358 : vector<16x64xf32>
    %cst_141 = arith.constant 1.000000e+00 : f32
    %360 = vector.broadcast %cst_141 : f32 to vector<16x64xf32>
    %361 = arith.addf %360, %359 : vector<16x64xf32>
    %362 = arith.mulf %351, %361 : vector<16x64xf32>
    %c1_142 = arith.constant 1 : index
    %c0_143 = arith.constant 0 : index
    %c0_144 = arith.constant 0 : index
    %363 = vector.load %arg13[%c1_142, %c0_143, %c0_144] : memref<3x64x32xf32, #tpu.memory_space<vmem>>, vector<1x64x32xf32>
    %364 = vector.shape_cast %363 : vector<1x64x32xf32> to vector<64x32xf32>
    %cst_145 = arith.constant dense<0.000000e+00> : vector<16x32xf32>
    %365 = tpu.matmul %362, %364, %cst_145 {dimension_numbers = #tpu.dot_dimension_numbers<[1], [0], [0], [1], [0, 0, 1, 1], [], []>} : vector<16x64xf32>, vector<64x32xf32>, vector<16x32xf32> -> vector<16x32xf32>
    %c1_146 = arith.constant 1 : index
    %c0_147 = arith.constant 0 : index
    %c0_148 = arith.constant 0 : index
    %366 = vector.load %arg14[%c1_146, %c0_147, %c0_148] : memref<3x1x32xf32, #tpu.memory_space<vmem>>, vector<1x1x32xf32>
    %367 = vector.shape_cast %366 : vector<1x1x32xf32> to vector<1x32xf32>
    %368 = vector.broadcast %367 : vector<1x32xf32> to vector<16x32xf32>
    %369 = arith.addf %365, %368 : vector<16x32xf32>
    %370 = arith.addf %369, %342 : vector<16x32xf32>
    %c1_149 = arith.constant 1 : index
    %c0_150 = arith.constant 0 : index
    %c0_151 = arith.constant 0 : index
    %371 = vector.load %arg15[%c1_149, %c0_150, %c0_151] : memref<3x1x32xf32, #tpu.memory_space<vmem>>, vector<1x1x32xf32>
    %372 = vector.shape_cast %371 : vector<1x1x32xf32> to vector<1x32xf32>
    %c1_152 = arith.constant 1 : index
    %c0_153 = arith.constant 0 : index
    %c0_154 = arith.constant 0 : index
    %373 = vector.load %arg16[%c1_152, %c0_153, %c0_154] : memref<3x1x32xf32, #tpu.memory_space<vmem>>, vector<1x1x32xf32>
    %374 = vector.shape_cast %373 : vector<1x1x32xf32> to vector<1x32xf32>
    %cst_155 = arith.constant dense<0.000000e+00> : vector<16xf32>
    %375 = vector.multi_reduction <add>, %370, %cst_155 [1] : vector<16x32xf32> to vector<16xf32>
    %376 = vector.shape_cast %375 : vector<16xf32> to vector<16x1xf32>
    %cst_156 = arith.constant 3.200000e+01 : f32
    %377 = vector.broadcast %cst_156 : f32 to vector<16x1xf32>
    %378 = arith.divf %376, %377 : vector<16x1xf32>
    %379 = vector.broadcast %378 : vector<16x1xf32> to vector<16x32xf32>
    %380 = arith.subf %370, %379 : vector<16x32xf32>
    %381 = arith.mulf %380, %380 : vector<16x32xf32>
    %cst_157 = arith.constant dense<0.000000e+00> : vector<16xf32>
    %382 = vector.multi_reduction <add>, %381, %cst_157 [1] : vector<16x32xf32> to vector<16xf32>
    %383 = vector.shape_cast %382 : vector<16xf32> to vector<16x1xf32>
    %cst_158 = arith.constant 3.200000e+01 : f32
    %384 = vector.broadcast %cst_158 : f32 to vector<16x1xf32>
    %385 = arith.divf %383, %384 : vector<16x1xf32>
    %386 = vector.broadcast %378 : vector<16x1xf32> to vector<16x32xf32>
    %387 = arith.subf %370, %386 : vector<16x32xf32>
    %cst_159 = arith.constant 9.99999996E-13 : f32
    %388 = vector.broadcast %cst_159 : f32 to vector<16x1xf32>
    %389 = arith.addf %385, %388 : vector<16x1xf32>
    %390 = math.rsqrt %389 : vector<16x1xf32>
    %391 = vector.broadcast %390 : vector<16x1xf32> to vector<16x32xf32>
    %392 = arith.mulf %387, %391 : vector<16x32xf32>
    %393 = vector.broadcast %372 : vector<1x32xf32> to vector<16x32xf32>
    %394 = arith.mulf %392, %393 : vector<16x32xf32>
    %395 = vector.broadcast %374 : vector<1x32xf32> to vector<16x32xf32>
    %396 = arith.addf %394, %395 : vector<16x32xf32>
    %c2 = arith.constant 2 : index
    %c0_160 = arith.constant 0 : index
    %c0_161 = arith.constant 0 : index
    %397 = vector.load %arg5[%c2, %c0_160, %c0_161] : memref<3x32x96xf32, #tpu.memory_space<vmem>>, vector<1x32x96xf32>
    %398 = vector.shape_cast %397 : vector<1x32x96xf32> to vector<32x96xf32>
    %cst_162 = arith.constant dense<0.000000e+00> : vector<16x96xf32>
    %399 = tpu.matmul %396, %398, %cst_162 {dimension_numbers = #tpu.dot_dimension_numbers<[1], [0], [0], [1], [0, 0, 1, 1], [], []>} : vector<16x32xf32>, vector<32x96xf32>, vector<16x96xf32> -> vector<16x96xf32>
    %c2_163 = arith.constant 2 : index
    %c0_164 = arith.constant 0 : index
    %c0_165 = arith.constant 0 : index
    %400 = vector.load %arg6[%c2_163, %c0_164, %c0_165] : memref<3x1x96xf32, #tpu.memory_space<vmem>>, vector<1x1x96xf32>
    %401 = vector.shape_cast %400 : vector<1x1x96xf32> to vector<1x96xf32>
    %402 = vector.broadcast %401 : vector<1x96xf32> to vector<16x96xf32>
    %403 = arith.addf %399, %402 : vector<16x96xf32>
    %404 = vector.extract_strided_slice %403 {offsets = [0, 0], sizes = [16, 32], strides = [1, 1]} : vector<16x96xf32> to vector<16x32xf32>
    %cst_166 = arith.constant 0.353553385 : f32
    %405 = vector.broadcast %cst_166 : f32 to vector<16x32xf32>
    %406 = arith.mulf %404, %405 : vector<16x32xf32>
    %407 = vector.extract_strided_slice %403 {offsets = [0, 32], sizes = [16, 32], strides = [1, 1]} : vector<16x96xf32> to vector<16x32xf32>
    %408 = vector.extract_strided_slice %403 {offsets = [0, 64], sizes = [16, 32], strides = [1, 1]} : vector<16x96xf32> to vector<16x32xf32>
    %409 = vector.shape_cast %406 : vector<16x32xf32> to vector<2x8x32xf32>
    %410 = vector.shape_cast %407 : vector<16x32xf32> to vector<2x8x32xf32>
    %411 = vector.shape_cast %408 : vector<16x32xf32> to vector<2x8x32xf32>
    %c2_167 = arith.constant 2 : index
    %c0_168 = arith.constant 0 : index
    %c0_169 = arith.constant 0 : index
    %412 = vector.load %arg7[%c2_167, %c0_168, %c0_169] : memref<3x32x32xf32, #tpu.memory_space<vmem>>, vector<1x32x32xf32>
    %413 = vector.shape_cast %412 : vector<1x32x32xf32> to vector<32x32xf32>
    %414 = vector.extract_strided_slice %409 {offsets = [0, 0, 0], sizes = [2, 8, 8], strides = [1, 1, 1]} : vector<2x8x32xf32> to vector<2x8x8xf32>
    %415 = vector.extract_strided_slice %410 {offsets = [0, 0, 0], sizes = [2, 8, 8], strides = [1, 1, 1]} : vector<2x8x32xf32> to vector<2x8x8xf32>
    "tpu.trace_start"() <{level = 10 : i32, message = "bqd,bkd->bqk"}> : () -> ()
    %cst_170 = arith.constant dense<0.000000e+00> : vector<2x8x8xf32>
    %416 = tpu.matmul %414, %415, %cst_170 {dimension_numbers = #tpu.dot_dimension_numbers<[2], [2], [1], [1], [0, 0, 0, 1, 1, 1], [0], [0]>} : vector<2x8x8xf32>, vector<2x8x8xf32>, vector<2x8x8xf32> -> vector<2x8x8xf32>
    "tpu.trace_stop"() : () -> ()
    %417 = vector.broadcast %26 : vector<2x1x8xf32> to vector<2x8x8xf32>
    %418 = arith.addf %416, %417 : vector<2x8x8xf32>
    %cst_171 = arith.constant dense<0xFF800000> : vector<2x8xf32>
    %419 = vector.multi_reduction <maximumf>, %418, %cst_171 [2] : vector<2x8x8xf32> to vector<2x8xf32>
    %420 = vector.shape_cast %419 : vector<2x8xf32> to vector<2x8x1xf32>
    %421 = vector.broadcast %420 : vector<2x8x1xf32> to vector<2x8x8xf32>
    %422 = arith.subf %418, %421 : vector<2x8x8xf32>
    %423 = math.exp %422 : vector<2x8x8xf32>
    %cst_172 = arith.constant dense<0.000000e+00> : vector<2x8xf32>
    %424 = vector.multi_reduction <add>, %423, %cst_172 [2] : vector<2x8x8xf32> to vector<2x8xf32>
    %425 = vector.shape_cast %424 : vector<2x8xf32> to vector<2x8x1xf32>
    %426 = tpu.reciprocal %425 {approx = true} : vector<2x8x1xf32> -> vector<2x8x1xf32>
    %427 = vector.broadcast %426 : vector<2x8x1xf32> to vector<2x8x8xf32>
    %428 = arith.mulf %423, %427 : vector<2x8x8xf32>
    %429 = vector.extract_strided_slice %411 {offsets = [0, 0, 0], sizes = [2, 8, 8], strides = [1, 1, 1]} : vector<2x8x32xf32> to vector<2x8x8xf32>
    "tpu.trace_start"() <{level = 10 : i32, message = "bqk,bkd->bqd"}> : () -> ()
    %cst_173 = arith.constant dense<0.000000e+00> : vector<2x8x8xf32>
    %430 = tpu.matmul %428, %429, %cst_173 {dimension_numbers = #tpu.dot_dimension_numbers<[2], [1], [1], [2], [0, 0, 0, 1, 1, 2], [0], [0]>} : vector<2x8x8xf32>, vector<2x8x8xf32>, vector<2x8x8xf32> -> vector<2x8x8xf32>
    "tpu.trace_stop"() : () -> ()
    %431 = vector.shape_cast %430 : vector<2x8x8xf32> to vector<16x8xf32>
    %432 = vector.extract_strided_slice %413 {offsets = [0, 0], sizes = [8, 32], strides = [1, 1]} : vector<32x32xf32> to vector<8x32xf32>
    %cst_174 = arith.constant dense<0.000000e+00> : vector<16x32xf32>
    %433 = tpu.matmul %431, %432, %cst_174 {dimension_numbers = #tpu.dot_dimension_numbers<[1], [0], [0], [1], [0, 0, 1, 1], [], []>} : vector<16x8xf32>, vector<8x32xf32>, vector<16x32xf32> -> vector<16x32xf32>
    %434 = vector.extract_strided_slice %409 {offsets = [0, 0, 8], sizes = [2, 8, 8], strides = [1, 1, 1]} : vector<2x8x32xf32> to vector<2x8x8xf32>
    %435 = vector.extract_strided_slice %410 {offsets = [0, 0, 8], sizes = [2, 8, 8], strides = [1, 1, 1]} : vector<2x8x32xf32> to vector<2x8x8xf32>
    "tpu.trace_start"() <{level = 10 : i32, message = "bqd,bkd->bqk"}> : () -> ()
    %cst_175 = arith.constant dense<0.000000e+00> : vector<2x8x8xf32>
    %436 = tpu.matmul %434, %435, %cst_175 {dimension_numbers = #tpu.dot_dimension_numbers<[2], [2], [1], [1], [0, 0, 0, 1, 1, 1], [0], [0]>} : vector<2x8x8xf32>, vector<2x8x8xf32>, vector<2x8x8xf32> -> vector<2x8x8xf32>
    "tpu.trace_stop"() : () -> ()
    %437 = vector.broadcast %26 : vector<2x1x8xf32> to vector<2x8x8xf32>
    %438 = arith.addf %436, %437 : vector<2x8x8xf32>
    %cst_176 = arith.constant dense<0xFF800000> : vector<2x8xf32>
    %439 = vector.multi_reduction <maximumf>, %438, %cst_176 [2] : vector<2x8x8xf32> to vector<2x8xf32>
    %440 = vector.shape_cast %439 : vector<2x8xf32> to vector<2x8x1xf32>
    %441 = vector.broadcast %440 : vector<2x8x1xf32> to vector<2x8x8xf32>
    %442 = arith.subf %438, %441 : vector<2x8x8xf32>
    %443 = math.exp %442 : vector<2x8x8xf32>
    %cst_177 = arith.constant dense<0.000000e+00> : vector<2x8xf32>
    %444 = vector.multi_reduction <add>, %443, %cst_177 [2] : vector<2x8x8xf32> to vector<2x8xf32>
    %445 = vector.shape_cast %444 : vector<2x8xf32> to vector<2x8x1xf32>
    %446 = tpu.reciprocal %445 {approx = true} : vector<2x8x1xf32> -> vector<2x8x1xf32>
    %447 = vector.broadcast %446 : vector<2x8x1xf32> to vector<2x8x8xf32>
    %448 = arith.mulf %443, %447 : vector<2x8x8xf32>
    %449 = vector.extract_strided_slice %411 {offsets = [0, 0, 8], sizes = [2, 8, 8], strides = [1, 1, 1]} : vector<2x8x32xf32> to vector<2x8x8xf32>
    "tpu.trace_start"() <{level = 10 : i32, message = "bqk,bkd->bqd"}> : () -> ()
    %cst_178 = arith.constant dense<0.000000e+00> : vector<2x8x8xf32>
    %450 = tpu.matmul %448, %449, %cst_178 {dimension_numbers = #tpu.dot_dimension_numbers<[2], [1], [1], [2], [0, 0, 0, 1, 1, 2], [0], [0]>} : vector<2x8x8xf32>, vector<2x8x8xf32>, vector<2x8x8xf32> -> vector<2x8x8xf32>
    "tpu.trace_stop"() : () -> ()
    %451 = vector.shape_cast %450 : vector<2x8x8xf32> to vector<16x8xf32>
    %452 = vector.extract_strided_slice %413 {offsets = [8, 0], sizes = [8, 32], strides = [1, 1]} : vector<32x32xf32> to vector<8x32xf32>
    %cst_179 = arith.constant dense<0.000000e+00> : vector<16x32xf32>
    %453 = tpu.matmul %451, %452, %cst_179 {dimension_numbers = #tpu.dot_dimension_numbers<[1], [0], [0], [1], [0, 0, 1, 1], [], []>} : vector<16x8xf32>, vector<8x32xf32>, vector<16x32xf32> -> vector<16x32xf32>
    %454 = arith.addf %433, %453 : vector<16x32xf32>
    %455 = vector.extract_strided_slice %409 {offsets = [0, 0, 16], sizes = [2, 8, 8], strides = [1, 1, 1]} : vector<2x8x32xf32> to vector<2x8x8xf32>
    %456 = vector.extract_strided_slice %410 {offsets = [0, 0, 16], sizes = [2, 8, 8], strides = [1, 1, 1]} : vector<2x8x32xf32> to vector<2x8x8xf32>
    "tpu.trace_start"() <{level = 10 : i32, message = "bqd,bkd->bqk"}> : () -> ()
    %cst_180 = arith.constant dense<0.000000e+00> : vector<2x8x8xf32>
    %457 = tpu.matmul %455, %456, %cst_180 {dimension_numbers = #tpu.dot_dimension_numbers<[2], [2], [1], [1], [0, 0, 0, 1, 1, 1], [0], [0]>} : vector<2x8x8xf32>, vector<2x8x8xf32>, vector<2x8x8xf32> -> vector<2x8x8xf32>
    "tpu.trace_stop"() : () -> ()
    %458 = vector.broadcast %26 : vector<2x1x8xf32> to vector<2x8x8xf32>
    %459 = arith.addf %457, %458 : vector<2x8x8xf32>
    %cst_181 = arith.constant dense<0xFF800000> : vector<2x8xf32>
    %460 = vector.multi_reduction <maximumf>, %459, %cst_181 [2] : vector<2x8x8xf32> to vector<2x8xf32>
    %461 = vector.shape_cast %460 : vector<2x8xf32> to vector<2x8x1xf32>
    %462 = vector.broadcast %461 : vector<2x8x1xf32> to vector<2x8x8xf32>
    %463 = arith.subf %459, %462 : vector<2x8x8xf32>
    %464 = math.exp %463 : vector<2x8x8xf32>
    %cst_182 = arith.constant dense<0.000000e+00> : vector<2x8xf32>
    %465 = vector.multi_reduction <add>, %464, %cst_182 [2] : vector<2x8x8xf32> to vector<2x8xf32>
    %466 = vector.shape_cast %465 : vector<2x8xf32> to vector<2x8x1xf32>
    %467 = tpu.reciprocal %466 {approx = true} : vector<2x8x1xf32> -> vector<2x8x1xf32>
    %468 = vector.broadcast %467 : vector<2x8x1xf32> to vector<2x8x8xf32>
    %469 = arith.mulf %464, %468 : vector<2x8x8xf32>
    %470 = vector.extract_strided_slice %411 {offsets = [0, 0, 16], sizes = [2, 8, 8], strides = [1, 1, 1]} : vector<2x8x32xf32> to vector<2x8x8xf32>
    "tpu.trace_start"() <{level = 10 : i32, message = "bqk,bkd->bqd"}> : () -> ()
    %cst_183 = arith.constant dense<0.000000e+00> : vector<2x8x8xf32>
    %471 = tpu.matmul %469, %470, %cst_183 {dimension_numbers = #tpu.dot_dimension_numbers<[2], [1], [1], [2], [0, 0, 0, 1, 1, 2], [0], [0]>} : vector<2x8x8xf32>, vector<2x8x8xf32>, vector<2x8x8xf32> -> vector<2x8x8xf32>
    "tpu.trace_stop"() : () -> ()
    %472 = vector.shape_cast %471 : vector<2x8x8xf32> to vector<16x8xf32>
    %473 = vector.extract_strided_slice %413 {offsets = [16, 0], sizes = [8, 32], strides = [1, 1]} : vector<32x32xf32> to vector<8x32xf32>
    %cst_184 = arith.constant dense<0.000000e+00> : vector<16x32xf32>
    %474 = tpu.matmul %472, %473, %cst_184 {dimension_numbers = #tpu.dot_dimension_numbers<[1], [0], [0], [1], [0, 0, 1, 1], [], []>} : vector<16x8xf32>, vector<8x32xf32>, vector<16x32xf32> -> vector<16x32xf32>
    %475 = arith.addf %454, %474 : vector<16x32xf32>
    %476 = vector.extract_strided_slice %409 {offsets = [0, 0, 24], sizes = [2, 8, 8], strides = [1, 1, 1]} : vector<2x8x32xf32> to vector<2x8x8xf32>
    %477 = vector.extract_strided_slice %410 {offsets = [0, 0, 24], sizes = [2, 8, 8], strides = [1, 1, 1]} : vector<2x8x32xf32> to vector<2x8x8xf32>
    "tpu.trace_start"() <{level = 10 : i32, message = "bqd,bkd->bqk"}> : () -> ()
    %cst_185 = arith.constant dense<0.000000e+00> : vector<2x8x8xf32>
    %478 = tpu.matmul %476, %477, %cst_185 {dimension_numbers = #tpu.dot_dimension_numbers<[2], [2], [1], [1], [0, 0, 0, 1, 1, 1], [0], [0]>} : vector<2x8x8xf32>, vector<2x8x8xf32>, vector<2x8x8xf32> -> vector<2x8x8xf32>
    "tpu.trace_stop"() : () -> ()
    %479 = vector.broadcast %26 : vector<2x1x8xf32> to vector<2x8x8xf32>
    %480 = arith.addf %478, %479 : vector<2x8x8xf32>
    %cst_186 = arith.constant dense<0xFF800000> : vector<2x8xf32>
    %481 = vector.multi_reduction <maximumf>, %480, %cst_186 [2] : vector<2x8x8xf32> to vector<2x8xf32>
    %482 = vector.shape_cast %481 : vector<2x8xf32> to vector<2x8x1xf32>
    %483 = vector.broadcast %482 : vector<2x8x1xf32> to vector<2x8x8xf32>
    %484 = arith.subf %480, %483 : vector<2x8x8xf32>
    %485 = math.exp %484 : vector<2x8x8xf32>
    %cst_187 = arith.constant dense<0.000000e+00> : vector<2x8xf32>
    %486 = vector.multi_reduction <add>, %485, %cst_187 [2] : vector<2x8x8xf32> to vector<2x8xf32>
    %487 = vector.shape_cast %486 : vector<2x8xf32> to vector<2x8x1xf32>
    %488 = tpu.reciprocal %487 {approx = true} : vector<2x8x1xf32> -> vector<2x8x1xf32>
    %489 = vector.broadcast %488 : vector<2x8x1xf32> to vector<2x8x8xf32>
    %490 = arith.mulf %485, %489 : vector<2x8x8xf32>
    %491 = vector.extract_strided_slice %411 {offsets = [0, 0, 24], sizes = [2, 8, 8], strides = [1, 1, 1]} : vector<2x8x32xf32> to vector<2x8x8xf32>
    "tpu.trace_start"() <{level = 10 : i32, message = "bqk,bkd->bqd"}> : () -> ()
    %cst_188 = arith.constant dense<0.000000e+00> : vector<2x8x8xf32>
    %492 = tpu.matmul %490, %491, %cst_188 {dimension_numbers = #tpu.dot_dimension_numbers<[2], [1], [1], [2], [0, 0, 0, 1, 1, 2], [0], [0]>} : vector<2x8x8xf32>, vector<2x8x8xf32>, vector<2x8x8xf32> -> vector<2x8x8xf32>
    "tpu.trace_stop"() : () -> ()
    %493 = vector.shape_cast %492 : vector<2x8x8xf32> to vector<16x8xf32>
    %494 = vector.extract_strided_slice %413 {offsets = [24, 0], sizes = [8, 32], strides = [1, 1]} : vector<32x32xf32> to vector<8x32xf32>
    %cst_189 = arith.constant dense<0.000000e+00> : vector<16x32xf32>
    %495 = tpu.matmul %493, %494, %cst_189 {dimension_numbers = #tpu.dot_dimension_numbers<[1], [0], [0], [1], [0, 0, 1, 1], [], []>} : vector<16x8xf32>, vector<8x32xf32>, vector<16x32xf32> -> vector<16x32xf32>
    %496 = arith.addf %475, %495 : vector<16x32xf32>
    %c2_190 = arith.constant 2 : index
    %c0_191 = arith.constant 0 : index
    %c0_192 = arith.constant 0 : index
    %497 = vector.load %arg8[%c2_190, %c0_191, %c0_192] : memref<3x1x32xf32, #tpu.memory_space<vmem>>, vector<1x1x32xf32>
    %498 = vector.shape_cast %497 : vector<1x1x32xf32> to vector<1x32xf32>
    %499 = vector.broadcast %498 : vector<1x32xf32> to vector<16x32xf32>
    %500 = arith.addf %496, %499 : vector<16x32xf32>
    %501 = arith.addf %500, %396 : vector<16x32xf32>
    %c2_193 = arith.constant 2 : index
    %c0_194 = arith.constant 0 : index
    %c0_195 = arith.constant 0 : index
    %502 = vector.load %arg9[%c2_193, %c0_194, %c0_195] : memref<3x1x32xf32, #tpu.memory_space<vmem>>, vector<1x1x32xf32>
    %503 = vector.shape_cast %502 : vector<1x1x32xf32> to vector<1x32xf32>
    %c2_196 = arith.constant 2 : index
    %c0_197 = arith.constant 0 : index
    %c0_198 = arith.constant 0 : index
    %504 = vector.load %arg10[%c2_196, %c0_197, %c0_198] : memref<3x1x32xf32, #tpu.memory_space<vmem>>, vector<1x1x32xf32>
    %505 = vector.shape_cast %504 : vector<1x1x32xf32> to vector<1x32xf32>
    %cst_199 = arith.constant dense<0.000000e+00> : vector<16xf32>
    %506 = vector.multi_reduction <add>, %501, %cst_199 [1] : vector<16x32xf32> to vector<16xf32>
    %507 = vector.shape_cast %506 : vector<16xf32> to vector<16x1xf32>
    %cst_200 = arith.constant 3.200000e+01 : f32
    %508 = vector.broadcast %cst_200 : f32 to vector<16x1xf32>
    %509 = arith.divf %507, %508 : vector<16x1xf32>
    %510 = vector.broadcast %509 : vector<16x1xf32> to vector<16x32xf32>
    %511 = arith.subf %501, %510 : vector<16x32xf32>
    %512 = arith.mulf %511, %511 : vector<16x32xf32>
    %cst_201 = arith.constant dense<0.000000e+00> : vector<16xf32>
    %513 = vector.multi_reduction <add>, %512, %cst_201 [1] : vector<16x32xf32> to vector<16xf32>
    %514 = vector.shape_cast %513 : vector<16xf32> to vector<16x1xf32>
    %cst_202 = arith.constant 3.200000e+01 : f32
    %515 = vector.broadcast %cst_202 : f32 to vector<16x1xf32>
    %516 = arith.divf %514, %515 : vector<16x1xf32>
    %517 = vector.broadcast %509 : vector<16x1xf32> to vector<16x32xf32>
    %518 = arith.subf %501, %517 : vector<16x32xf32>
    %cst_203 = arith.constant 9.99999996E-13 : f32
    %519 = vector.broadcast %cst_203 : f32 to vector<16x1xf32>
    %520 = arith.addf %516, %519 : vector<16x1xf32>
    %521 = math.rsqrt %520 : vector<16x1xf32>
    %522 = vector.broadcast %521 : vector<16x1xf32> to vector<16x32xf32>
    %523 = arith.mulf %518, %522 : vector<16x32xf32>
    %524 = vector.broadcast %503 : vector<1x32xf32> to vector<16x32xf32>
    %525 = arith.mulf %523, %524 : vector<16x32xf32>
    %526 = vector.broadcast %505 : vector<1x32xf32> to vector<16x32xf32>
    %527 = arith.addf %525, %526 : vector<16x32xf32>
    %c2_204 = arith.constant 2 : index
    %c0_205 = arith.constant 0 : index
    %c0_206 = arith.constant 0 : index
    %528 = vector.load %arg11[%c2_204, %c0_205, %c0_206] : memref<3x32x64xf32, #tpu.memory_space<vmem>>, vector<1x32x64xf32>
    %529 = vector.shape_cast %528 : vector<1x32x64xf32> to vector<32x64xf32>
    %cst_207 = arith.constant dense<0.000000e+00> : vector<16x64xf32>
    %530 = tpu.matmul %527, %529, %cst_207 {dimension_numbers = #tpu.dot_dimension_numbers<[1], [0], [0], [1], [0, 0, 1, 1], [], []>} : vector<16x32xf32>, vector<32x64xf32>, vector<16x64xf32> -> vector<16x64xf32>
    %c2_208 = arith.constant 2 : index
    %c0_209 = arith.constant 0 : index
    %c0_210 = arith.constant 0 : index
    %531 = vector.load %arg12[%c2_208, %c0_209, %c0_210] : memref<3x1x64xf32, #tpu.memory_space<vmem>>, vector<1x1x64xf32>
    %532 = vector.shape_cast %531 : vector<1x1x64xf32> to vector<1x64xf32>
    %533 = vector.broadcast %532 : vector<1x64xf32> to vector<16x64xf32>
    %534 = arith.addf %530, %533 : vector<16x64xf32>
    %cst_211 = arith.constant 5.000000e-01 : f32
    %535 = vector.broadcast %cst_211 : f32 to vector<16x64xf32>
    %536 = arith.mulf %535, %534 : vector<16x64xf32>
    %cst_212 = arith.constant 4.471500e-02 : f32
    %537 = vector.broadcast %cst_212 : f32 to vector<16x64xf32>
    %538 = arith.mulf %537, %534 : vector<16x64xf32>
    %539 = arith.mulf %538, %534 : vector<16x64xf32>
    %540 = arith.mulf %539, %534 : vector<16x64xf32>
    %541 = arith.addf %534, %540 : vector<16x64xf32>
    %cst_213 = arith.constant 0.797884583 : f32
    %542 = vector.broadcast %cst_213 : f32 to vector<16x64xf32>
    %543 = arith.mulf %542, %541 : vector<16x64xf32>
    %544 = math.tanh %543 : vector<16x64xf32>
    %cst_214 = arith.constant 1.000000e+00 : f32
    %545 = vector.broadcast %cst_214 : f32 to vector<16x64xf32>
    %546 = arith.addf %545, %544 : vector<16x64xf32>
    %547 = arith.mulf %536, %546 : vector<16x64xf32>
    %c2_215 = arith.constant 2 : index
    %c0_216 = arith.constant 0 : index
    %c0_217 = arith.constant 0 : index
    %548 = vector.load %arg13[%c2_215, %c0_216, %c0_217] : memref<3x64x32xf32, #tpu.memory_space<vmem>>, vector<1x64x32xf32>
    %549 = vector.shape_cast %548 : vector<1x64x32xf32> to vector<64x32xf32>
    %cst_218 = arith.constant dense<0.000000e+00> : vector<16x32xf32>
    %550 = tpu.matmul %547, %549, %cst_218 {dimension_numbers = #tpu.dot_dimension_numbers<[1], [0], [0], [1], [0, 0, 1, 1], [], []>} : vector<16x64xf32>, vector<64x32xf32>, vector<16x32xf32> -> vector<16x32xf32>
    %c2_219 = arith.constant 2 : index
    %c0_220 = arith.constant 0 : index
    %c0_221 = arith.constant 0 : index
    %551 = vector.load %arg14[%c2_219, %c0_220, %c0_221] : memref<3x1x32xf32, #tpu.memory_space<vmem>>, vector<1x1x32xf32>
    %552 = vector.shape_cast %551 : vector<1x1x32xf32> to vector<1x32xf32>
    %553 = vector.broadcast %552 : vector<1x32xf32> to vector<16x32xf32>
    %554 = arith.addf %550, %553 : vector<16x32xf32>
    %555 = arith.addf %554, %527 : vector<16x32xf32>
    %c2_222 = arith.constant 2 : index
    %c0_223 = arith.constant 0 : index
    %c0_224 = arith.constant 0 : index
    %556 = vector.load %arg15[%c2_222, %c0_223, %c0_224] : memref<3x1x32xf32, #tpu.memory_space<vmem>>, vector<1x1x32xf32>
    %557 = vector.shape_cast %556 : vector<1x1x32xf32> to vector<1x32xf32>
    %c2_225 = arith.constant 2 : index
    %c0_226 = arith.constant 0 : index
    %c0_227 = arith.constant 0 : index
    %558 = vector.load %arg16[%c2_225, %c0_226, %c0_227] : memref<3x1x32xf32, #tpu.memory_space<vmem>>, vector<1x1x32xf32>
    %559 = vector.shape_cast %558 : vector<1x1x32xf32> to vector<1x32xf32>
    %cst_228 = arith.constant dense<0.000000e+00> : vector<16xf32>
    %560 = vector.multi_reduction <add>, %555, %cst_228 [1] : vector<16x32xf32> to vector<16xf32>
    %561 = vector.shape_cast %560 : vector<16xf32> to vector<16x1xf32>
    %cst_229 = arith.constant 3.200000e+01 : f32
    %562 = vector.broadcast %cst_229 : f32 to vector<16x1xf32>
    %563 = arith.divf %561, %562 : vector<16x1xf32>
    %564 = vector.broadcast %563 : vector<16x1xf32> to vector<16x32xf32>
    %565 = arith.subf %555, %564 : vector<16x32xf32>
    %566 = arith.mulf %565, %565 : vector<16x32xf32>
    %cst_230 = arith.constant dense<0.000000e+00> : vector<16xf32>
    %567 = vector.multi_reduction <add>, %566, %cst_230 [1] : vector<16x32xf32> to vector<16xf32>
    %568 = vector.shape_cast %567 : vector<16xf32> to vector<16x1xf32>
    %cst_231 = arith.constant 3.200000e+01 : f32
    %569 = vector.broadcast %cst_231 : f32 to vector<16x1xf32>
    %570 = arith.divf %568, %569 : vector<16x1xf32>
    %571 = vector.broadcast %563 : vector<16x1xf32> to vector<16x32xf32>
    %572 = arith.subf %555, %571 : vector<16x32xf32>
    %cst_232 = arith.constant 9.99999996E-13 : f32
    %573 = vector.broadcast %cst_232 : f32 to vector<16x1xf32>
    %574 = arith.addf %570, %573 : vector<16x1xf32>
    %575 = math.rsqrt %574 : vector<16x1xf32>
    %576 = vector.broadcast %575 : vector<16x1xf32> to vector<16x32xf32>
    %577 = arith.mulf %572, %576 : vector<16x32xf32>
    %578 = vector.broadcast %557 : vector<1x32xf32> to vector<16x32xf32>
    %579 = arith.mulf %577, %578 : vector<16x32xf32>
    %580 = vector.broadcast %559 : vector<1x32xf32> to vector<16x32xf32>
    %581 = arith.addf %579, %580 : vector<16x32xf32>
    %582 = vector.shape_cast %581 : vector<16x32xf32> to vector<2x8x32xf32>
    %583 = vector.extract_strided_slice %582 {offsets = [0, 0, 0], sizes = [2, 1, 32], strides = [1, 1, 1]} : vector<2x8x32xf32> to vector<2x1x32xf32>
    %c0_233 = arith.constant 0 : index
    %c0_234 = arith.constant 0 : index
    %c0_235 = arith.constant 0 : index
    %584 = vector.load %arg17[%c0_233, %c0_234, %c0_235] : memref<2x1x32xf32, #tpu.memory_space<vmem>>, vector<2x1x32xf32>
    tpu.vector_store %arg17[%c0_233, %c0_234, %c0_235], %583 {strides = array<i32>} : memref<2x1x32xf32, #tpu.memory_space<vmem>>, vector<2x1x32xf32>,
    return
  }
  func.func @transform_0(%arg0: i32) -> (i32, i32, i32) {
    %c0_i32 = arith.constant 0 : i32
    %c0_i32_0 = arith.constant 0 : i32
    %c0_i32_1 = arith.constant 0 : i32
    return %arg0, %c0_i32, %c0_i32_0 : i32, i32, i32
  }
  func.func @transform_1(%arg0: i32) -> (i32, i32, i32) {
    %c0_i32 = arith.constant 0 : i32
    %c0_i32_0 = arith.constant 0 : i32
    %c0_i32_1 = arith.constant 0 : i32
    return %arg0, %c0_i32, %c0_i32_0 : i32, i32, i32
  }
  func.func @transform_2(%arg0: i32) -> (i32, i32) {
    %c0_i32 = arith.constant 0 : i32
    %c0_i32_0 = arith.constant 0 : i32
    %c0_i32_1 = arith.constant 0 : i32
    return %c0_i32, %c0_i32_0 : i32, i32
  }
  func.func @transform_3(%arg0: i32) -> (i32, i32) {
    %c0_i32 = arith.constant 0 : i32
    %c0_i32_0 = arith.constant 0 : i32
    %c0_i32_1 = arith.constant 0 : i32
    return %c0_i32, %c0_i32_0 : i32, i32
  }
  func.func @transform_4(%arg0: i32) -> (i32, i32, i32) {
    %c0_i32 = arith.constant 0 : i32
    %c0_i32_0 = arith.constant 0 : i32
    %c0_i32_1 = arith.constant 0 : i32
    %c0_i32_2 = arith.constant 0 : i32
    return %c0_i32, %c0_i32_0, %c0_i32_1 : i32, i32, i32
  }
  func.func @transform_5(%arg0: i32) -> (i32, i32, i32) {
    %c0_i32 = arith.constant 0 : i32
    %c0_i32_0 = arith.constant 0 : i32
    %c0_i32_1 = arith.constant 0 : i32
    %c0_i32_2 = arith.constant 0 : i32
    return %c0_i32, %c0_i32_0, %c0_i32_1 : i32, i32, i32
  }
  func.func @transform_6(%arg0: i32) -> (i32, i32, i32) {
    %c0_i32 = arith.constant 0 : i32
    %c0_i32_0 = arith.constant 0 : i32
    %c0_i32_1 = arith.constant 0 : i32
    %c0_i32_2 = arith.constant 0 : i32
    return %c0_i32, %c0_i32_0, %c0_i32_1 : i32, i32, i32
  }
  func.func @transform_7(%arg0: i32) -> (i32, i32, i32) {
    %c0_i32 = arith.constant 0 : i32
    %c0_i32_0 = arith.constant 0 : i32
    %c0_i32_1 = arith.constant 0 : i32
    %c0_i32_2 = arith.constant 0 : i32
    return %c0_i32, %c0_i32_0, %c0_i32_1 : i32, i32, i32
  }
  func.func @transform_8(%arg0: i32) -> (i32, i32, i32) {
    %c0_i32 = arith.constant 0 : i32
    %c0_i32_0 = arith.constant 0 : i32
    %c0_i32_1 = arith.constant 0 : i32
    %c0_i32_2 = arith.constant 0 : i32
    return %c0_i32, %c0_i32_0, %c0_i32_1 : i32, i32, i32
  }
  func.func @transform_9(%arg0: i32) -> (i32, i32, i32) {
    %c0_i32 = arith.constant 0 : i32
    %c0_i32_0 = arith.constant 0 : i32
    %c0_i32_1 = arith.constant 0 : i32
    %c0_i32_2 = arith.constant 0 : i32
    return %c0_i32, %c0_i32_0, %c0_i32_1 : i32, i32, i32
  }
  func.func @transform_10(%arg0: i32) -> (i32, i32, i32) {
    %c0_i32 = arith.constant 0 : i32
    %c0_i32_0 = arith.constant 0 : i32
    %c0_i32_1 = arith.constant 0 : i32
    %c0_i32_2 = arith.constant 0 : i32
    return %c0_i32, %c0_i32_0, %c0_i32_1 : i32, i32, i32
  }
  func.func @transform_11(%arg0: i32) -> (i32, i32, i32) {
    %c0_i32 = arith.constant 0 : i32
    %c0_i32_0 = arith.constant 0 : i32
    %c0_i32_1 = arith.constant 0 : i32
    %c0_i32_2 = arith.constant 0 : i32
    return %c0_i32, %c0_i32_0, %c0_i32_1 : i32, i32, i32
  }
  func.func @transform_12(%arg0: i32) -> (i32, i32, i32) {
    %c0_i32 = arith.constant 0 : i32
    %c0_i32_0 = arith.constant 0 : i32
    %c0_i32_1 = arith.constant 0 : i32
    %c0_i32_2 = arith.constant 0 : i32
    return %c0_i32, %c0_i32_0, %c0_i32_1 : i32, i32, i32
  }
  func.func @transform_13(%arg0: i32) -> (i32, i32, i32) {
    %c0_i32 = arith.constant 0 : i32
    %c0_i32_0 = arith.constant 0 : i32
    %c0_i32_1 = arith.constant 0 : i32
    %c0_i32_2 = arith.constant 0 : i32
    return %c0_i32, %c0_i32_0, %c0_i32_1 : i32, i32, i32
  }
  func.func @transform_14(%arg0: i32) -> (i32, i32, i32) {
    %c0_i32 = arith.constant 0 : i32
    %c0_i32_0 = arith.constant 0 : i32
    %c0_i32_1 = arith.constant 0 : i32
    %c0_i32_2 = arith.constant 0 : i32
    return %c0_i32, %c0_i32_0, %c0_i32_1 : i32, i32, i32
  }
  func.func @transform_15(%arg0: i32) -> (i32, i32, i32) {
    %c0_i32 = arith.constant 0 : i32
    %c0_i32_0 = arith.constant 0 : i32
    %c0_i32_1 = arith.constant 0 : i32
    %c0_i32_2 = arith.constant 0 : i32
    return %c0_i32, %c0_i32_0, %c0_i32_1 : i32, i32, i32
  }
  func.func @transform_16(%arg0: i32) -> (i32, i32, i32) {
    %c0_i32 = arith.constant 0 : i32
    %c0_i32_0 = arith.constant 0 : i32
    %c0_i32_1 = arith.constant 0 : i32
    return %arg0, %c0_i32, %c0_i32_0 : i32, i32, i32
  }
}

</mosaic_0001>

<bundles_post_ra>
// kernel: _bert_cls_impl.1
= control target key start
LH: loop header
LB: loop body
LE: loop exit
PB: predicated region body
PF: predicated region fallthrough
CT: control target
= control target key end

     0   :  { %s9132_s0 = inlined_call_operand.vmem [shape: f32[4,8,32], index: 0, kind: input, shape index: {}]   ;;  %s9133_s1 = inlined_call_operand.vmem [shape: f32[4,1,8], index: 1, kind: input, shape index: {}]   ;;  %s9134_s2 = inlined_call_operand.vmem [shape: f32[1,32], index: 2, kind: input, shape index: {}]   ;;  %s9135_s3 = inlined_call_operand.vmem [shape: f32[1,32], index: 3, kind: input, shape index: {}]   ;;  %s9136_s4 = inlined_call_operand.vmem [shape: f32[3,32,96], index: 4, kind: input, shape index: {}]   ;;  %s9137_s5 = inlined_call_operand.vmem [shape: f32[3,1,96], index: 5, kind: input, shape index: {}]   ;;  %s9138_s6 = inlined_call_operand.vmem [shape: f32[3,32,32], index: 6, kind: input, shape index: {}]   ;;  %s9139_s7 = inlined_call_operand.vmem [shape: f32[3,1,32], index: 7, kind: input, shape index: {}]   ;;  %s9140_s8 = inlined_call_operand.vmem [shape: f32[3,1,32], index: 8, kind: input, shape index: {}]   ;;  %s9141_s9 = inlined_call_operand.vmem [shape: f32[3,1,32], index: 9, kind: input, shape index: {}]   ;;  %s9142_s10 = inlined_call_operand.vmem [shape: f32[3,32,64], index: 10, kind: input, shape index: {}]   ;;  %s9143_s11 = inlined_call_operand.vmem [shape: f32[3,1,64], index: 11, kind: input, shape index: {}]   ;;  %s9144_s12 = inlined_call_operand.vmem [shape: f32[3,64,32], index: 12, kind: input, shape index: {}]   ;;  %s9145_s13 = inlined_call_operand.vmem [shape: f32[3,1,32], index: 13, kind: input, shape index: {}]   ;;  %s9146_s14 = inlined_call_operand.vmem [shape: f32[3,1,32], index: 14, kind: input, shape index: {}]   ;;  %s9147_s15 = inlined_call_operand.vmem [shape: f32[3,1,32], index: 15, kind: input, shape index: {}]   ;;  %s9148_s16 = inlined_call_operand.hbm [shape: f32[4,1,32], index: 16, kind: output, shape index: {}]  }
   0x1   :  { %9182 = sst [smem:[#allocation14_spill]] %s9132_s0 }
   0x2   :  { %9183 = sst [smem:[#allocation15_spill]] %s9133_s1 }
   0x3   :  { %9184 = sst [smem:[#allocation16_spill]] %s9134_s2 }
   0x4   :  { %9185 = sst [smem:[#allocation17_spill]] %s9135_s3 }
   0x5   :  { %9186 = sst [smem:[#allocation18_spill]] %s9139_s7 }
   0x6   :  { %9187 = sst [smem:[#allocation19_spill]] %s9140_s8 }
   0x7   :  { %9188 = sst [smem:[#allocation20_spill]] %s9141_s9 }
   0x8   :  { %9189 = sst [smem:[#allocation21_spill]] %s9148_s16 }
   0x9   :  { %21 = vsyncpa [#allocation3], 0 }
   0xa   :  { %23 = vsyncpa [#allocation3 + $0x1], 0  ;;  %s8183_s21 = smov 0   ;;  %s8185_s22 = smov 0  }
   0xb   :  { %s8187_s23 = smov 0   ;;  %s8189_s24 = smov 0  }
   0xc LB: > { %9190 = sst [smem:[#allocation5_spill]] %s8068_s21  ;;  %s8204_s25 = sadd.s32 4294967295, %s8080_s24   ;;  %s8080_s24 = sphi %s8189_s24, %s9229_s24   ;;  %s8076_s23 = sphi %s8187_s23, %s9232_s23   ;;  %s8072_s22 = sphi %s8185_s22, %s9231_s22   ;;  %s8068_s21 = sphi %s8183_s21, %s9230_s21  }
   0xd   : > { %9191 = sst [smem:[#allocation6_spill]] %s8072_s22  ;;  %s6877_s26 = sadd.s32 4294967294, %s8080_s24  }
   0xe   : > { %9192 = sst [smem:[#allocation7_spill]] %s8076_s23  ;;  %s8208_s27 = sadd.s32 1, %s8080_s24  }
   0xf   : > { %9193 = sst [smem:[#allocation8_spill]] %s8080_s24  ;;  %s382_s28 = sadd.s32 1, %s8076_s23 }
  0x10   : > { %9194 = sst [smem:[#allocation9_spill]] %s8204_s25  ;;  %s379_s29 = ssub.s32 %s8080_s24, %s8208_s27 }
  0x11   : > { %9195 = sst [smem:[#allocation10_spill]] %s8208_s27  ;;  %p392_p0 = scmp.ne.s32.totalorder %s8076_s23, %s8072_s22 }
  0x12   : > { %p380_p1 = scmp.eq.s32.totalorder %s379_s29, 0  ;;  %p393_p2 = scmp.eq.s32.totalorder %s8204_s25, 1 }
  0x13   : > { %p398_p3 = scmp.ne.s32.totalorder %s8072_s22, %s8068_s21  ;;  %p399_p4 = scmp.eq.s32.totalorder %s6877_s26, 1 }
  0x14   : > { %s8219_s30 = scalar_select %p380_p1, %s8076_s23, %s382_s28  }
  0x15   : > { %p8221_p5 = por %p393_p2, %p392_p0  ;;  %p8225_p6 = por %p399_p4, %p398_p3 }
  0x16   : > { %9196 = sst [smem:[#allocation11_spill]] %s8219_s30  ;;  %p6880_p7 = scmp.ge.s32.totalorder %s8080_s24, 1 }
  0x17   : > { %s9197_s0 = scalar_select %p8221_p5, 1, 0 }
  0x18   : > { %s9199_s17 = scalar_select %p8225_p6, 1, 0 }
  0x19   : > { %9198 = sst [smem:[#allocation12_spill]] %s9197_s0  ;;  %p476_p8 = scmp.lt.s32.totalorder %s8080_s24, 3 }
  0x1a   : > { %9200 = sst [smem:[#allocation13_spill]] %s9199_s17 }
  0x1b   : > { %p477_p9 = pnand %p6880_p7, %p476_p8 }
  0x1c   : > { %s6882_s18 = sshll.u32 (!%p477_p9), %s8204_s25, 1  ;;  %vm546_vm0 = vcmask (!%p477_p9), 261120   ;;  %s9201_s28 = sld [smem:[#allocation14_spill]] (!%p477_p9)  ;;  %v592_v14 = vld [vmem:[%s9136_s4] sm:$0xff] (!%p477_p9)  ;;  %v593_v15 = vld [vmem:[%s9136_s4 + $0x8] sm:$0xff] (!%p477_p9)  ;;  %v594_v16 = vld [vmem:[%s9136_s4 + $0x10] sm:$0xff] (!%p477_p9) }
  0x1d   : > { %480 = sbr.rel (%p477_p9) target bundleno = 12947 (0x3293), region = 84  ;;  %p531_p10 = scmp.lt.s32.totalorder (!%p477_p9), %s6882_s18, 3  ;;  %v7710_v17 = vpack.c.bf16 (!%p477_p9), %v593_v15, %v592_v14  ;;  %v595_v18 = vld [vmem:[%s9136_s4 + $0x18] sm:$0xff] (!%p477_p9)  ;;  %v8082_v36 = vmov (!%p477_p9), 0.0   ;;  %vm8083_vm1 = vmmov (!%p477_p9), 0   ;;  %vm705_vm2 = vcmask (!%p477_p9), 64512  }
  0x1e   : > { %v7714_v19 = vpack.c.bf16 (!%p477_p9), %v595_v18, %v594_v16  ;;  %s9202_s2 = sld [smem:[#allocation16_spill]] (!%p477_p9)  ;;  %s9203_s3 = sld [smem:[#allocation17_spill]] (!%p477_p9)  ;;  %7308 = vmatprep.subr.mxu0 (!%p477_p9), %v8082_v36  ;;  %7310 = vmatprep.mubr.msk.f32.mxu0 (!%p477_p9), %vm8083_vm1, %v8082_v36  ;;  %v6887_v37 = vld [vmem:[%s9137_s5] ss:$0 sm:$0xff] (!%p477_p9)  ;;  %vm2531_vm3 = vcmask (!%p477_p9), 523264   ;;  %vm6789_vm4 = vcmask (!%p477_p9), 253952  }
  0x1f   : > { %7711 = vmatprep.subr.bf16.mxu1 (!%p477_p9), %v7710_v17  ;;  %s9204_s1 = sld [smem:[#allocation15_spill]] (!%p477_p9)  ;;  %s9170_s23 = smov (!%p477_p9), 88  }
  0x20   : > { %7713 = vmatpush3.bf16.msra.mxu1 (!%p477_p9), %v7710_v17  ;;  %s9162_s27 = smov (!%p477_p9), 120   ;;  %s9154_s20 = smov (!%p477_p9), 64  }
  0x21   : > { %7715 = vmatprep.subr.bf16.mxu1 (!%p477_p9), %v7714_v19  ;;  %s9158_s26 = smov (!%p477_p9), 56   ;;  %s9168_s30 = smov (!%p477_p9), 48  }
  0x22   : > { %s9205_s7 = sld [smem:[#allocation18_spill]] (!%p477_p9)  ;;  %s9206_s8 = sld [smem:[#allocation19_spill]] (!%p477_p9) }
  0x23   : > { %s9207_s9 = sld [smem:[#allocation20_spill]] (!%p477_p9)  ;;  %s9218_s24 = smov (!%p477_p9), 40  }
  0x24   : > { %s9234_s18 = smov (!%p531_p10, %s6882_s18), 3  ;;  %7717 = vmatpush3.bf16.msra.mxu1 %v7714_v19  ;;  %v6885_v27 = vld [vmem:[%s9202_s2] ss:$0 sm:$0xff]  ;;  %s9211_s2 = smov 80  }
  0x25   : > { %s6883_s19 = sshll.u32 %s9234_s18, 3  ;;  %v6886_v29 = vld [vmem:[%s9203_s3] ss:$0 sm:$0xff]  ;;  %7298 = vmatprep.subr.mxu1 %v8082_v36  ;;  %s9220_s21 = sld [smem:[#allocation19_spill]] }
  0x26   : > { %s534_s29 = scalar_lea.vmem %s9201_s28, %s6883_s19  ;;  %s9172_s28 = smov 96  }
  0x27   : > { %v542_v0 = vld [vmem:[%s534_s29] sm:$0xff]  ;;  %v543_v1 = vld [vmem:[%s534_s29 + $0x8] sm:$0xff]  ;;  %s8307_s19 = scalar_lea.vmem %s9204_s1, %s9234_s18  ;;  %s9160_s18 = smov 80  }
  0x28   : > { %v547_v2 = vsel %vm546_vm0, %v542_v0, 0.0  ;;  %v550_v3 = vsel %vm546_vm0, %v543_v1, 0.0  ;;  %v8310_v48 = vld [vmem:[%s8307_s19 + $0x1] ss:$0 sm:$0xff]  ;;  %v8319_v53 = vld [vmem:[%s8307_s19] ss:$0 sm:$0xff] }
  0x29   : > { %548 = vadd.xlane.f32.xlu0 %v547_v2  ;;  %s9152_s29 = smov 112   ;;  %s9210_s1 = smov 120  }
  0x2a   : > { %s8095_s17 = smov [#allocation2]  }
  0x2b   : > { %s8022_s3 = sshll.u32 %s8095_s17, 4  ;;  %s8023_s3 = int_to_ptr.vmem [resolvable:$false] %s8022_s3 }
  0x2d   : > { %551 = vadd.xlane.f32.xlu0 %v550_v3 }
  0xb6   : > { %v549_v4 = vpop.xlane.xlu0 %548 }
  0xb7   : > { %v554_v5 = vmul.f32 0.03125, %v549_v4 }
  0xb9   : > { %v556_v6 = vsub.f32 %v542_v0, %v554_v5 }
  0xba   : > { %v552_v7 = vpop.xlane.xlu0 %551 }
  0xbb   : > { %v555_v8 = vmul.f32 0.03125, %v552_v7  ;;  %v558_v9 = vmul.f32 %v556_v6, %v556_v6 }
  0xbd   : > { %v557_v10 = vsub.f32 %v543_v1, %v555_v8  ;;  %v560_v11 = vsel %vm546_vm0, %v558_v9, 0.0 }
  0xbe   : > { %561 = vadd.xlane.f32.xlu1 %v560_v11 }
  0xbf   : > { %v559_v12 = vmul.f32 %v557_v10, %v557_v10 }
  0xc1   : > { %v563_v13 = vsel %vm546_vm0, %v559_v12, 0.0 }
  0xc2   : > { %564 = vadd.xlane.f32.xlu1 %v563_v13 }
 0x14b   : > { %v562_v20 = vpop.xlane.xlu1 %561 }
 0x14c   : > { %v566_v21 = vmul.f32 0.03125, %v562_v20 }
 0x14e   : > { %v568_v22 = vadd.f32 1e-12, %v566_v21 }
 0x14f   : > { %v565_v23 = vpop.xlane.xlu1 %564 }
 0x150   : > { %7878 = vrsqrt.f32 %v568_v22  ;;  %v567_v24 = vmul.f32 0.03125, %v565_v23 }
 0x152   : > { %v569_v25 = vadd.f32 1e-12, %v567_v24 }
 0x154   : > { %7880 = vrsqrt.f32 %v569_v25 }
 0x15a   : > { %v7879_v26 = vpop.eup %7878 }
 0x15b   : > { %v572_v28 = vmul.f32 %v7879_v26, %v556_v6 }
 0x15d   : > { %v580_v30 = vmul.f32 %v6885_v27, %v572_v28 }
 0x15e   : > { %v7881_v31 = vpop.eup %7880 }
 0x15f   : > { %v573_v32 = vmul.f32 %v7881_v31, %v557_v10  ;;  %v8260_v33 = vadd.f32 %v6886_v29, %v580_v30 }
 0x161   : > { %v581_v34 = vmul.f32 %v6885_v27, %v573_v32  ;;  %7295 = vmatprep.mubr.msk.f32.mxu1 %vm546_vm0, %v8260_v33 }
 0x163   : > { %v8264_v35 = vadd.f32 %v6886_v29, %v581_v34 }
 0x165   : > { %7296 = vmatmul.mubr.msk.f32.vlgmr.msra.gmra.mrb[0].mxu1 %vm546_vm0, %v8264_v35 }
 0x166   : > { %7300 = vmatprep.mubr.msk.f32.mxu1 %vm8083_vm1, %v8082_v36 }
 0x238   : > { %v7297_v38 = vpop.f32.mrb[0].mxu1 }
 0x239   : > { %v8277_v39 = vadd.f32 %v7297_v38, %v6887_v37  ;;  %v675_v40 = vpop.f32.mrb[1].mxu1 }
 0x23a   : > { %v8279_v41 = vadd.f32 %v6887_v37, %v675_v40 }
 0x23b   : > { %782 = vrot.lane.b32.xlu1 %v8277_v39, %s9172_s28  ;;  %v8296_v45 = vmul.f32 0.35355338, %v8277_v39 }
 0x23c   : > { %703 = vrot.lane.b32.xlu0 %v8279_v41, %s9172_s28  ;;  %v8287_v43 = vmul.f32 0.35355338, %v8279_v41  ;;  %s9212_s28 = smov 64  }
 0x2ad   : > { %v783_v44 = vpop.permute.xlu1 %782 }
 0x2ae   : > { %v704_v42 = vpop.permute.xlu0 %703 }
 0x2af   : > { %7299 = vmatpush3.xpose.msk.msra.mxu1 %vm705_vm2, %v704_v42 }
 0x2b0   : > { %7303 = vmatprep.subr.mxu1 %v8082_v36 }
 0x2b2   : > { %7301 = vmatmul.mubr.msk.f32.vlgmr.msra.gmra.mrb[2].mxu1 %vm705_vm2, %v8287_v43 }
 0x2b3   : > { %7304 = vmatpush3.xpose.msk.msra.mxu1 %vm705_vm2, %v783_v44  ;;  %7305 = vmatprep.mubr.msk.f32.mxu1 %vm8083_vm1, %v8082_v36 }
 0x2b4   : > { %7313 = vmatprep.subr.mxu1 %v8082_v36 }
 0x2b6   : > { %7306 = vmatmul.mubr.msk.f32.vlgmr.msra.gmra.mrb[4].mxu1 %vm705_vm2, %v8296_v45 }
 0x2b7   : > { %7315 = vmatprep.mubr.msk.f32.mxu1 %vm8083_vm1, %v8082_v36 }
 0x385   : > { %v777_v46 = vpop.f32.mrb[2].mxu1 }
 0x386   : > { %v7302_v47 = vpop.f32.mrb[3].mxu1  ;;  %v778_v54 = vadd.f32 %v8319_v53, %v777_v46 }
 0x388   : > { %v859_v55 = vsel %vm705_vm2, %v778_v54, -inf }
 0x389   : > { %v855_v49 = vpop.f32.mrb[4].mxu1 }
 0x38a   : > { %v856_v50 = vadd.f32 %v8310_v48, %v855_v49  ;;  %v7307_v51 = vpop.f32.mrb[5].mxu1 }
 0x38c   : > { %v862_v52 = vsel %vm705_vm2, %v856_v50, -inf }
 0x38d   : > { %863 = vmax.xlane.f32.xlu1 %v862_v52 }
 0x39e   : > { %1113 = vrot.lane.b32.xlu1 %v8277_v39, %s9170_s23 }
 0x3a2   : > { %1111 = vrot.lane.b32.xlu1 %v8296_v45, %s9162_s27 }
 0x3c6   : > { %860 = vmax.xlane.f32.xlu1 %v859_v55 }
 0x3d7   : > { %1035 = vrot.lane.b32.xlu1 %v8279_v41, %s9170_s23  ;;  %s9213_s23 = smov 56  }
 0x3db   : > { %1033 = vrot.lane.b32.xlu1 %v8287_v43, %s9162_s27  ;;  %s9216_s27 = smov 72  }
 0x3df   : > { %1527 = vrot.lane.b32.xlu1 %v8279_v41, %s9160_s18 }
 0x41a   : > { %v864_v56 = vpop.xlane.xlu1 %863 }
 0x41b   : > { %v866_v57 = vsub.f32 %v856_v50, %v864_v56 }
 0x41d   : > { %v869_v58 = vmul.f32 1.442695, %v866_v57 }
 0x41e   : > { %v1114_v61 = vpop.permute.xlu1 %1113 }
 0x41f   : > { %7882 = vpow2.f32 %v869_v58 }
 0x422   : > { %v1112_v62 = vpop.permute.xlu1 %1111 }
 0x429   : > { %v7883_v59 = vpop.eup %7882 }
 0x42a   : > { %v874_v60 = vsel %vm705_vm2, %v7883_v59, 0.0 }
 0x42b   : > { %875 = vadd.xlane.f32.xlu0 %v874_v60 }
 0x441   : > { %957 = vrot.lane.b32.xlu0 %v8277_v39, %s9154_s20 }
 0x453   : > { %v861_v63 = vpop.xlane.xlu1 %860 }
 0x454   : > { %v865_v0 = vsub.f32 %v778_v54, %v861_v63 }
 0x456   : > { %v867_v1 = vmul.f32 1.442695, %v865_v0 }
 0x457   : > { %v1036_v11 = vpop.permute.xlu1 %1035 }
 0x458   : > { %7884 = vpow2.f32 %v867_v1 }
 0x45b   : > { %v1034_v13 = vpop.permute.xlu1 %1033 }
 0x45f   : > { %v1528_v32 = vpop.permute.xlu1 %1527 }
 0x462   : > { %v7885_v2 = vpop.eup %7884 }
 0x463   : > { %v871_v3 = vsel %vm705_vm2, %v7885_v2, 0.0 }
 0x464   : > { %872 = vadd.xlane.f32.xlu0 %v871_v3  ;;  %v687_v3 = vld [vmem:[%s9138_s6 + $0x8] sm:$0xff] }
 0x47a   : > { %881 = vrot.lane.b32.xlu0 %v8279_v41, %s9154_s20  ;;  %s9166_s20 = smov 104  }
 0x4b8   : > { %v876_v4 = vpop.xlane.xlu0 %875 }
 0x4b9   : > { %7886 = vrcp.f32 %v876_v4  ;;  %v686_v4 = vld [vmem:[%s9138_s6] sm:$0xff] }
 0x4bc   : > { %v958_v5 = vpop.permute.xlu0 %957 }
 0x4bd   : > { %7314 = vmatpush3.msra.mxu1 %v958_v5 }
 0x4be   : > { %7323 = vmatprep.subr.mxu1 %v8082_v36 }
 0x4c3   : > { %v7887_v6 = vpop.eup %7886 }
 0x4c4   : > { %v880_v7 = vmul.f32 %v7887_v6, %v7883_v59 }
 0x4c6   : > { %7316 = vmatmul.mubr.msk.f32.vlgmr.msra.gmra.mrb[6].mxu1 %vm705_vm2, %v880_v7 }
 0x4c7   : > { %7324 = vmatpush3.xpose.msk.msra.mxu1 %vm705_vm2, %v1114_v61  ;;  %7325 = vmatprep.mubr.msk.f32.mxu1 %vm8083_vm1, %v8082_v36 }
 0x4c8   : > { %7333 = vmatprep.subr.mxu1 %v8082_v36 }
 0x4ca   : > { %7326 = vmatmul.mubr.msk.f32.vlgmr.msra.gmra.mrb[8].mxu1 %vm705_vm2, %v1112_v62 }
 0x4cb   : > { %7335 = vmatprep.mubr.msk.f32.mxu1 %vm8083_vm1, %v8082_v36 }
 0x4f1   : > { %v873_v8 = vpop.xlane.xlu0 %872 }
 0x4f2   : > { %7888 = vrcp.f32 %v873_v8 }
 0x4f5   : > { %v882_v9 = vpop.permute.xlu0 %881 }
 0x4f6   : > { %7309 = vmatpush3.msra.mxu0 %v882_v9 }
 0x4f7   : > { %7318 = vmatprep.subr.mxu0 %v8082_v36 }
 0x4fc   : > { %v7889_v10 = vpop.eup %7888 }
 0x4fd   : > { %v879_v12 = vmul.f32 %v7889_v10, %v7885_v2 }
 0x4ff   : > { %7311 = vmatmul.mubr.msk.f32.vlgmr.msra.gmra.mrb[0].mxu0 %vm705_vm2, %v879_v12 }
 0x500   : > { %7319 = vmatpush3.xpose.msk.msra.mxu0 %vm705_vm2, %v1036_v11  ;;  %7320 = vmatprep.mubr.msk.f32.mxu0 %vm8083_vm1, %v8082_v36 }
 0x501   : > { %7328 = vmatprep.subr.mxu0 %v8082_v36 }
 0x503   : > { %7321 = vmatmul.mubr.msk.f32.vlgmr.msra.gmra.mrb[2].mxu0 %vm705_vm2, %v1034_v13 }
 0x504   : > { %7330 = vmatprep.mubr.msk.f32.mxu0 %vm8083_vm1, %v8082_v36 }
 0x599   : > { %v8353_v14 = vpop.f32.mrb[6].mxu1 }
 0x59a   : > { %v7317_v15 = vpop.f32.mrb[7].mxu1 }
 0x59d   : > { %v1185_v16 = vpop.f32.mrb[8].mxu1 }
 0x59e   : > { %v1186_v17 = vadd.f32 %v8310_v48, %v1185_v16  ;;  %v7327_v18 = vpop.f32.mrb[9].mxu1 }
 0x5a0   : > { %v1192_v19 = vsel %vm705_vm2, %v1186_v17, -inf }
 0x5a1   : > { %1193 = vmax.xlane.f32.xlu0 %v1192_v19  ;;  %v688_v19 = vld [vmem:[%s9138_s6 + $0x10] sm:$0xff] }
 0x5b7   : > { %1287 = vrot.lane.b32.xlu0 %v8277_v39, %s9158_s26 }
 0x5bb   : > { %1525 = vrot.lane.b32.xlu0 %v8287_v43, %s9152_s29 }
 0x5bf   : > { %1603 = vrot.lane.b32.xlu0 %v8296_v45, %s9152_s29  ;;  %s9156_s29 = smov 72  }
 0x5d2   : > { %v8363_v20 = vpop.f32.mrb[0].mxu0 }
 0x5d3   : > { %v7312_v21 = vpop.f32.mrb[1].mxu0 }
 0x5d6   : > { %v1107_v22 = vpop.f32.mrb[2].mxu0 }
 0x5d7   : > { %v7322_v23 = vpop.f32.mrb[3].mxu0  ;;  %v1108_v30 = vadd.f32 %v8319_v53, %v1107_v22 }
 0x5d9   : > { %v1189_v31 = vsel %vm705_vm2, %v1108_v30, -inf }
 0x62e   : > { %v1194_v24 = vpop.xlane.xlu0 %1193 }
 0x62f   : > { %v1196_v25 = vsub.f32 %v1186_v17, %v1194_v24 }
 0x631   : > { %v1199_v26 = vmul.f32 1.442695, %v1196_v25 }
 0x632   : > { %v1288_v27 = vpop.permute.xlu0 %1287 }
 0x633   : > { %7890 = vpow2.f32 %v1199_v26  ;;  %7334 = vmatpush3.msra.mxu1 %v1288_v27 }
 0x634   : > { %7348 = vmatprep.subr.mxu1 %v8082_v36 }
 0x636   : > { %v1526_v40 = vpop.permute.xlu0 %1525 }
 0x63a   : > { %v1604_v44 = vpop.permute.xlu0 %1603 }
 0x63d   : > { %v7891_v28 = vpop.eup %7890 }
 0x63e   : > { %v1204_v29 = vsel %vm705_vm2, %v7891_v28, 0.0 }
 0x63f   : > { %1205 = vadd.xlane.f32.xlu1 %v1204_v29 }
 0x650   : > { %1605 = vrot.lane.b32.xlu1 %v8277_v39, %s9160_s18  ;;  %s9217_s18 = smov 104  }
 0x674   : > { %1190 = vmax.xlane.f32.xlu1 %v1189_v31 }
 0x6cc   : > { %v1206_v34 = vpop.xlane.xlu1 %1205 }
 0x6cd   : > { %7892 = vrcp.f32 %v1206_v34 }
 0x6d0   : > { %v1606_v42 = vpop.permute.xlu1 %1605 }
 0x6d7   : > { %v7893_v37 = vpop.eup %7892 }
 0x6d8   : > { %v1210_v38 = vmul.f32 %v7893_v37, %v7891_v28 }
 0x6da   : > { %7336 = vmatmul.mubr.msk.f32.vlgmr.msra.gmra.mrb[10].mxu1 %vm705_vm2, %v1210_v38 }
 0x6db   : > { %7349 = vmatpush3.xpose.msk.msra.mxu1 %vm705_vm2, %v1528_v32  ;;  %7350 = vmatprep.mubr.msk.f32.mxu1 %vm8083_vm1, %v8082_v36 }
 0x6dc   : > { %7353 = vmatprep.subr.mxu1 %v8082_v36 }
 0x6de   : > { %7351 = vmatmul.mubr.msk.f32.vlgmr.msra.gmra.mrb[12].mxu1 %vm705_vm2, %v1526_v40 }
 0x6df   : > { %7354 = vmatpush3.xpose.msk.msra.mxu1 %vm705_vm2, %v1606_v42  ;;  %7355 = vmatprep.mubr.msk.f32.mxu1 %vm8083_vm1, %v8082_v36 }
 0x6e0   : > { %7363 = vmatprep.subr.mxu1 %v8082_v36 }
 0x6e2   : > { %7356 = vmatmul.mubr.msk.f32.vlgmr.msra.gmra.mrb[14].mxu1 %vm705_vm2, %v1604_v44 }
 0x6e3   : > { %7365 = vmatprep.mubr.msk.f32.mxu1 %vm8083_vm1, %v8082_v36 }
 0x701   : > { %v1191_v46 = vpop.xlane.xlu1 %1190 }
 0x702   : > { %v1195_v47 = vsub.f32 %v1108_v30, %v1191_v46 }
 0x704   : > { %v1197_v49 = vmul.f32 1.442695, %v1195_v47 }
 0x706   : > { %7894 = vpow2.f32 %v1197_v49 }
 0x710   : > { %v7895_v50 = vpop.eup %7894 }
 0x711   : > { %v1201_v51 = vsel %vm705_vm2, %v7895_v50, 0.0 }
 0x712   : > { %1202 = vadd.xlane.f32.xlu0 %v1201_v51 }
 0x728   : > { %1211 = vrot.lane.b32.xlu0 %v8279_v41, %s9158_s26  ;;  %s9164_s26 = smov 40  }
 0x72c   : > { %1779 = vrot.lane.b32.xlu0 %v8277_v39, %s9168_s30 }
 0x730   : > { %1940 = vrot.lane.b32.xlu0 %v8279_v41, %s9156_s29 }
 0x734   : > { %2018 = vrot.lane.b32.xlu0 %v8277_v39, %s9156_s29  ;;  %s9215_s29 = smov 48  }
 0x738   : > { %1938 = vrot.lane.b32.xlu0 %v8287_v43, %s9166_s20 }
 0x79f   : > { %v1203_v52 = vpop.xlane.xlu0 %1202 }
 0x7a0   : > { %7896 = vrcp.f32 %v1203_v52 }
 0x7a3   : > { %v1212_v54 = vpop.permute.xlu0 %1211 }
 0x7a4   : > { %7329 = vmatpush3.msra.mxu0 %v1212_v54 }
 0x7a5   : > { %7338 = vmatprep.subr.mxu0 %v687_v3 }
 0x7a7   : > { %v1780_v55 = vpop.permute.xlu0 %1779 }
 0x7a8   : > { %7364 = vmatpush3.msra.mxu1 %v1780_v55 }
 0x7a9   : > { %7373 = vmatprep.subr.mxu1 %v8082_v36 }
 0x7aa   : > { %v7897_v56 = vpop.eup %7896 }
 0x7ab   : > { %v1209_v57 = vmul.f32 %v7897_v56, %v7895_v50  ;;  %v1941_v22 = vpop.permute.xlu0 %1940 }
 0x7ad   : > { %7331 = vmatmul.mubr.msk.f32.vlgmr.msra.gmra.mrb[4].mxu0 %vm705_vm2, %v1209_v57  ;;  %v1359_v58 = vpop.f32.mrb[10].mxu1 }
 0x7ae   : > { %v7337_v59 = vpop.f32.mrb[11].mxu1  ;;  %7339 = vmatpush3.msra.mxu0 %v687_v3 }
 0x7af   : > { %7343 = vmatprep.subr.mxu0 %v686_v4  ;;  %v2019_v24 = vpop.permute.xlu0 %2018 }
 0x7b1   : > { %v1599_v60 = vpop.f32.mrb[12].mxu1 }
 0x7b2   : > { %v1600_v61 = vadd.f32 %v8319_v53, %v1599_v60  ;;  %v7352_v62 = vpop.f32.mrb[13].mxu1 }
 0x7b3   : > { %v1939_v26 = vpop.permute.xlu0 %1938 }
 0x7b4   : > { %v1681_v43 = vsel %vm705_vm2, %v1600_v61, -inf }
 0x7b5   : > { %1682 = vmax.xlane.f32.xlu1 %v1681_v43  ;;  %v1677_v63 = vpop.f32.mrb[14].mxu1 }
 0x7b6   : > { %v1678_v0 = vadd.f32 %v8310_v48, %v1677_v63  ;;  %v7357_v1 = vpop.f32.mrb[15].mxu1 }
 0x7b7   : > { %v689_v1 = vld [vmem:[%s9138_s6 + $0x18] sm:$0xff] }
 0x7b8   : > { %v1684_v2 = vsel %vm705_vm2, %v1678_v0, -inf }
 0x7b9   : > { %1685 = vmax.xlane.f32.xlu1 %v1684_v2 }
 0x842   : > { %v1683_v5 = vpop.xlane.xlu1 %1682 }
 0x843   : > { %v1687_v6 = vsub.f32 %v1600_v61, %v1683_v5  ;;  %v6924_v5 = vld [vmem:[%s9205_s7] ss:$0 sm:$0xff] }
 0x845   : > { %v1689_v7 = vmul.f32 1.442695, %v1687_v6 }
 0x846   : > { %v1686_v8 = vpop.xlane.xlu1 %1685 }
 0x847   : > { %7898 = vpow2.f32 %v1689_v7  ;;  %v1688_v9 = vsub.f32 %v1678_v0, %v1686_v8 }
 0x849   : > { %v1691_v10 = vmul.f32 1.442695, %v1688_v9 }
 0x84b   : > { %7900 = vpow2.f32 %v1691_v10 }
 0x851   : > { %v7899_v11 = vpop.eup %7898 }
 0x852   : > { %v1693_v12 = vsel %vm705_vm2, %v7899_v11, 0.0 }
 0x853   : > { %1694 = vadd.xlane.f32.xlu1 %v1693_v12 }
 0x855   : > { %v7901_v13 = vpop.eup %7900 }
 0x856   : > { %v1696_v15 = vsel %vm705_vm2, %v7901_v13, 0.0 }
 0x857   : > { %1697 = vadd.xlane.f32.xlu1 %v1696_v15 }
 0x868   : > { %1703 = vrot.lane.b32.xlu1 %v8279_v41, %s9168_s30  ;;  %s9209_s30 = smov 88  }
 0x86c   : > { %2016 = vrot.lane.b32.xlu1 %v8296_v45, %s9166_s20  ;;  %s9208_s20 = smov 96  }
 0x880   : > { %v1283_v16 = vpop.f32.mrb[4].mxu0 }
 0x881   : > { %v7332_v17 = vpop.f32.mrb[5].mxu0  ;;  %7340 = vmatprep.mubr.msk.f32.mxu0 %vm705_vm2, %v1283_v16 }
 0x882   : > { %7341 = vmatmul.mubr.msk.f32.vlgmr.msra.gmra.mrb[6].mxu0 %vm705_vm2, %v1359_v58 }
 0x883   : > { %7345 = vmatprep.mubr.msk.f32.mxu0 %vm705_vm2, %v8363_v20  ;;  %7344 = vmatpush3.msra.mxu0 %v686_v4 }
 0x884   : > { %7358 = vmatprep.subr.mxu0 %v8082_v36 }
 0x88a   : > { %7346 = vmatmul.mubr.msk.f32.vlgmr.msra.gmra.mrb[6].mxu0 %vm705_vm2, %v8353_v14 }
 0x88b   : > { %7360 = vmatprep.mubr.msk.f32.mxu0 %vm8083_vm1, %v8082_v36 }
 0x8e0   : > { %v1695_v18 = vpop.xlane.xlu1 %1694 }
 0x8e1   : > { %7902 = vrcp.f32 %v1695_v18 }
 0x8e4   : > { %v1698_v45 = vpop.xlane.xlu1 %1697 }
 0x8e5   : > { %7904 = vrcp.f32 %v1698_v45 }
 0x8e8   : > { %v1704_v21 = vpop.permute.xlu1 %1703 }
 0x8e9   : > { %7359 = vmatpush3.msra.mxu0 %v1704_v21 }
 0x8ea   : > { %7368 = vmatprep.subr.mxu0 %v688_v19 }
 0x8eb   : > { %v7903_v20 = vpop.eup %7902 }
 0x8ec   : > { %v1701_v23 = vmul.f32 %v7903_v20, %v7899_v11  ;;  %v2017_v31 = vpop.permute.xlu1 %2016 }
 0x8ee   : > { %7361 = vmatmul.mubr.msk.f32.vlgmr.msra.gmra.mrb[8].mxu0 %vm705_vm2, %v1701_v23  ;;  %v2407_v23 = vld [vmem:[%s9142_s10 + $0x8] sm:$0xff] }
 0x8ef   : > { %v7905_v14 = vpop.eup %7904  ;;  %7369 = vmatpush3.msra.mxu0 %v688_v19 }
 0x8f0   : > { %v1702_v25 = vmul.f32 %v7905_v14, %v7901_v13  ;;  %7378 = vmatprep.subr.mxu0 %v8082_v36 }
 0x8f2   : > { %7366 = vmatmul.mubr.msk.f32.vlgmr.msra.gmra.mrb[16].mxu1 %vm705_vm2, %v1702_v25  ;;  %v2409_v25 = vld [vmem:[%s9142_s10 + $0x18] sm:$0xff] }
 0x8f3   : > { %7374 = vmatpush3.xpose.msk.msra.mxu1 %vm705_vm2, %v1941_v22  ;;  %7375 = vmatprep.mubr.msk.f32.mxu1 %vm8083_vm1, %v8082_v36 }
 0x8f4   : > { %7383 = vmatprep.subr.mxu1 %v8082_v36 }
 0x8f6   : > { %7376 = vmatmul.mubr.msk.f32.vlgmr.msra.gmra.mrb[18].mxu1 %vm705_vm2, %v1939_v26 }
 0x8f7   : > { %7385 = vmatprep.mubr.msk.f32.mxu1 %vm8083_vm1, %v8082_v36 }
 0x9c1   : > { %v1775_v27 = vpop.f32.mrb[8].mxu0 }
 0x9c2   : > { %v7362_v28 = vpop.f32.mrb[9].mxu0  ;;  %7370 = vmatprep.mubr.msk.f32.mxu0 %vm705_vm2, %v1775_v27 }
 0x9c5   : > { %v1851_v29 = vpop.f32.mrb[16].mxu1 }
 0x9c6   : > { %v7367_v30 = vpop.f32.mrb[17].mxu1  ;;  %7371 = vmatmul.mubr.msk.f32.vlgmr.msra.gmra.mrb[6].mxu0 %vm705_vm2, %v1851_v29 }
 0x9c7   : > { %7379 = vmatpush3.xpose.msk.msra.mxu0 %vm705_vm2, %v2019_v24  ;;  %7380 = vmatprep.mubr.msk.f32.mxu0 %vm8083_vm1, %v8082_v36  ;;  %v2408_v24 = vld [vmem:[%s9142_s10 + $0x10] sm:$0xff] }
 0x9c8   : > { %7388 = vmatprep.subr.mxu0 %v8082_v36  ;;  %v7722_v26 = vpack.c.bf16 %v2409_v25, %v2408_v24 }
 0x9c9   : > { %v2012_v32 = vpop.f32.mrb[18].mxu1 }
 0x9ca   : > { %v2013_v34 = vadd.f32 %v8319_v53, %v2012_v32  ;;  %v7377_v37 = vpop.f32.mrb[19].mxu1  ;;  %7381 = vmatmul.mubr.msk.f32.vlgmr.msra.gmra.mrb[10].mxu0 %vm705_vm2, %v2017_v31 }
 0x9cb   : > { %7390 = vmatprep.mubr.msk.f32.mxu0 %vm8083_vm1, %v8082_v36  ;;  %v6925_v37 = vld [vmem:[%s9206_s8] ss:$0 sm:$0xff] }
 0x9cc   : > { %v2094_v38 = vsel %vm705_vm2, %v2013_v34, -inf }
 0x9cd   : > { %2095 = vmax.xlane.f32.xlu0 %v2094_v38 }
 0xa5a   : > { %v2096_v40 = vpop.xlane.xlu0 %2095 }
 0xa5b   : > { %v2100_v42 = vsub.f32 %v2013_v34, %v2096_v40 }
 0xa5d   : > { %v2102_v44 = vmul.f32 1.442695, %v2100_v42 }
 0xa5f   : > { %7906 = vpow2.f32 %v2102_v44  ;;  %v6926_v44 = vld [vmem:[%s9207_s9] ss:$0 sm:$0xff] }
 0xa69   : > { %v7907_v46 = vpop.eup %7906 }
 0xa6a   : > { %v2106_v47 = vsel %vm705_vm2, %v7907_v46, 0.0 }
 0xa6b   : > { %2107 = vadd.xlane.f32.xlu0 %v2106_v47 }
 0xa9d   : > { %v2090_v49 = vpop.f32.mrb[10].mxu0 }
 0xa9e   : > { %v2091_v50 = vadd.f32 %v8310_v48, %v2090_v49  ;;  %v7382_v51 = vpop.f32.mrb[11].mxu0 }
 0xa9f   : > { %v2516_v51 = vld [vmem:[%s9144_s12] sm:$0xff] }
 0xaa0   : > { %v2097_v52 = vsel %vm705_vm2, %v2091_v50, -inf }
 0xaa1   : > { %2098 = vmax.xlane.f32.xlu1 %v2097_v52  ;;  %v2517_v52 = vld [vmem:[%s9144_s12 + $0x8] sm:$0xff] }
 0xab2   : > { %2192 = vrot.lane.b32.xlu1 %v8277_v39, %s9164_s26 }
 0xaf8   : > { %v2108_v60 = vpop.xlane.xlu0 %2107 }
 0xb2e   : > { %v2099_v54 = vpop.xlane.xlu1 %2098 }
 0xb2f   : > { %v2101_v55 = vsub.f32 %v2091_v50, %v2099_v54  ;;  %v7726_v54 = vpack.c.bf16 %v2517_v52, %v2516_v51 }
 0xb31   : > { %v2104_v56 = vmul.f32 1.442695, %v2101_v55  ;;  %v2518_v55 = vld [vmem:[%s9144_s12 + $0x10] sm:$0xff] }
 0xb32   : > { %v2193_v57 = vpop.permute.xlu1 %2192 }
 0xb33   : > { %7908 = vpow2.f32 %v2104_v56  ;;  %7389 = vmatpush3.msra.mxu0 %v2193_v57  ;;  %v2519_v56 = vld [vmem:[%s9144_s12 + $0x18] sm:$0xff] }
 0xb34   : > { %7910 = vrcp.f32 %v2108_v60  ;;  %7393 = vmatprep.subr.mxu0 %v689_v1  ;;  %v7730_v57 = vpack.c.bf16 %v2519_v56, %v2518_v55 }
 0xb3d   : > { %v7909_v58 = vpop.eup %7908 }
 0xb3e   : > { %v2109_v59 = vsel %vm705_vm2, %v7909_v58, 0.0  ;;  %v7911_v62 = vpop.eup %7910 }
 0xb3f   : > { %2110 = vadd.xlane.f32.xlu0 %v2109_v59  ;;  %v2114_v39 = vmul.f32 %v7911_v62, %v7907_v46  ;;  %v2521_v59 = vld [vmem:[%s9144_s12 + $0x28] sm:$0xff]  ;;  %v2523_v62 = vld [vmem:[%s9144_s12 + $0x38] sm:$0xff] }
 0xb55   : > { %2116 = vrot.lane.b32.xlu0 %v8279_v41, %s9164_s26  ;;  %s9214_s26 = smov 112  }
 0xbcc   : > { %v2111_v61 = vpop.xlane.xlu0 %2110 }
 0xbcd   : > { %7912 = vrcp.f32 %v2111_v61  ;;  %v2522_v61 = vld [vmem:[%s9144_s12 + $0x30] sm:$0xff] }
 0xbd0   : > { %v2117_v43 = vpop.permute.xlu0 %2116 }
 0xbd1   : > { %7384 = vmatpush3.msra.mxu1 %v2117_v43  ;;  %v7738_v43 = vpack.c.bf16 %v2523_v62, %v2522_v61  ;;  %v6934_v62 = vld [vmem:[%s9147_s15] ss:$0 sm:$0xff] }
 0xbd2   : > { %7386 = vmatmul.mubr.msk.f32.vlgmr.msra.gmra.mrb[20].mxu1 %vm705_vm2, %v2114_v39  ;;  %v6927_v39 = vld [vmem:[%s9143_s11] ss:$0 sm:$0xff] }
 0xbd7   : > { %v7913_v63 = vpop.eup %7912 }
 0xbd8   : > { %v2115_v0 = vmul.f32 %v7913_v63, %v7909_v58  ;;  %v2520_v58 = vld [vmem:[%s9144_s12 + $0x20] sm:$0xff] }
 0xbd9   : > { %v7734_v60 = vpack.c.bf16 %v2521_v59, %v2520_v58  ;;  %v6933_v58 = vld [vmem:[%s9146_s14] ss:$0 sm:$0xff] }
 0xbda   : > { %7391 = vmatmul.mubr.msk.f32.vlgmr.msra.gmra.mrb[12].mxu0 %vm705_vm2, %v2115_v0 }
 0xbdb   : > { %7394 = vmatpush3.msra.mxu0 %v689_v1 }
 0xbdc   : > { %7727 = vmatprep.subr.bf16.mxu0 %v7726_v54 }
 0xca5   : > { %v2188_v41 = vpop.f32.mrb[20].mxu1 }
 0xca6   : > { %v7387_v2 = vpop.f32.mrb[21].mxu1  ;;  %7395 = vmatprep.mubr.msk.f32.mxu0 %vm705_vm2, %v2188_v41 }
 0xcad   : > { %v2264_v3 = vpop.f32.mrb[12].mxu0 }
 0xcae   : > { %v7392_v4 = vpop.f32.mrb[13].mxu0  ;;  %7396 = vmatmul.mubr.msk.f32.vlgmr.msra.gmra.mrb[6].mxu0 %vm705_vm2, %v2264_v3 }
 0xcaf   : > { %7729 = vmatpush3.bf16.msra.mxu0 %v7726_v54 }
 0xcb0   : > { %7731 = vmatprep.subr.bf16.mxu0 %v7730_v57 }
 0xcb3   : > { %7733 = vmatpush3.bf16.msra.mxu0 %v7730_v57 }
 0xcb4   : > { %7735 = vmatprep.subr.bf16.mxu0 %v7734_v60 }
 0xcb7   : > { %7737 = vmatpush3.bf16.msra.mxu0 %v7734_v60 }
 0xcb8   : > { %7739 = vmatprep.subr.bf16.mxu0 %v7738_v43 }
 0xcbb   : > { %7741 = vmatpush3.bf16.msra.mxu0 %v7738_v43 }
 0xcbc   : > { %7449 = vmatprep.subr.mxu0 %v8082_v36 }
 0xd81   : > { %v7397_v6 = vpop.f32.mrb[6].mxu0 }
 0xd82   : > { %v2359_v7 = vadd.f32 %v7397_v6, %v6924_v5  ;;  %v2340_v8 = vpop.f32.mrb[7].mxu0 }
 0xd83   : > { %v2358_v9 = vadd.f32 %v6924_v5, %v2340_v8 }
 0xd84   : > { %v2361_v10 = vadd.f32 %v2359_v7, %v8264_v35 }
 0xd85   : > { %v2360_v11 = vadd.f32 %v2358_v9, %v8260_v33  ;;  %v2406_v33 = vld [vmem:[%s9142_s10] sm:$0xff] }
 0xd86   : > { %v2367_v12 = vsel %vm546_vm0, %v2361_v10, 0.0  ;;  %v7718_v14 = vpack.c.bf16 %v2407_v23, %v2406_v33 }
 0xd87   : > { %2368 = vadd.xlane.f32.xlu0 %v2367_v12  ;;  %v2364_v13 = vsel %vm546_vm0, %v2360_v11, 0.0 }
 0xd88   : > { %2365 = vadd.xlane.f32.xlu1 %v2364_v13  ;;  %7719 = vmatprep.subr.bf16.mxu1 %v7718_v14 }
 0xd89   : > { %7721 = vmatpush3.bf16.msra.mxu1 %v7718_v14 }
 0xd8a   : > { %7723 = vmatprep.subr.bf16.mxu1 %v7722_v26 }
 0xd8d   : > { %7725 = vmatpush3.bf16.msra.mxu1 %v7722_v26 }
 0xe14   : > { %v2369_v15 = vpop.xlane.xlu0 %2368 }
 0xe15   : > { %v2371_v16 = vmul.f32 0.03125, %v2369_v15  ;;  %v2366_v17 = vpop.xlane.xlu1 %2365 }
 0xe16   : > { %v2370_v18 = vmul.f32 0.03125, %v2366_v17 }
 0xe17   : > { %v2373_v45 = vsub.f32 %v2361_v10, %v2371_v16 }
 0xe18   : > { %v2372_v19 = vsub.f32 %v2360_v11, %v2370_v18 }
 0xe19   : > { %v2375_v21 = vmul.f32 %v2373_v45, %v2373_v45 }
 0xe1a   : > { %v2374_v22 = vmul.f32 %v2372_v19, %v2372_v19 }
 0xe1b   : > { %v2379_v20 = vsel %vm546_vm0, %v2375_v21, 0.0  ;;  %v6930_v21 = vld [vmem:[%s9145_s13] ss:$0 sm:$0xff] }
 0xe1c   : > { %2380 = vadd.xlane.f32.xlu1 %v2379_v20  ;;  %v2376_v35 = vsel %vm546_vm0, %v2374_v22, 0.0 }
 0xe1d   : > { %2377 = vadd.xlane.f32.xlu0 %v2376_v35 }
 0xea9   : > { %v2381_v27 = vpop.xlane.xlu1 %2380 }
 0xeaa   : > { %v2383_v28 = vmul.f32 0.03125, %v2381_v27  ;;  %v2378_v29 = vpop.xlane.xlu0 %2377 }
 0xeab   : > { %v2382_v30 = vmul.f32 0.03125, %v2378_v29 }
 0xeac   : > { %v2385_v31 = vadd.f32 1e-12, %v2383_v28 }
 0xead   : > { %v2384_v32 = vadd.f32 1e-12, %v2382_v30 }
 0xeae   : > { %7914 = vrsqrt.f32 %v2385_v31 }
 0xeaf   : > { %7916 = vrsqrt.f32 %v2384_v32 }
 0xeb8   : > { %v7915_v34 = vpop.eup %7914 }
 0xeb9   : > { %v7917_v38 = vpop.eup %7916  ;;  %v2389_v40 = vmul.f32 %v7915_v34, %v2373_v45 }
 0xeba   : > { %v2388_v42 = vmul.f32 %v7917_v38, %v2372_v19 }
 0xebb   : > { %v2397_v46 = vmul.f32 %v6925_v37, %v2389_v40  ;;  %v6935_v40 = vld [vmem:[%s9136_s4 + $0x20] sm:$0xff] }
 0xebc   : > { %v2396_v47 = vmul.f32 %v6925_v37, %v2388_v42  ;;  %v6936_v42 = vld [vmem:[%s9136_s4 + $0x28] sm:$0xff] }
 0xebd   : > { %v2405_v50 = vadd.f32 %v6926_v44, %v2397_v46  ;;  %v6937_v46 = vld [vmem:[%s9136_s4 + $0x30] sm:$0xff] }
 0xebe   : > { %v2404_v49 = vadd.f32 %v6926_v44, %v2396_v47  ;;  %v7742_v44 = vpack.c.bf16 %v6936_v42, %v6935_v40  ;;  %v6938_v47 = vld [vmem:[%s9136_s4 + $0x38] sm:$0xff] }
 0xec0   : > { %7406 = vmatprep.mubr.msk.f32.mxu1 %vm546_vm0, %v2404_v49  ;;  %7743 = vmatprep.subr.bf16.mxu1 %v7742_v44 }
 0xec1   : > { %7407 = vmatmul.mubr.msk.f32.vlgmr.msra.gmra.mrb[22].mxu1 %vm546_vm0, %v2405_v50 }
 0xec2   : > { %7745 = vmatpush3.bf16.msra.mxu1 %v7742_v44 }
 0xf94   : > { %v7408_v63 = vpop.f32.mrb[22].mxu1 }
 0xf95   : > { %v2495_v0 = vadd.f32 %v7408_v63, %v6927_v39  ;;  %v2489_v1 = vpop.f32.mrb[23].mxu1 }
 0xf96   : > { %v2490_v41 = vadd.f32 %v6927_v39, %v2489_v1  ;;  %v6940_v1 = vld [vmem:[%s9137_s5 + $0x1] ss:$0 sm:$0xff] }
 0xf97   : > { %v2501_v2 = vmul.f32 0.044715, %v2495_v0  ;;  %v2499_v18 = vmul.f32 0.5, %v2495_v0 }
 0xf98   : > { %v2500_v3 = vmul.f32 0.044715, %v2490_v41  ;;  %v2498_v16 = vmul.f32 0.5, %v2490_v41 }
 0xf99   : > { %v2503_v4 = vmul.f32 %v2501_v2, %v2495_v0 }
 0xf9a   : > { %v2502_v5 = vmul.f32 %v2500_v3, %v2490_v41 }
 0xf9b   : > { %v2505_v6 = vmul.f32 %v2503_v4, %v2495_v0 }
 0xf9c   : > { %v2504_v7 = vmul.f32 %v2502_v5, %v2490_v41 }
 0xf9d   : > { %v2507_v8 = vadd.f32 %v2505_v6, %v2495_v0 }
 0xf9e   : > { %v2506_v9 = vadd.f32 %v2504_v7, %v2490_v41 }
 0xf9f   : > { %v2509_v10 = vmul.f32 0.7978846, %v2507_v8 }
 0xfa0   : > { %v2508_v11 = vmul.f32 0.7978846, %v2506_v9 }
 0xfa1   : > { %7918 = vtanh.f32 %v2509_v10 }
 0xfa2   : > { %7920 = vtanh.f32 %v2508_v11 }
 0xfab   : > { %v7919_v12 = vpop.eup %7918 }
 0xfac   : > { %v7921_v13 = vpop.eup %7920  ;;  %v2513_v15 = vadd.f32 1.0, %v7919_v12 }
 0xfad   : > { %v2512_v17 = vadd.f32 1.0, %v7921_v13 }
 0xfae   : > { %v2515_v19 = vmul.f32 %v2513_v15, %v2499_v18 }
 0xfaf   : > { %v2514_v45 = vmul.f32 %v2512_v17, %v2498_v16 }
 0xfb1   : > { %7425 = vmatprep.mubr.msk.f32.mxu0 %vm2531_vm3, %v2514_v45 }
 0xfb2   : > { %7426 = vmatmul.mubr.msk.f32.vlgmr.msra.gmra.mrb[14].mxu0 %vm2531_vm3, %v2515_v19 }
 0xfb3   : > { %7451 = vmatprep.mubr.msk.f32.mxu0 %vm8083_vm1, %v8082_v36 }
0x1085   : > { %v7427_v22 = vpop.f32.mrb[14].mxu0 }
0x1086   : > { %v2610_v20 = vadd.f32 %v7427_v22, %v6930_v21  ;;  %v2604_v35 = vpop.f32.mrb[15].mxu0 }
0x1087   : > { %v2605_v33 = vadd.f32 %v6930_v21, %v2604_v35 }
0x1088   : > { %v2614_v23 = vadd.f32 %v2610_v20, %v2405_v50 }
0x1089   : > { %v2613_v14 = vadd.f32 %v2605_v33, %v2404_v49  ;;  %v7746_v49 = vpack.c.bf16 %v6938_v47, %v6937_v46 }
0x108a   : > { %v2620_v24 = vsel %vm546_vm0, %v2614_v23, 0.0 }
0x108b   : > { %2621 = vadd.xlane.f32.xlu1 %v2620_v24  ;;  %v2617_v25 = vsel %vm546_vm0, %v2613_v14, 0.0  ;;  %7747 = vmatprep.subr.bf16.mxu1 %v7746_v49 }
0x108c   : > { %2618 = vadd.xlane.f32.xlu0 %v2617_v25  ;;  %7749 = vmatpush3.bf16.msra.mxu1 %v7746_v49 }
0x108d   : > { %7439 = vmatprep.subr.mxu1 %v8082_v36 }
0x1118   : > { %v2622_v26 = vpop.xlane.xlu1 %2621 }
0x1119   : > { %v2624_v27 = vmul.f32 0.03125, %v2622_v26  ;;  %v2619_v28 = vpop.xlane.xlu0 %2618 }
0x111a   : > { %v2623_v29 = vmul.f32 0.03125, %v2619_v28 }
0x111b   : > { %v2626_v30 = vsub.f32 %v2614_v23, %v2624_v27 }
0x111c   : > { %v2625_v31 = vsub.f32 %v2613_v14, %v2623_v29 }
0x111d   : > { %v2628_v32 = vmul.f32 %v2626_v30, %v2626_v30 }
0x111e   : > { %v2627_v34 = vmul.f32 %v2625_v31, %v2625_v31 }
0x111f   : > { %v2632_v37 = vsel %vm546_vm0, %v2628_v32, 0.0 }
0x1120   : > { %2633 = vadd.xlane.f32.xlu1 %v2632_v37  ;;  %v2629_v38 = vsel %vm546_vm0, %v2627_v34, 0.0 }
0x1121   : > { %2630 = vadd.xlane.f32.xlu0 %v2629_v38 }
0x11ad   : > { %v2634_v50 = vpop.xlane.xlu1 %2633 }
0x11ae   : > { %v2636_v51 = vmul.f32 0.03125, %v2634_v50  ;;  %v2631_v52 = vpop.xlane.xlu0 %2630 }
0x11af   : > { %v2635_v54 = vmul.f32 0.03125, %v2631_v52 }
0x11b0   : > { %v2638_v55 = vadd.f32 1e-12, %v2636_v51 }
0x11b1   : > { %v2637_v56 = vadd.f32 1e-12, %v2635_v54 }
0x11b2   : > { %7922 = vrsqrt.f32 %v2638_v55 }
0x11b3   : > { %7924 = vrsqrt.f32 %v2637_v56 }
0x11bc   : > { %v7923_v57 = vpop.eup %7922 }
0x11bd   : > { %v7925_v59 = vpop.eup %7924  ;;  %v2642_v60 = vmul.f32 %v7923_v57, %v2626_v30 }
0x11be   : > { %v2641_v61 = vmul.f32 %v7925_v59, %v2625_v31  ;;  %v8642_v59 = vld [vmem:[%s8307_s19] ss:$0 sm:$0xff] }
0x11bf   : > { %v2650_v43 = vmul.f32 %v6933_v58, %v2642_v60 }
0x11c0   : > { %v2649_v39 = vmul.f32 %v6933_v58, %v2641_v61 }
0x11c1   : > { %v8550_v0 = vadd.f32 %v6934_v62, %v2650_v43 }
0x11c2   : > { %v8548_v63 = vadd.f32 %v6934_v62, %v2649_v39 }
0x11c4   : > { %7436 = vmatprep.mubr.msk.f32.mxu1 %vm546_vm0, %v8548_v63 }
0x11c5   : > { %7437 = vmatmul.mubr.msk.f32.vlgmr.msra.gmra.mrb[24].mxu1 %vm546_vm0, %v8550_v0 }
0x11c6   : > { %7441 = vmatprep.mubr.msk.f32.mxu1 %vm8083_vm1, %v8082_v36 }
0x1298   : > { %v7438_v41 = vpop.f32.mrb[24].mxu1 }
0x1299   : > { %v8561_v2 = vadd.f32 %v7438_v41, %v6940_v1  ;;  %v2744_v3 = vpop.f32.mrb[25].mxu1 }
0x129a   : > { %v8563_v4 = vadd.f32 %v6940_v1, %v2744_v3 }
0x129b   : > { %2839 = vrot.lane.b32.xlu1 %v8561_v2, %s9208_s20  ;;  %v8580_v8 = vmul.f32 0.35355338, %v8561_v2 }
0x129c   : > { %2761 = vrot.lane.b32.xlu0 %v8563_v4, %s9208_s20  ;;  %v8571_v6 = vmul.f32 0.35355338, %v8563_v4 }
0x130d   : > { %v2840_v7 = vpop.permute.xlu1 %2839 }
0x130e   : > { %v2762_v5 = vpop.permute.xlu0 %2761 }
0x130f   : > { %7440 = vmatpush3.xpose.msk.msra.mxu1 %vm705_vm2, %v2762_v5 }
0x1310   : > { %7444 = vmatprep.subr.mxu1 %v8082_v36 }
0x1312   : > { %7442 = vmatmul.mubr.msk.f32.vlgmr.msra.gmra.mrb[26].mxu1 %vm705_vm2, %v8571_v6 }
0x1313   : > { %7445 = vmatpush3.xpose.msk.msra.mxu1 %vm705_vm2, %v2840_v7  ;;  %7446 = vmatprep.mubr.msk.f32.mxu1 %vm8083_vm1, %v8082_v36 }
0x1314   : > { %7454 = vmatprep.subr.mxu1 %v8082_v36 }
0x1316   : > { %7447 = vmatmul.mubr.msk.f32.vlgmr.msra.gmra.mrb[28].mxu1 %vm705_vm2, %v8580_v8 }
0x1317   : > { %7456 = vmatprep.mubr.msk.f32.mxu1 %vm8083_vm1, %v8082_v36 }
0x13e5   : > { %v2834_v9 = vpop.f32.mrb[26].mxu1 }
0x13e6   : > { %v7443_v10 = vpop.f32.mrb[27].mxu1  ;;  %v2835_v16 = vadd.f32 %v8319_v53, %v2834_v9 }
0x13e8   : > { %v2916_v17 = vsel %vm705_vm2, %v2835_v16, -inf }
0x13e9   : > { %v2912_v11 = vpop.f32.mrb[28].mxu1 }
0x13ea   : > { %v2913_v12 = vadd.f32 %v8310_v48, %v2912_v11  ;;  %v7448_v13 = vpop.f32.mrb[29].mxu1 }
0x13ec   : > { %v2919_v15 = vsel %vm705_vm2, %v2913_v12, -inf }
0x13ed   : > { %2920 = vmax.xlane.f32.xlu1 %v2919_v15 }
0x13fe   : > { %3170 = vrot.lane.b32.xlu1 %v8561_v2, %s9209_s30 }
0x1402   : > { %3168 = vrot.lane.b32.xlu1 %v8580_v8, %s9210_s1 }
0x1426   : > { %2917 = vmax.xlane.f32.xlu1 %v2916_v17 }
0x1437   : > { %3092 = vrot.lane.b32.xlu1 %v8563_v4, %s9209_s30 }
0x143b   : > { %3090 = vrot.lane.b32.xlu1 %v8571_v6, %s9210_s1 }
0x143f   : > { %3584 = vrot.lane.b32.xlu1 %v8563_v4, %s9211_s2 }
0x147a   : > { %v2921_v18 = vpop.xlane.xlu1 %2920 }
0x147b   : > { %v2923_v45 = vsub.f32 %v2913_v12, %v2921_v18 }
0x147d   : > { %v2926_v19 = vmul.f32 1.442695, %v2923_v45 }
0x147e   : > { %v3171_v53 = vpop.permute.xlu1 %3170 }
0x147f   : > { %7926 = vpow2.f32 %v2926_v19 }
0x1482   : > { %v3169_v20 = vpop.permute.xlu1 %3168 }
0x1489   : > { %v7927_v21 = vpop.eup %7926 }
0x148a   : > { %v2931_v22 = vsel %vm705_vm2, %v7927_v21, 0.0 }
0x148b   : > { %2932 = vadd.xlane.f32.xlu0 %v2931_v22 }
0x14a1   : > { %3014 = vrot.lane.b32.xlu0 %v8561_v2, %s9212_s28 }
0x14b3   : > { %v2918_v35 = vpop.xlane.xlu1 %2917 }
0x14b4   : > { %v2922_v33 = vsub.f32 %v2835_v16, %v2918_v35  ;;  %v8675_v35 = vld [vmem:[%s8307_s19 + $0x1] ss:$0 sm:$0xff] }
0x14b6   : > { %v2924_v23 = vmul.f32 1.442695, %v2922_v33 }
0x14b7   : > { %v3093_v32 = vpop.permute.xlu1 %3092 }
0x14b8   : > { %7928 = vpow2.f32 %v2924_v23 }
0x14bb   : > { %v3091_v37 = vpop.permute.xlu1 %3090 }
0x14bf   : > { %v3585_v62 = vpop.permute.xlu1 %3584 }
0x14c2   : > { %v7929_v14 = vpop.eup %7928 }
0x14c3   : > { %v2928_v24 = vsel %vm705_vm2, %v7929_v14, 0.0 }
0x14c4   : > { %2929 = vadd.xlane.f32.xlu0 %v2928_v24  ;;  %v6944_v24 = vld [vmem:[%s9138_s6 + $0x28] sm:$0xff] }
0x14da   : > { %2938 = vrot.lane.b32.xlu0 %v8563_v4, %s9212_s28 }
0x1518   : > { %v2933_v25 = vpop.xlane.xlu0 %2932 }
0x1519   : > { %7930 = vrcp.f32 %v2933_v25  ;;  %v6943_v25 = vld [vmem:[%s9138_s6 + $0x20] sm:$0xff] }
0x151c   : > { %v3015_v26 = vpop.permute.xlu0 %3014 }
0x151d   : > { %7455 = vmatpush3.msra.mxu1 %v3015_v26 }
0x151e   : > { %7464 = vmatprep.subr.mxu1 %v8082_v36 }
0x1523   : > { %v7931_v27 = vpop.eup %7930 }
0x1524   : > { %v2937_v28 = vmul.f32 %v7931_v27, %v7927_v21 }
0x1526   : > { %7457 = vmatmul.mubr.msk.f32.vlgmr.msra.gmra.mrb[30].mxu1 %vm705_vm2, %v2937_v28 }
0x1527   : > { %7465 = vmatpush3.xpose.msk.msra.mxu1 %vm705_vm2, %v3171_v53  ;;  %7466 = vmatprep.mubr.msk.f32.mxu1 %vm8083_vm1, %v8082_v36 }
0x1528   : > { %7474 = vmatprep.subr.mxu1 %v8082_v36 }
0x152a   : > { %7467 = vmatmul.mubr.msk.f32.vlgmr.msra.gmra.mrb[32].mxu1 %vm705_vm2, %v3169_v20 }
0x152b   : > { %7476 = vmatprep.mubr.msk.f32.mxu1 %vm8083_vm1, %v8082_v36 }
0x1551   : > { %v2930_v29 = vpop.xlane.xlu0 %2929 }
0x1552   : > { %7932 = vrcp.f32 %v2930_v29 }
0x1555   : > { %v2939_v30 = vpop.permute.xlu0 %2938 }
0x1556   : > { %7450 = vmatpush3.msra.mxu0 %v2939_v30 }
0x1557   : > { %7459 = vmatprep.subr.mxu0 %v8082_v36 }
0x155c   : > { %v7933_v31 = vpop.eup %7932 }
0x155d   : > { %v2936_v34 = vmul.f32 %v7933_v31, %v7929_v14 }
0x155f   : > { %7452 = vmatmul.mubr.msk.f32.vlgmr.msra.gmra.mrb[16].mxu0 %vm705_vm2, %v2936_v34 }
0x1560   : > { %7460 = vmatpush3.xpose.msk.msra.mxu0 %vm705_vm2, %v3093_v32  ;;  %7461 = vmatprep.mubr.msk.f32.mxu0 %vm8083_vm1, %v8082_v36 }
0x1561   : > { %7469 = vmatprep.subr.mxu0 %v8082_v36 }
0x1563   : > { %7462 = vmatmul.mubr.msk.f32.vlgmr.msra.gmra.mrb[18].mxu0 %vm705_vm2, %v3091_v37 }
0x1564   : > { %7471 = vmatprep.mubr.msk.f32.mxu0 %vm8083_vm1, %v8082_v36 }
0x15f9   : > { %v8625_v38 = vpop.f32.mrb[30].mxu1 }
0x15fa   : > { %v7458_v40 = vpop.f32.mrb[31].mxu1 }
0x15fd   : > { %v3242_v42 = vpop.f32.mrb[32].mxu1 }
0x15fe   : > { %v3243_v44 = vadd.f32 %v8310_v48, %v3242_v42  ;;  %v7468_v46 = vpop.f32.mrb[33].mxu1 }
0x1600   : > { %v3249_v47 = vsel %vm705_vm2, %v3243_v44, -inf }
0x1601   : > { %3250 = vmax.xlane.f32.xlu0 %v3249_v47  ;;  %v6945_v47 = vld [vmem:[%s9138_s6 + $0x30] sm:$0xff] }
0x1617   : > { %3344 = vrot.lane.b32.xlu0 %v8561_v2, %s9213_s23 }
0x161b   : > { %3582 = vrot.lane.b32.xlu0 %v8571_v6, %s9214_s26 }
0x161f   : > { %3660 = vrot.lane.b32.xlu0 %v8580_v8, %s9214_s26 }
0x1632   : > { %v8635_v49 = vpop.f32.mrb[16].mxu0 }
0x1633   : > { %v7453_v50 = vpop.f32.mrb[17].mxu0 }
0x1636   : > { %v3164_v51 = vpop.f32.mrb[18].mxu0 }
0x1637   : > { %v7463_v52 = vpop.f32.mrb[19].mxu0  ;;  %v3165_v60 = vadd.f32 %v8642_v59, %v3164_v51 }
0x1639   : > { %v3246_v61 = vsel %vm705_vm2, %v3165_v60, -inf }
0x168e   : > { %v3251_v48 = vpop.xlane.xlu0 %3250 }
0x168f   : > { %v3253_v54 = vsub.f32 %v3243_v44, %v3251_v48 }
0x1691   : > { %v3256_v55 = vmul.f32 1.442695, %v3253_v54 }
0x1692   : > { %v3345_v56 = vpop.permute.xlu0 %3344 }
0x1693   : > { %7934 = vpow2.f32 %v3256_v55  ;;  %7475 = vmatpush3.msra.mxu1 %v3345_v56 }
0x1694   : > { %7489 = vmatprep.subr.mxu1 %v8082_v36 }
0x1696   : > { %v3583_v41 = vpop.permute.xlu0 %3582 }
0x169a   : > { %v3661_v5 = vpop.permute.xlu0 %3660 }
0x169d   : > { %v7935_v57 = vpop.eup %7934 }
0x169e   : > { %v3261_v58 = vsel %vm705_vm2, %v7935_v57, 0.0 }
0x169f   : > { %3262 = vadd.xlane.f32.xlu1 %v3261_v58 }
0x16b0   : > { %3662 = vrot.lane.b32.xlu1 %v8561_v2, %s9211_s2 }
0x16d4   : > { %3247 = vmax.xlane.f32.xlu1 %v3246_v61 }
0x172c   : > { %v3263_v43 = vpop.xlane.xlu1 %3262 }
0x172d   : > { %7936 = vrcp.f32 %v3263_v43 }
0x1730   : > { %v3663_v3 = vpop.permute.xlu1 %3662 }
0x1737   : > { %v7937_v39 = vpop.eup %7936 }
0x1738   : > { %v3267_v1 = vmul.f32 %v7937_v39, %v7935_v57 }
0x173a   : > { %7477 = vmatmul.mubr.msk.f32.vlgmr.msra.gmra.mrb[34].mxu1 %vm705_vm2, %v3267_v1 }
0x173b   : > { %7490 = vmatpush3.xpose.msk.msra.mxu1 %vm705_vm2, %v3585_v62  ;;  %7491 = vmatprep.mubr.msk.f32.mxu1 %vm8083_vm1, %v8082_v36 }
0x173c   : > { %7494 = vmatprep.subr.mxu1 %v8082_v36 }
0x173e   : > { %7492 = vmatmul.mubr.msk.f32.vlgmr.msra.gmra.mrb[36].mxu1 %vm705_vm2, %v3583_v41 }
0x173f   : > { %7495 = vmatpush3.xpose.msk.msra.mxu1 %vm705_vm2, %v3663_v3  ;;  %7496 = vmatprep.mubr.msk.f32.mxu1 %vm8083_vm1, %v8082_v36 }
0x1740   : > { %7504 = vmatprep.subr.mxu1 %v8082_v36 }
0x1742   : > { %7497 = vmatmul.mubr.msk.f32.vlgmr.msra.gmra.mrb[38].mxu1 %vm705_vm2, %v3661_v5 }
0x1743   : > { %7506 = vmatprep.mubr.msk.f32.mxu1 %vm8083_vm1, %v8082_v36 }
0x1761   : > { %v3248_v7 = vpop.xlane.xlu1 %3247 }
0x1762   : > { %v3252_v9 = vsub.f32 %v3165_v60, %v3248_v7 }
0x1764   : > { %v3254_v10 = vmul.f32 1.442695, %v3252_v9 }
0x1766   : > { %7938 = vpow2.f32 %v3254_v10 }
0x1770   : > { %v7939_v11 = vpop.eup %7938 }
0x1771   : > { %v3258_v12 = vsel %vm705_vm2, %v7939_v11, 0.0 }
0x1772   : > { %3259 = vadd.xlane.f32.xlu0 %v3258_v12 }
0x1788   : > { %3268 = vrot.lane.b32.xlu0 %v8563_v4, %s9213_s23 }
0x178c   : > { %3836 = vrot.lane.b32.xlu0 %v8561_v2, %s9215_s29 }
0x1790   : > { %3997 = vrot.lane.b32.xlu0 %v8563_v4, %s9216_s27 }
0x1794   : > { %4075 = vrot.lane.b32.xlu0 %v8561_v2, %s9216_s27 }
0x1798   : > { %3995 = vrot.lane.b32.xlu0 %v8571_v6, %s9217_s18 }
0x17ff   : > { %v3260_v13 = vpop.xlane.xlu0 %3259 }
0x1800   : > { %7940 = vrcp.f32 %v3260_v13 }
0x1803   : > { %v3269_v15 = vpop.permute.xlu0 %3268 }
0x1804   : > { %7470 = vmatpush3.msra.mxu0 %v3269_v15 }
0x1805   : > { %7479 = vmatprep.subr.mxu0 %v6944_v24 }
0x1807   : > { %v3837_v16 = vpop.permute.xlu0 %3836 }
0x1808   : > { %7505 = vmatpush3.msra.mxu1 %v3837_v16 }
0x1809   : > { %7514 = vmatprep.subr.mxu1 %v8082_v36 }
0x180a   : > { %v7941_v17 = vpop.eup %7940 }
0x180b   : > { %v3266_v18 = vmul.f32 %v7941_v17, %v7939_v11  ;;  %v3998_v51 = vpop.permute.xlu0 %3997 }
0x180d   : > { %7472 = vmatmul.mubr.msk.f32.vlgmr.msra.gmra.mrb[20].mxu0 %vm705_vm2, %v3266_v18  ;;  %v3416_v45 = vpop.f32.mrb[34].mxu1 }
0x180e   : > { %v7478_v19 = vpop.f32.mrb[35].mxu1  ;;  %7480 = vmatpush3.msra.mxu0 %v6944_v24 }
0x180f   : > { %7484 = vmatprep.subr.mxu0 %v6943_v25  ;;  %v4076_v48 = vpop.permute.xlu0 %4075 }
0x1811   : > { %v3656_v21 = vpop.f32.mrb[36].mxu1 }
0x1812   : > { %v3657_v22 = vadd.f32 %v8642_v59, %v3656_v21  ;;  %v7493_v53 = vpop.f32.mrb[37].mxu1 }
0x1813   : > { %v3996_v55 = vpop.permute.xlu0 %3995 }
0x1814   : > { %v3738_v6 = vsel %vm705_vm2, %v3657_v22, -inf }
0x1815   : > { %3739 = vmax.xlane.f32.xlu1 %v3738_v6  ;;  %v3734_v20 = vpop.f32.mrb[38].mxu1 }
0x1816   : > { %v3735_v33 = vadd.f32 %v8675_v35, %v3734_v20  ;;  %v7498_v23 = vpop.f32.mrb[39].mxu1 }
0x1817   : > { %v6946_v23 = vld [vmem:[%s9138_s6 + $0x38] sm:$0xff] }
0x1818   : > { %v3741_v14 = vsel %vm705_vm2, %v3735_v33, -inf }
0x1819   : > { %3742 = vmax.xlane.f32.xlu1 %v3741_v14 }
0x18a2   : > { %v3740_v26 = vpop.xlane.xlu1 %3739 }
0x18a3   : > { %v3744_v27 = vsub.f32 %v3657_v22, %v3740_v26  ;;  %v6980_v26 = vld [vmem:[%s9205_s7 + $0x1] ss:$0 sm:$0xff] }
0x18a5   : > { %v3746_v28 = vmul.f32 1.442695, %v3744_v27 }
0x18a6   : > { %v3743_v29 = vpop.xlane.xlu1 %3742 }
0x18a7   : > { %7942 = vpow2.f32 %v3746_v28  ;;  %v3745_v30 = vsub.f32 %v3735_v33, %v3743_v29 }
0x18a9   : > { %v3748_v31 = vmul.f32 1.442695, %v3745_v30 }
0x18ab   : > { %7944 = vpow2.f32 %v3748_v31 }
0x18b1   : > { %v7943_v32 = vpop.eup %7942 }
0x18b2   : > { %v3750_v34 = vsel %vm705_vm2, %v7943_v32, 0.0 }
0x18b3   : > { %3751 = vadd.xlane.f32.xlu1 %v3750_v34 }
0x18b5   : > { %v7945_v37 = vpop.eup %7944 }
0x18b6   : > { %v3753_v40 = vsel %vm705_vm2, %v7945_v37, 0.0 }
0x18b7   : > { %3754 = vadd.xlane.f32.xlu1 %v3753_v40 }
0x18c8   : > { %3760 = vrot.lane.b32.xlu1 %v8563_v4, %s9215_s29 }
0x18cc   : > { %4073 = vrot.lane.b32.xlu1 %v8580_v8, %s9217_s18 }
0x18e0   : > { %v3340_v42 = vpop.f32.mrb[20].mxu0 }
0x18e1   : > { %v7473_v44 = vpop.f32.mrb[21].mxu0  ;;  %7481 = vmatprep.mubr.msk.f32.mxu0 %vm705_vm2, %v3340_v42 }
0x18e2   : > { %7482 = vmatmul.mubr.msk.f32.vlgmr.msra.gmra.mrb[22].mxu0 %vm705_vm2, %v3416_v45 }
0x18e3   : > { %7486 = vmatprep.mubr.msk.f32.mxu0 %vm705_vm2, %v8635_v49  ;;  %7485 = vmatpush3.msra.mxu0 %v6943_v25 }
0x18e4   : > { %7499 = vmatprep.subr.mxu0 %v8082_v36 }
0x18ea   : > { %7487 = vmatmul.mubr.msk.f32.vlgmr.msra.gmra.mrb[22].mxu0 %vm705_vm2, %v8625_v38 }
0x18eb   : > { %7501 = vmatprep.mubr.msk.f32.mxu0 %vm8083_vm1, %v8082_v36 }
0x1940   : > { %v3752_v46 = vpop.xlane.xlu1 %3751 }
0x1941   : > { %7946 = vrcp.f32 %v3752_v46 }
0x1944   : > { %v3755_v8 = vpop.xlane.xlu1 %3754 }
0x1945   : > { %7948 = vrcp.f32 %v3755_v8 }
0x1948   : > { %v3761_v50 = vpop.permute.xlu1 %3760 }
0x1949   : > { %7500 = vmatpush3.msra.mxu0 %v3761_v50 }
0x194a   : > { %7509 = vmatprep.subr.mxu0 %v6945_v47 }
0x194b   : > { %v7947_v49 = vpop.eup %7946 }
0x194c   : > { %v3758_v52 = vmul.f32 %v7947_v49, %v7943_v32  ;;  %v4074_v61 = vpop.permute.xlu1 %4073 }
0x194e   : > { %7502 = vmatmul.mubr.msk.f32.vlgmr.msra.gmra.mrb[24].mxu0 %vm705_vm2, %v3758_v52  ;;  %v6986_v52 = vld [vmem:[%s9142_s10 + $0x28] sm:$0xff] }
0x194f   : > { %v7949_v38 = vpop.eup %7948  ;;  %7510 = vmatpush3.msra.mxu0 %v6945_v47 }
0x1950   : > { %v3759_v54 = vmul.f32 %v7949_v38, %v7945_v37  ;;  %7519 = vmatprep.subr.mxu0 %v8082_v36 }
0x1952   : > { %7507 = vmatmul.mubr.msk.f32.vlgmr.msra.gmra.mrb[40].mxu1 %vm705_vm2, %v3759_v54  ;;  %v6988_v54 = vld [vmem:[%s9142_s10 + $0x38] sm:$0xff] }
0x1953   : > { %7515 = vmatpush3.xpose.msk.msra.mxu1 %vm705_vm2, %v3998_v51  ;;  %7516 = vmatprep.mubr.msk.f32.mxu1 %vm8083_vm1, %v8082_v36 }
0x1954   : > { %7524 = vmatprep.subr.mxu1 %v8082_v36 }
0x1956   : > { %7517 = vmatmul.mubr.msk.f32.vlgmr.msra.gmra.mrb[42].mxu1 %vm705_vm2, %v3996_v55 }
0x1957   : > { %7526 = vmatprep.mubr.msk.f32.mxu1 %vm8083_vm1, %v8082_v36 }
0x1a21   : > { %v3832_v56 = vpop.f32.mrb[24].mxu0 }
0x1a22   : > { %v7503_v57 = vpop.f32.mrb[25].mxu0  ;;  %7511 = vmatprep.mubr.msk.f32.mxu0 %vm705_vm2, %v3832_v56 }
0x1a25   : > { %v3908_v58 = vpop.f32.mrb[40].mxu1 }
0x1a26   : > { %v7508_v60 = vpop.f32.mrb[41].mxu1  ;;  %7512 = vmatmul.mubr.msk.f32.vlgmr.msra.gmra.mrb[22].mxu0 %vm705_vm2, %v3908_v58 }
0x1a27   : > { %7520 = vmatpush3.xpose.msk.msra.mxu0 %vm705_vm2, %v4076_v48  ;;  %7521 = vmatprep.mubr.msk.f32.mxu0 %vm8083_vm1, %v8082_v36  ;;  %v6987_v48 = vld [vmem:[%s9142_s10 + $0x30] sm:$0xff] }
0x1a28   : > { %7529 = vmatprep.subr.mxu0 %v8082_v36  ;;  %v7754_v55 = vpack.c.bf16 %v6988_v54, %v6987_v48 }
0x1a29   : > { %v4069_v62 = vpop.f32.mrb[42].mxu1 }
0x1a2a   : > { %v4070_v43 = vadd.f32 %v8642_v59, %v4069_v62  ;;  %v7518_v39 = vpop.f32.mrb[43].mxu1  ;;  %7522 = vmatmul.mubr.msk.f32.vlgmr.msra.gmra.mrb[26].mxu0 %vm705_vm2, %v4074_v61 }
0x1a2b   : > { %7531 = vmatprep.mubr.msk.f32.mxu0 %vm8083_vm1, %v8082_v36  ;;  %v6983_v39 = vld [vmem:[%s9206_s8 + $0x1] ss:$0 sm:$0xff] }
0x1a2c   : > { %v4151_v1 = vsel %vm705_vm2, %v4070_v43, -inf }
0x1a2d   : > { %4152 = vmax.xlane.f32.xlu0 %v4151_v1 }
0x1aba   : > { %v4153_v41 = vpop.xlane.xlu0 %4152 }
0x1abb   : > { %v4157_v3 = vsub.f32 %v4070_v43, %v4153_v41 }
0x1abd   : > { %v4159_v5 = vmul.f32 1.442695, %v4157_v3 }
0x1abf   : > { %7950 = vpow2.f32 %v4159_v5  ;;  %v6984_v5 = vld [vmem:[%s9207_s9 + $0x1] ss:$0 sm:$0xff]  ;;  %s9225_s9 = sld [smem:[#allocation21_spill]] }
0x1ac9   : > { %v7951_v7 = vpop.eup %7950 }
0x1aca   : > { %v4163_v9 = vsel %vm705_vm2, %v7951_v7, 0.0 }
0x1acb   : > { %4164 = vadd.xlane.f32.xlu0 %v4163_v9 }
0x1afd   : > { %v4147_v10 = vpop.f32.mrb[26].mxu0 }
0x1afe   : > { %v4148_v11 = vadd.f32 %v8675_v35, %v4147_v10  ;;  %v7523_v12 = vpop.f32.mrb[27].mxu0 }
0x1aff   : > { %v6993_v12 = vld [vmem:[%s9144_s12 + $0x40] sm:$0xff] }
0x1b00   : > { %v4154_v13 = vsel %vm705_vm2, %v4148_v11, -inf }
0x1b01   : > { %4155 = vmax.xlane.f32.xlu1 %v4154_v13  ;;  %v6994_v13 = vld [vmem:[%s9144_s12 + $0x48] sm:$0xff] }
0x1b12   : > { %4249 = vrot.lane.b32.xlu1 %v8561_v2, %s9218_s24 }
0x1b58   : > { %v4165_v21 = vpop.xlane.xlu0 %4164 }
0x1b8e   : > { %v4156_v15 = vpop.xlane.xlu1 %4155 }
0x1b8f   : > { %v4158_v16 = vsub.f32 %v4148_v11, %v4156_v15  ;;  %v7758_v15 = vpack.c.bf16 %v6994_v13, %v6993_v12 }
0x1b91   : > { %v4161_v17 = vmul.f32 1.442695, %v4158_v16  ;;  %v6995_v16 = vld [vmem:[%s9144_s12 + $0x50] sm:$0xff] }
0x1b92   : > { %v4250_v18 = vpop.permute.xlu1 %4249 }
0x1b93   : > { %7952 = vpow2.f32 %v4161_v17  ;;  %7530 = vmatpush3.msra.mxu0 %v4250_v18  ;;  %v6996_v17 = vld [vmem:[%s9144_s12 + $0x58] sm:$0xff] }
0x1b94   : > { %7954 = vrcp.f32 %v4165_v21  ;;  %7534 = vmatprep.subr.mxu0 %v6946_v23  ;;  %v7762_v18 = vpack.c.bf16 %v6996_v17, %v6995_v16 }
0x1b9d   : > { %v7953_v45 = vpop.eup %7952 }
0x1b9e   : > { %v4166_v19 = vsel %vm705_vm2, %v7953_v45, 0.0  ;;  %v7955_v53 = vpop.eup %7954 }
0x1b9f   : > { %4167 = vadd.xlane.f32.xlu0 %v4166_v19  ;;  %v4171_v6 = vmul.f32 %v7955_v53, %v7951_v7  ;;  %v6998_v19 = vld [vmem:[%s9144_s12 + $0x68] sm:$0xff]  ;;  %v7000_v53 = vld [vmem:[%s9144_s12 + $0x78] sm:$0xff] }
0x1bb5   : > { %4173 = vrot.lane.b32.xlu0 %v8563_v4, %s9218_s24 }
0x1c2c   : > { %v4168_v22 = vpop.xlane.xlu0 %4167 }
0x1c2d   : > { %7956 = vrcp.f32 %v4168_v22  ;;  %v6999_v22 = vld [vmem:[%s9144_s12 + $0x70] sm:$0xff] }
0x1c30   : > { %v4174_v2 = vpop.permute.xlu0 %4173 }
0x1c31   : > { %7525 = vmatpush3.msra.mxu1 %v4174_v2  ;;  %v6990_v2 = vld [vmem:[%s9143_s11 + $0x1] ss:$0 sm:$0xff] }
0x1c32   : > { %7527 = vmatmul.mubr.msk.f32.vlgmr.msra.gmra.mrb[44].mxu1 %vm705_vm2, %v4171_v6  ;;  %v7770_v6 = vpack.c.bf16 %v7000_v53, %v6999_v22  ;;  %v7008_v53 = vld [vmem:[%s9147_s15 + $0x1] ss:$0 sm:$0xff] }
0x1c37   : > { %v7957_v20 = vpop.eup %7956 }
0x1c38   : > { %v4172_v33 = vmul.f32 %v7957_v20, %v7953_v45  ;;  %v6997_v45 = vld [vmem:[%s9144_s12 + $0x60] sm:$0xff] }
0x1c39   : > { %v7766_v21 = vpack.c.bf16 %v6998_v19, %v6997_v45  ;;  %v7007_v45 = vld [vmem:[%s9146_s14 + $0x1] ss:$0 sm:$0xff] }
0x1c3a   : > { %7532 = vmatmul.mubr.msk.f32.vlgmr.msra.gmra.mrb[28].mxu0 %vm705_vm2, %v4172_v33 }
0x1c3b   : > { %7535 = vmatpush3.msra.mxu0 %v6946_v23 }
0x1c3c   : > { %7759 = vmatprep.subr.bf16.mxu0 %v7758_v15 }
0x1d05   : > { %v4245_v4 = vpop.f32.mrb[44].mxu1 }
0x1d06   : > { %v7528_v14 = vpop.f32.mrb[45].mxu1  ;;  %7536 = vmatprep.mubr.msk.f32.mxu0 %vm705_vm2, %v4245_v4 }
0x1d0d   : > { %v4321_v24 = vpop.f32.mrb[28].mxu0 }
0x1d0e   : > { %v7533_v25 = vpop.f32.mrb[29].mxu0  ;;  %7537 = vmatmul.mubr.msk.f32.vlgmr.msra.gmra.mrb[22].mxu0 %vm705_vm2, %v4321_v24 }
0x1d0f   : > { %7761 = vmatpush3.bf16.msra.mxu0 %v7758_v15 }
0x1d10   : > { %7763 = vmatprep.subr.bf16.mxu0 %v7762_v18 }
0x1d13   : > { %7765 = vmatpush3.bf16.msra.mxu0 %v7762_v18 }
0x1d14   : > { %7767 = vmatprep.subr.bf16.mxu0 %v7766_v21 }
0x1d17   : > { %7769 = vmatpush3.bf16.msra.mxu0 %v7766_v21 }
0x1d18   : > { %7771 = vmatprep.subr.bf16.mxu0 %v7770_v6 }
0x1d1b   : > { %7773 = vmatpush3.bf16.msra.mxu0 %v7770_v6 }
0x1d1c   : > { %7590 = vmatprep.subr.mxu0 %v8082_v36 }
0x1de1   : > { %v7538_v27 = vpop.f32.mrb[22].mxu0 }
0x1de2   : > { %v4417_v28 = vadd.f32 %v7538_v27, %v6980_v26  ;;  %v4397_v29 = vpop.f32.mrb[23].mxu0 }
0x1de3   : > { %v4416_v30 = vadd.f32 %v6980_v26, %v4397_v29 }
0x1de4   : > { %v4419_v31 = vadd.f32 %v4417_v28, %v8550_v0 }
0x1de5   : > { %v4418_v32 = vadd.f32 %v4416_v30, %v8548_v63  ;;  %v6985_v63 = vld [vmem:[%s9142_s10 + $0x20] sm:$0xff] }
0x1de6   : > { %v4427_v34 = vsel %vm546_vm0, %v4419_v31, 0.0  ;;  %v7750_v38 = vpack.c.bf16 %v6986_v52, %v6985_v63 }
0x1de7   : > { %4428 = vadd.xlane.f32.xlu0 %v4427_v34  ;;  %v4424_v37 = vsel %vm546_vm0, %v4418_v32, 0.0 }
0x1de8   : > { %4425 = vadd.xlane.f32.xlu1 %v4424_v37  ;;  %7751 = vmatprep.subr.bf16.mxu1 %v7750_v38 }
0x1de9   : > { %7753 = vmatpush3.bf16.msra.mxu1 %v7750_v38 }
0x1dea   : > { %7755 = vmatprep.subr.bf16.mxu1 %v7754_v55 }
0x1ded   : > { %7757 = vmatpush3.bf16.msra.mxu1 %v7754_v55 }
0x1e74   : > { %v4429_v40 = vpop.xlane.xlu0 %4428 }
0x1e75   : > { %v4431_v42 = vmul.f32 0.03125, %v4429_v40  ;;  %v4426_v44 = vpop.xlane.xlu1 %4425 }
0x1e76   : > { %v4430_v46 = vmul.f32 0.03125, %v4426_v44 }
0x1e77   : > { %v4433_v8 = vsub.f32 %v4419_v31, %v4431_v42 }
0x1e78   : > { %v4432_v47 = vsub.f32 %v4418_v32, %v4430_v46 }
0x1e79   : > { %v4435_v50 = vmul.f32 %v4433_v8, %v4433_v8 }
0x1e7a   : > { %v4434_v51 = vmul.f32 %v4432_v47, %v4432_v47 }
0x1e7b   : > { %v4439_v49 = vsel %vm546_vm0, %v4435_v50, 0.0  ;;  %v7002_v50 = vld [vmem:[%s9145_s13 + $0x1] ss:$0 sm:$0xff] }
0x1e7c   : > { %4440 = vadd.xlane.f32.xlu1 %v4439_v49  ;;  %v4436_v0 = vsel %vm546_vm0, %v4434_v51, 0.0 }
0x1e7d   : > { %4437 = vadd.xlane.f32.xlu0 %v4436_v0 }
0x1f09   : > { %v4441_v56 = vpop.xlane.xlu1 %4440 }
0x1f0a   : > { %v4443_v57 = vmul.f32 0.03125, %v4441_v56  ;;  %v4438_v58 = vpop.xlane.xlu0 %4437 }
0x1f0b   : > { %v4442_v60 = vmul.f32 0.03125, %v4438_v58 }
0x1f0c   : > { %v4445_v61 = vadd.f32 1e-12, %v4443_v57 }
0x1f0d   : > { %v4444_v62 = vadd.f32 1e-12, %v4442_v60 }
0x1f0e   : > { %7958 = vrsqrt.f32 %v4445_v61 }
0x1f0f   : > { %7960 = vrsqrt.f32 %v4444_v62 }
0x1f18   : > { %v7959_v43 = vpop.eup %7958 }
0x1f19   : > { %v7961_v1 = vpop.eup %7960  ;;  %v4449_v41 = vmul.f32 %v7959_v43, %v4433_v8 }
0x1f1a   : > { %v4448_v3 = vmul.f32 %v7961_v1, %v4432_v47 }
0x1f1b   : > { %v4457_v7 = vmul.f32 %v6983_v39, %v4449_v41  ;;  %v7009_v41 = vld [vmem:[%s9136_s4 + $0x40] sm:$0xff] }
0x1f1c   : > { %v4456_v9 = vmul.f32 %v6983_v39, %v4448_v3  ;;  %v7010_v3 = vld [vmem:[%s9136_s4 + $0x48] sm:$0xff] }
0x1f1d   : > { %v4465_v11 = vadd.f32 %v6984_v5, %v4457_v7  ;;  %v7011_v7 = vld [vmem:[%s9136_s4 + $0x50] sm:$0xff] }
0x1f1e   : > { %v4464_v10 = vadd.f32 %v6984_v5, %v4456_v9  ;;  %v7774_v5 = vpack.c.bf16 %v7010_v3, %v7009_v41  ;;  %v7012_v9 = vld [vmem:[%s9136_s4 + $0x58] sm:$0xff] }
0x1f20   : > { %7547 = vmatprep.mubr.msk.f32.mxu1 %vm546_vm0, %v4464_v10  ;;  %7775 = vmatprep.subr.bf16.mxu1 %v7774_v5 }
0x1f21   : > { %7548 = vmatmul.mubr.msk.f32.vlgmr.msra.gmra.mrb[46].mxu1 %vm546_vm0, %v4465_v11 }
0x1f22   : > { %7777 = vmatpush3.bf16.msra.mxu1 %v7774_v5 }
0x1ff4   : > { %v7549_v20 = vpop.f32.mrb[46].mxu1 }
0x1ff5   : > { %v4557_v33 = vadd.f32 %v7549_v20, %v6990_v2  ;;  %v4551_v23 = vpop.f32.mrb[47].mxu1 }
0x1ff6   : > { %v4552_v4 = vadd.f32 %v6990_v2, %v4551_v23  ;;  %v7014_v23 = vld [vmem:[%s9137_s5 + $0x2] ss:$0 sm:$0xff] }
0x1ff7   : > { %v4563_v14 = vmul.f32 0.044715, %v4557_v33  ;;  %v4561_v46 = vmul.f32 0.5, %v4557_v33 }
0x1ff8   : > { %v4562_v24 = vmul.f32 0.044715, %v4552_v4  ;;  %v4560_v42 = vmul.f32 0.5, %v4552_v4 }
0x1ff9   : > { %v4565_v25 = vmul.f32 %v4563_v14, %v4557_v33 }
0x1ffa   : > { %v4564_v26 = vmul.f32 %v4562_v24, %v4552_v4 }
0x1ffb   : > { %v4567_v27 = vmul.f32 %v4565_v25, %v4557_v33 }
0x1ffc   : > { %v4566_v28 = vmul.f32 %v4564_v26, %v4552_v4 }
0x1ffd   : > { %v4569_v29 = vadd.f32 %v4567_v27, %v4557_v33 }
0x1ffe   : > { %v4568_v30 = vadd.f32 %v4566_v28, %v4552_v4 }
0x1fff   : > { %v4571_v31 = vmul.f32 0.7978846, %v4569_v29 }
0x2000   : > { %v4570_v32 = vmul.f32 0.7978846, %v4568_v30 }
0x2001   : > { %7962 = vtanh.f32 %v4571_v31 }
0x2002   : > { %7964 = vtanh.f32 %v4570_v32 }
0x200b   : > { %v7963_v34 = vpop.eup %7962 }
0x200c   : > { %v7965_v37 = vpop.eup %7964  ;;  %v4575_v40 = vadd.f32 1.0, %v7963_v34 }
0x200d   : > { %v4574_v44 = vadd.f32 1.0, %v7965_v37 }
0x200e   : > { %v4577_v47 = vmul.f32 %v4575_v40, %v4561_v46 }
0x200f   : > { %v4576_v8 = vmul.f32 %v4574_v44, %v4560_v42 }
0x2011   : > { %7566 = vmatprep.mubr.msk.f32.mxu0 %vm2531_vm3, %v4576_v8 }
0x2012   : > { %7567 = vmatmul.mubr.msk.f32.vlgmr.msra.gmra.mrb[30].mxu0 %vm2531_vm3, %v4577_v47 }
0x2013   : > { %7592 = vmatprep.mubr.msk.f32.mxu0 %vm8083_vm1, %v8082_v36 }
0x20e5   : > { %v7568_v51 = vpop.f32.mrb[30].mxu0 }
0x20e6   : > { %v4673_v49 = vadd.f32 %v7568_v51, %v7002_v50  ;;  %v4667_v0 = vpop.f32.mrb[31].mxu0 }
0x20e7   : > { %v4668_v63 = vadd.f32 %v7002_v50, %v4667_v0 }
0x20e8   : > { %v4677_v52 = vadd.f32 %v4673_v49, %v4465_v11 }
0x20e9   : > { %v4676_v38 = vadd.f32 %v4668_v63, %v4464_v10  ;;  %v7778_v10 = vpack.c.bf16 %v7012_v9, %v7011_v7 }
0x20ea   : > { %v4685_v48 = vsel %vm546_vm0, %v4677_v52, 0.0 }
0x20eb   : > { %4686 = vadd.xlane.f32.xlu1 %v4685_v48  ;;  %v4682_v54 = vsel %vm546_vm0, %v4676_v38, 0.0  ;;  %7779 = vmatprep.subr.bf16.mxu1 %v7778_v10 }
0x20ec   : > { %4683 = vadd.xlane.f32.xlu0 %v4682_v54  ;;  %7781 = vmatpush3.bf16.msra.mxu1 %v7778_v10 }
0x20ed   : > { %7580 = vmatprep.subr.mxu1 %v8082_v36 }
0x2178   : > { %v4687_v55 = vpop.xlane.xlu1 %4686 }
0x2179   : > { %v4689_v56 = vmul.f32 0.03125, %v4687_v55  ;;  %v4684_v57 = vpop.xlane.xlu0 %4683 }
0x217a   : > { %v4688_v58 = vmul.f32 0.03125, %v4684_v57 }
0x217b   : > { %v4691_v60 = vsub.f32 %v4677_v52, %v4689_v56 }
0x217c   : > { %v4690_v61 = vsub.f32 %v4676_v38, %v4688_v58 }
0x217d   : > { %v4693_v62 = vmul.f32 %v4691_v60, %v4691_v60 }
0x217e   : > { %v4692_v43 = vmul.f32 %v4690_v61, %v4690_v61 }
0x217f   : > { %v4697_v39 = vsel %vm546_vm0, %v4693_v62, 0.0 }
0x2180   : > { %4698 = vadd.xlane.f32.xlu1 %v4697_v39  ;;  %v4694_v1 = vsel %vm546_vm0, %v4692_v43, 0.0 }
0x2181   : > { %4695 = vadd.xlane.f32.xlu0 %v4694_v1 }
0x220d   : > { %v4699_v11 = vpop.xlane.xlu1 %4698 }
0x220e   : > { %v4701_v12 = vmul.f32 0.03125, %v4699_v11  ;;  %v4696_v13 = vpop.xlane.xlu0 %4695 }
0x220f   : > { %v4700_v15 = vmul.f32 0.03125, %v4696_v13 }
0x2210   : > { %v4703_v16 = vadd.f32 1e-12, %v4701_v12 }
0x2211   : > { %v4702_v17 = vadd.f32 1e-12, %v4700_v15 }
0x2212   : > { %7966 = vrsqrt.f32 %v4703_v16 }
0x2213   : > { %7968 = vrsqrt.f32 %v4702_v17 }
0x221c   : > { %v7967_v18 = vpop.eup %7966 }
0x221d   : > { %v7969_v19 = vpop.eup %7968  ;;  %v4707_v21 = vmul.f32 %v7967_v18, %v4691_v60 }
0x221e   : > { %v4706_v22 = vmul.f32 %v7969_v19, %v4690_v61 }
0x221f   : > { %v4715_v6 = vmul.f32 %v7007_v45, %v4707_v21 }
0x2220   : > { %v4714_v2 = vmul.f32 %v7007_v45, %v4706_v22 }
0x2221   : > { %v8828_v33 = vadd.f32 %v7008_v53, %v4715_v6 }
0x2222   : > { %v8826_v20 = vadd.f32 %v7008_v53, %v4714_v2 }
0x2224   : > { %7577 = vmatprep.mubr.msk.f32.mxu1 %vm546_vm0, %v8826_v20 }
0x2225   : > { %7578 = vmatmul.mubr.msk.f32.vlgmr.msra.gmra.mrb[48].mxu1 %vm546_vm0, %v8828_v33 }
0x2226   : > { %7582 = vmatprep.mubr.msk.f32.mxu1 %vm8083_vm1, %v8082_v36 }
0x22f8   : > { %v7579_v4 = vpop.f32.mrb[48].mxu1 }
0x22f9   : > { %v8839_v14 = vadd.f32 %v7579_v4, %v7014_v23  ;;  %v4809_v24 = vpop.f32.mrb[49].mxu1 }
0x22fa   : > { %v8841_v25 = vadd.f32 %v7014_v23, %v4809_v24 }
0x22fb   : > { %4904 = vrot.lane.b32.xlu1 %v8839_v14, %s9208_s20  ;;  %v8858_v29 = vmul.f32 0.35355338, %v8839_v14 }
0x22fc   : > { %4826 = vrot.lane.b32.xlu0 %v8841_v25, %s9208_s20  ;;  %v8849_v27 = vmul.f32 0.35355338, %v8841_v25 }
0x236d   : > { %v4905_v28 = vpop.permute.xlu1 %4904 }
0x236e   : > { %v4827_v26 = vpop.permute.xlu0 %4826 }
0x236f   : > { %7581 = vmatpush3.xpose.msk.msra.mxu1 %vm705_vm2, %v4827_v26 }
0x2370   : > { %7585 = vmatprep.subr.mxu1 %v8082_v36 }
0x2372   : > { %7583 = vmatmul.mubr.msk.f32.vlgmr.msra.gmra.mrb[50].mxu1 %vm705_vm2, %v8849_v27 }
0x2373   : > { %7586 = vmatpush3.xpose.msk.msra.mxu1 %vm705_vm2, %v4905_v28  ;;  %7587 = vmatprep.mubr.msk.f32.mxu1 %vm8083_vm1, %v8082_v36 }
0x2374   : > { %7595 = vmatprep.subr.mxu1 %v8082_v36 }
0x2376   : > { %7588 = vmatmul.mubr.msk.f32.vlgmr.msra.gmra.mrb[52].mxu1 %vm705_vm2, %v8858_v29 }
0x2377   : > { %7597 = vmatprep.mubr.msk.f32.mxu1 %vm8083_vm1, %v8082_v36 }
0x2445   : > { %v4899_v30 = vpop.f32.mrb[50].mxu1 }
0x2446   : > { %v7584_v31 = vpop.f32.mrb[51].mxu1  ;;  %v4900_v42 = vadd.f32 %v8642_v59, %v4899_v30 }
0x2448   : > { %v4981_v44 = vsel %vm705_vm2, %v4900_v42, -inf }
0x2449   : > { %v4977_v32 = vpop.f32.mrb[52].mxu1 }
0x244a   : > { %v4978_v34 = vadd.f32 %v8675_v35, %v4977_v32  ;;  %v7589_v37 = vpop.f32.mrb[53].mxu1 }
0x244c   : > { %v4984_v40 = vsel %vm705_vm2, %v4978_v34, -inf }
0x244d   : > { %4985 = vmax.xlane.f32.xlu1 %v4984_v40 }
0x245e   : > { %5235 = vrot.lane.b32.xlu1 %v8839_v14, %s9209_s30 }
0x2462   : > { %5233 = vrot.lane.b32.xlu1 %v8858_v29, %s9210_s1 }
0x2486   : > { %4982 = vmax.xlane.f32.xlu1 %v4981_v44 }
0x2497   : > { %5157 = vrot.lane.b32.xlu1 %v8841_v25, %s9209_s30  ;;  %s9222_s30 = sld [smem:[#allocation6_spill]] }
0x249b   : > { %5155 = vrot.lane.b32.xlu1 %v8849_v27, %s9210_s1  ;;  %s9221_s1 = sld [smem:[#allocation20_spill]] }
0x249f   : > { %5649 = vrot.lane.b32.xlu1 %v8841_v25, %s9211_s2 }
0x24da   : > { %v4986_v46 = vpop.xlane.xlu1 %4985 }
0x24db   : > { %v4988_v8 = vsub.f32 %v4978_v34, %v4986_v46 }
0x24dd   : > { %v4991_v47 = vmul.f32 1.442695, %v4988_v8 }
0x24de   : > { %v5236_v49 = vpop.permute.xlu1 %5235 }
0x24df   : > { %7970 = vpow2.f32 %v4991_v47 }
0x24e2   : > { %v5234_v0 = vpop.permute.xlu1 %5233 }
0x24e9   : > { %v7971_v50 = vpop.eup %7970 }
0x24ea   : > { %v4996_v51 = vsel %vm705_vm2, %v7971_v50, 0.0 }
0x24eb   : > { %4997 = vadd.xlane.f32.xlu0 %v4996_v51 }
0x2501   : > { %5079 = vrot.lane.b32.xlu0 %v8839_v14, %s9212_s28 }
0x2513   : > { %v4983_v63 = vpop.xlane.xlu1 %4982 }
0x2514   : > { %v4987_v52 = vsub.f32 %v4900_v42, %v4983_v63 }
0x2516   : > { %v4989_v38 = vmul.f32 1.442695, %v4987_v52 }
0x2517   : > { %v5158_v43 = vpop.permute.xlu1 %5157 }
0x2518   : > { %7972 = vpow2.f32 %v4989_v38 }
0x251b   : > { %v5156_v1 = vpop.permute.xlu1 %5155 }
0x251f   : > { %v5650_v6 = vpop.permute.xlu1 %5649 }
0x2522   : > { %v7973_v48 = vpop.eup %7972 }
0x2523   : > { %v4993_v54 = vsel %vm705_vm2, %v7973_v48, 0.0 }
0x2524   : > { %4994 = vadd.xlane.f32.xlu0 %v4993_v54  ;;  %v7018_v54 = vld [vmem:[%s9138_s6 + $0x48] sm:$0xff] }
0x253a   : > { %5003 = vrot.lane.b32.xlu0 %v8841_v25, %s9212_s28 }
0x2578   : > { %v4998_v55 = vpop.xlane.xlu0 %4997 }
0x2579   : > { %7974 = vrcp.f32 %v4998_v55 }
0x257c   : > { %v5080_v56 = vpop.permute.xlu0 %5079 }
0x257d   : > { %7596 = vmatpush3.msra.mxu1 %v5080_v56 }
0x257e   : > { %7605 = vmatprep.subr.mxu1 %v8082_v36 }
0x2583   : > { %v7975_v57 = vpop.eup %7974 }
0x2584   : > { %v5002_v58 = vmul.f32 %v7975_v57, %v7971_v50 }
0x2586   : > { %7598 = vmatmul.mubr.msk.f32.vlgmr.msra.gmra.mrb[54].mxu1 %vm705_vm2, %v5002_v58 }
0x2587   : > { %7606 = vmatpush3.xpose.msk.msra.mxu1 %vm705_vm2, %v5236_v49  ;;  %7607 = vmatprep.mubr.msk.f32.mxu1 %vm8083_vm1, %v8082_v36 }
0x2588   : > { %7615 = vmatprep.subr.mxu1 %v8082_v36 }
0x258a   : > { %7608 = vmatmul.mubr.msk.f32.vlgmr.msra.gmra.mrb[56].mxu1 %vm705_vm2, %v5234_v0 }
0x258b   : > { %7617 = vmatprep.mubr.msk.f32.mxu1 %vm8083_vm1, %v8082_v36 }
0x25b1   : > { %v4995_v60 = vpop.xlane.xlu0 %4994 }
0x25b2   : > { %7976 = vrcp.f32 %v4995_v60 }
0x25b5   : > { %v5004_v61 = vpop.permute.xlu0 %5003 }
0x25b6   : > { %7591 = vmatpush3.msra.mxu0 %v5004_v61 }
0x25b7   : > { %7600 = vmatprep.subr.mxu0 %v8082_v36 }
0x25bc   : > { %v7977_v62 = vpop.eup %7976 }
0x25bd   : > { %v5001_v39 = vmul.f32 %v7977_v62, %v7973_v48 }
0x25bf   : > { %7593 = vmatmul.mubr.msk.f32.vlgmr.msra.gmra.mrb[32].mxu0 %vm705_vm2, %v5001_v39 }
0x25c0   : > { %7601 = vmatpush3.xpose.msk.msra.mxu0 %vm705_vm2, %v5158_v43  ;;  %7602 = vmatprep.mubr.msk.f32.mxu0 %vm8083_vm1, %v8082_v36 }
0x25c1   : > { %7610 = vmatprep.subr.mxu0 %v8082_v36 }
0x25c3   : > { %7603 = vmatmul.mubr.msk.f32.vlgmr.msra.gmra.mrb[34].mxu0 %vm705_vm2, %v5156_v1 }
0x25c4   : > { %7612 = vmatprep.mubr.msk.f32.mxu0 %vm8083_vm1, %v8082_v36 }
0x2659   : > { %v8903_v41 = vpop.f32.mrb[54].mxu1 }
0x265a   : > { %v7599_v3 = vpop.f32.mrb[55].mxu1 }
0x265d   : > { %v5307_v5 = vpop.f32.mrb[56].mxu1 }
0x265e   : > { %v5308_v7 = vadd.f32 %v8675_v35, %v5307_v5  ;;  %v7609_v9 = vpop.f32.mrb[57].mxu1 }
0x2660   : > { %v5314_v10 = vsel %vm705_vm2, %v5308_v7, -inf }
0x2661   : > { %5315 = vmax.xlane.f32.xlu0 %v5314_v10 }
0x2677   : > { %5409 = vrot.lane.b32.xlu0 %v8839_v14, %s9213_s23 }
0x267b   : > { %5647 = vrot.lane.b32.xlu0 %v8849_v27, %s9214_s26 }
0x267f   : > { %5725 = vrot.lane.b32.xlu0 %v8858_v29, %s9214_s26 }
0x2692   : > { %v8913_v11 = vpop.f32.mrb[32].mxu0 }
0x2693   : > { %v7594_v12 = vpop.f32.mrb[33].mxu0 }
0x2696   : > { %v5229_v13 = vpop.f32.mrb[34].mxu0 }
0x2697   : > { %v7604_v15 = vpop.f32.mrb[35].mxu0  ;;  %v5230_v22 = vadd.f32 %v8642_v59, %v5229_v13 }
0x2699   : > { %v5311_v53 = vsel %vm705_vm2, %v5230_v22, -inf }
0x26ee   : > { %v5316_v16 = vpop.xlane.xlu0 %5315 }
0x26ef   : > { %v5318_v17 = vsub.f32 %v5308_v7, %v5316_v16  ;;  %v7019_v7 = vld [vmem:[%s9138_s6 + $0x50] sm:$0xff] }
0x26f1   : > { %v5321_v18 = vmul.f32 1.442695, %v5318_v17 }
0x26f2   : > { %v5410_v45 = vpop.permute.xlu0 %5409 }
0x26f3   : > { %7978 = vpow2.f32 %v5321_v18  ;;  %7616 = vmatpush3.msra.mxu1 %v5410_v45 }
0x26f4   : > { %7630 = vmatprep.subr.mxu1 %v8082_v36 }
0x26f6   : > { %v5648_v24 = vpop.permute.xlu0 %5647 }
0x26fa   : > { %v5726_v28 = vpop.permute.xlu0 %5725 }
0x26fd   : > { %v7979_v19 = vpop.eup %7978 }
0x26fe   : > { %v5326_v21 = vsel %vm705_vm2, %v7979_v19, 0.0 }
0x26ff   : > { %5327 = vadd.xlane.f32.xlu1 %v5326_v21 }
0x2710   : > { %5727 = vrot.lane.b32.xlu1 %v8839_v14, %s9211_s2  ;;  %s527_s2 = sand.u32 1, %s9222_s30  }
0x2711   : > { %s6881_s28 = sshll.u32 %s527_s2, 1  ;;  %s9091_s22 = scalar_lea.sflag [#allocation3], %s527_s2 }
0x2734   : > { %5312 = vmax.xlane.f32.xlu1 %v5311_v53  ;;  %v8016_v53 = vld [vmem:[%s8307_s19] ss:$0 sm:$0xff] }
0x278c   : > { %v5328_v2 = vpop.xlane.xlu1 %5327 }
0x278d   : > { %7980 = vrcp.f32 %v5328_v2 }
0x2790   : > { %v5728_v26 = vpop.permute.xlu1 %5727 }
0x2797   : > { %v7981_v23 = vpop.eup %7980 }
0x2798   : > { %v5332_v4 = vmul.f32 %v7981_v23, %v7979_v19 }
0x279a   : > { %7618 = vmatmul.mubr.msk.f32.vlgmr.msra.gmra.mrb[58].mxu1 %vm705_vm2, %v5332_v4 }
0x279b   : > { %7631 = vmatpush3.xpose.msk.msra.mxu1 %vm705_vm2, %v5650_v6  ;;  %7632 = vmatprep.mubr.msk.f32.mxu1 %vm8083_vm1, %v8082_v36 }
0x279c   : > { %7635 = vmatprep.subr.mxu1 %v8082_v36 }
0x279e   : > { %7633 = vmatmul.mubr.msk.f32.vlgmr.msra.gmra.mrb[60].mxu1 %vm705_vm2, %v5648_v24 }
0x279f   : > { %7636 = vmatpush3.xpose.msk.msra.mxu1 %vm705_vm2, %v5728_v26  ;;  %7637 = vmatprep.mubr.msk.f32.mxu1 %vm8083_vm1, %v8082_v36 }
0x27a0   : > { %7645 = vmatprep.subr.mxu1 %v8082_v36 }
0x27a2   : > { %7638 = vmatmul.mubr.msk.f32.vlgmr.msra.gmra.mrb[62].mxu1 %vm705_vm2, %v5726_v28 }
0x27a3   : > { %7647 = vmatprep.mubr.msk.f32.mxu1 %vm8083_vm1, %v8082_v36 }
0x27c1   : > { %v5313_v30 = vpop.xlane.xlu1 %5312 }
0x27c2   : > { %v5317_v31 = vsub.f32 %v5230_v22, %v5313_v30 }
0x27c4   : > { %v5319_v32 = vmul.f32 1.442695, %v5317_v31 }
0x27c6   : > { %7982 = vpow2.f32 %v5319_v32  ;;  %v8017_v32 = vld [vmem:[%s8307_s19 + $0x1] ss:$0 sm:$0xff] }
0x27d0   : > { %v7983_v34 = vpop.eup %7982 }
0x27d1   : > { %v5323_v37 = vsel %vm705_vm2, %v7983_v34, 0.0 }
0x27d2   : > { %5324 = vadd.xlane.f32.xlu0 %v5323_v37 }
0x27e8   : > { %5333 = vrot.lane.b32.xlu0 %v8841_v25, %s9213_s23 }
0x27ec   : > { %5901 = vrot.lane.b32.xlu0 %v8839_v14, %s9215_s29 }
0x27f0   : > { %6062 = vrot.lane.b32.xlu0 %v8841_v25, %s9216_s27 }
0x27f4   : > { %6140 = vrot.lane.b32.xlu0 %v8839_v14, %s9216_s27 }
0x27f8   : > { %6060 = vrot.lane.b32.xlu0 %v8849_v27, %s9217_s18 }
0x285f   : > { %v5325_v40 = vpop.xlane.xlu0 %5324 }
0x2860   : > { %7984 = vrcp.f32 %v5325_v40 }
0x2863   : > { %v5334_v42 = vpop.permute.xlu0 %5333 }
0x2864   : > { %7611 = vmatpush3.msra.mxu0 %v5334_v42 }
0x2865   : > { %7620 = vmatprep.subr.mxu0 %v7018_v54 }
0x2867   : > { %v5902_v44 = vpop.permute.xlu0 %5901 }
0x2868   : > { %7646 = vmatpush3.msra.mxu1 %v5902_v44 }
0x2869   : > { %7655 = vmatprep.subr.mxu1 %v8082_v36 }
0x286a   : > { %v7985_v46 = vpop.eup %7984 }
0x286b   : > { %v5331_v8 = vmul.f32 %v7985_v46, %v7983_v34  ;;  %v6063_v10 = vpop.permute.xlu0 %6062 }
0x286d   : > { %7613 = vmatmul.mubr.msk.f32.vlgmr.msra.gmra.mrb[36].mxu0 %vm705_vm2, %v5331_v8  ;;  %v5481_v47 = vpop.f32.mrb[58].mxu1 }
0x286e   : > { %v7619_v50 = vpop.f32.mrb[59].mxu1  ;;  %7621 = vmatpush3.msra.mxu0 %v7018_v54 }
0x286f   : > { %v6141_v13 = vpop.permute.xlu0 %6140 }
0x2871   : > { %v5721_v51 = vpop.f32.mrb[60].mxu1 }
0x2872   : > { %v5722_v49 = vadd.f32 %v8642_v59, %v5721_v51  ;;  %v7634_v0 = vpop.f32.mrb[61].mxu1  ;;  %v7017_v59 = vld [vmem:[%s9138_s6 + $0x40] sm:$0xff] }
0x2873   : > { %7625 = vmatprep.subr.mxu0 %v7017_v59  ;;  %v6061_v16 = vpop.permute.xlu0 %6060 }
0x2874   : > { %v5803_v27 = vsel %vm705_vm2, %v5722_v49, -inf }
0x2875   : > { %5804 = vmax.xlane.f32.xlu1 %v5803_v27  ;;  %v5799_v63 = vpop.f32.mrb[62].mxu1 }
0x2876   : > { %v5800_v52 = vadd.f32 %v8675_v35, %v5799_v63  ;;  %v7639_v38 = vpop.f32.mrb[63].mxu1 }
0x2878   : > { %v5806_v48 = vsel %vm705_vm2, %v5800_v52, -inf }
0x2879   : > { %5807 = vmax.xlane.f32.xlu1 %v5806_v48 }
0x2902   : > { %v5805_v55 = vpop.xlane.xlu1 %5804 }
0x2903   : > { %v5809_v56 = vsub.f32 %v5722_v49, %v5805_v55 }
0x2905   : > { %v5811_v57 = vmul.f32 1.442695, %v5809_v56 }
0x2906   : > { %v5808_v58 = vpop.xlane.xlu1 %5807 }
0x2907   : > { %7986 = vpow2.f32 %v5811_v57  ;;  %v5810_v35 = vsub.f32 %v5800_v52, %v5808_v58  ;;  %v7020_v52 = vld [vmem:[%s9138_s6 + $0x58] sm:$0xff] }
0x2909   : > { %v5813_v60 = vmul.f32 1.442695, %v5810_v35 }
0x290b   : > { %7988 = vpow2.f32 %v5813_v60 }
0x2911   : > { %v7987_v61 = vpop.eup %7986 }
0x2912   : > { %v5815_v62 = vsel %vm705_vm2, %v7987_v61, 0.0 }
0x2913   : > { %5816 = vadd.xlane.f32.xlu1 %v5815_v62 }
0x2915   : > { %v7989_v43 = vpop.eup %7988 }
0x2916   : > { %v5818_v39 = vsel %vm705_vm2, %v7989_v43, 0.0 }
0x2917   : > { %5819 = vadd.xlane.f32.xlu1 %v5818_v39 }
0x2928   : > { %5825 = vrot.lane.b32.xlu1 %v8841_v25, %s9215_s29 }
0x292c   : > { %6138 = vrot.lane.b32.xlu1 %v8858_v29, %s9217_s18  ;;  %s9219_s18 = sld [smem:[#allocation18_spill]] }
0x2940   : > { %v5405_v1 = vpop.f32.mrb[36].mxu0 }
0x2941   : > { %v7614_v3 = vpop.f32.mrb[37].mxu0  ;;  %7622 = vmatprep.mubr.msk.f32.mxu0 %vm705_vm2, %v5405_v1 }
0x2942   : > { %7623 = vmatmul.mubr.msk.f32.vlgmr.msra.gmra.mrb[38].mxu0 %vm705_vm2, %v5481_v47 }
0x2943   : > { %7627 = vmatprep.mubr.msk.f32.mxu0 %vm705_vm2, %v8913_v11  ;;  %7626 = vmatpush3.msra.mxu0 %v7017_v59  ;;  %v7054_v59 = vld [vmem:[%s9219_s18 + $0x2] ss:$0 sm:$0xff] }
0x2944   : > { %7640 = vmatprep.subr.mxu0 %v8082_v36 }
0x294a   : > { %7628 = vmatmul.mubr.msk.f32.vlgmr.msra.gmra.mrb[38].mxu0 %vm705_vm2, %v8903_v41 }
0x294b   : > { %7642 = vmatprep.mubr.msk.f32.mxu0 %vm8083_vm1, %v8082_v36 }
0x29a0   : > { %v5817_v5 = vpop.xlane.xlu1 %5816 }
0x29a1   : > { %7990 = vrcp.f32 %v5817_v5 }
0x29a4   : > { %v5820_v29 = vpop.xlane.xlu1 %5819 }
0x29a5   : > { %7992 = vrcp.f32 %v5820_v29 }
0x29a8   : > { %v5826_v9 = vpop.permute.xlu1 %5825 }
0x29a9   : > { %7641 = vmatpush3.msra.mxu0 %v5826_v9 }
0x29aa   : > { %7650 = vmatprep.subr.mxu0 %v7019_v7 }
0x29ab   : > { %v7991_v11 = vpop.eup %7990 }
0x29ac   : > { %v5823_v12 = vmul.f32 %v7991_v11, %v7987_v61  ;;  %v6139_v21 = vpop.permute.xlu1 %6138  ;;  %v7060_v11 = vld [vmem:[%s9142_s10 + $0x48] sm:$0xff] }
0x29ae   : > { %7643 = vmatmul.mubr.msk.f32.vlgmr.msra.gmra.mrb[40].mxu0 %vm705_vm2, %v5823_v12 }
0x29af   : > { %v7993_v41 = vpop.eup %7992  ;;  %7651 = vmatpush3.msra.mxu0 %v7019_v7 }
0x29b0   : > { %v5824_v15 = vmul.f32 %v7993_v41, %v7989_v43  ;;  %7660 = vmatprep.subr.mxu0 %v8082_v36  ;;  %v7061_v41 = vld [vmem:[%s9142_s10 + $0x50] sm:$0xff] }
0x29b2   : > { %7648 = vmatmul.mubr.msk.f32.vlgmr.msra.gmra.mrb[64].mxu1 %vm705_vm2, %v5824_v15 }
0x29b3   : > { %7656 = vmatpush3.xpose.msk.msra.mxu1 %vm705_vm2, %v6063_v10  ;;  %7657 = vmatprep.mubr.msk.f32.mxu1 %vm8083_vm1, %v8082_v36 }
0x29b4   : > { %7665 = vmatprep.subr.mxu1 %v8082_v36 }
0x29b6   : > { %7658 = vmatmul.mubr.msk.f32.vlgmr.msra.gmra.mrb[66].mxu1 %vm705_vm2, %v6061_v16 }
0x29b7   : > { %7667 = vmatprep.mubr.msk.f32.mxu1 %vm8083_vm1, %v8082_v36 }
0x2a81   : > { %v5897_v17 = vpop.f32.mrb[40].mxu0 }
0x2a82   : > { %v7644_v18 = vpop.f32.mrb[41].mxu0  ;;  %7652 = vmatprep.mubr.msk.f32.mxu0 %vm705_vm2, %v5897_v17 }
0x2a85   : > { %v5973_v45 = vpop.f32.mrb[64].mxu1 }
0x2a86   : > { %v7649_v19 = vpop.f32.mrb[65].mxu1  ;;  %7653 = vmatmul.mubr.msk.f32.vlgmr.msra.gmra.mrb[38].mxu0 %vm705_vm2, %v5973_v45 }
0x2a87   : > { %7661 = vmatpush3.xpose.msk.msra.mxu0 %vm705_vm2, %v6141_v13  ;;  %7662 = vmatprep.mubr.msk.f32.mxu0 %vm8083_vm1, %v8082_v36  ;;  %v7062_v13 = vld [vmem:[%s9142_s10 + $0x58] sm:$0xff] }
0x2a88   : > { %7670 = vmatprep.subr.mxu0 %v8082_v36  ;;  %v7786_v15 = vpack.c.bf16 %v7062_v13, %v7061_v41 }
0x2a89   : > { %v6134_v22 = vpop.f32.mrb[66].mxu1 }
0x2a8a   : > { %v6135_v6 = vadd.f32 %v8016_v53, %v6134_v22  ;;  %v7659_v2 = vpop.f32.mrb[67].mxu1  ;;  %7663 = vmatmul.mubr.msk.f32.vlgmr.msra.gmra.mrb[42].mxu0 %vm705_vm2, %v6139_v21  ;;  %v7057_v53 = vld [vmem:[%s9220_s21 + $0x2] ss:$0 sm:$0xff]  ;;  %s8024_s21 = scalar_lea.vmem %s8023_s3, 64 }
0x2a8b   : > { %7672 = vmatprep.mubr.msk.f32.mxu0 %vm8083_vm1, %v8082_v36 }
0x2a8c   : > { %v6216_v23 = vsel %vm705_vm2, %v6135_v6, -inf }
0x2a8d   : > { %6217 = vmax.xlane.f32.xlu0 %v6216_v23 }
0x2b1a   : > { %v6218_v4 = vpop.xlane.xlu0 %6217 }
0x2b1b   : > { %v6222_v24 = vsub.f32 %v6135_v6, %v6218_v4  ;;  %v7058_v4 = vld [vmem:[%s9221_s1 + $0x2] ss:$0 sm:$0xff]  ;;  %s9223_s1 = sld [smem:[#allocation9_spill]] }
0x2b1d   : > { %v6224_v26 = vmul.f32 1.442695, %v6222_v24 }
0x2b1f   : > { %7994 = vpow2.f32 %v6224_v26 }
0x2b21   : > { %s7088_s18 = sshll.u32 %s9223_s1, 5 }
0x2b22   : > { %s9087_s7 = scalar_lea.hbm %s9225_s9, %s7088_s18 }
0x2b29   : > { %v7995_v28 = vpop.eup %7994 }
0x2b2a   : > { %v6228_v30 = vsel %vm705_vm2, %v7995_v28, 0.0 }
0x2b2b   : > { %6229 = vadd.xlane.f32.xlu0 %v6228_v30 }
0x2b5d   : > { %v6212_v31 = vpop.f32.mrb[42].mxu0 }
0x2b5e   : > { %v6213_v34 = vadd.f32 %v8017_v32, %v6212_v31  ;;  %v7664_v37 = vpop.f32.mrb[43].mxu0  ;;  %v7067_v31 = vld [vmem:[%s9144_s12 + $0x80] sm:$0xff]  ;;  %v7068_v32 = vld [vmem:[%s9144_s12 + $0x88] sm:$0xff] }
0x2b5f   : > { %v7069_v37 = vld [vmem:[%s9144_s12 + $0x90] sm:$0xff] }
0x2b60   : > { %v6219_v40 = vsel %vm705_vm2, %v6213_v34, -inf }
0x2b61   : > { %6220 = vmax.xlane.f32.xlu1 %v6219_v40  ;;  %v7070_v40 = vld [vmem:[%s9144_s12 + $0x98] sm:$0xff] }
0x2b72   : > { %6314 = vrot.lane.b32.xlu1 %v8839_v14, %s9218_s24 }
0x2bb8   : > { %v6230_v50 = vpop.xlane.xlu0 %6229 }
0x2bee   : > { %v6221_v36 = vpop.xlane.xlu1 %6220 }
0x2bef   : > { %v6223_v42 = vsub.f32 %v6213_v34, %v6221_v36  ;;  %v7790_v34 = vpack.c.bf16 %v7068_v32, %v7067_v31  ;;  %v7794_v36 = vpack.c.bf16 %v7070_v40, %v7069_v37  ;;  %v7082_v31 = vld [vmem:[%s9147_s15 + $0x2] ss:$0 sm:$0xff] }
0x2bf1   : > { %v6226_v44 = vmul.f32 1.442695, %v6223_v42  ;;  %v7071_v42 = vld [vmem:[%s9144_s12 + $0xa0] sm:$0xff] }
0x2bf2   : > { %v6315_v46 = vpop.permute.xlu1 %6314 }
0x2bf3   : > { %7996 = vpow2.f32 %v6226_v44  ;;  %7671 = vmatpush3.msra.mxu0 %v6315_v46  ;;  %v7072_v44 = vld [vmem:[%s9144_s12 + $0xa8] sm:$0xff] }
0x2bf4   : > { %7998 = vrcp.f32 %v6230_v50  ;;  %7675 = vmatprep.subr.mxu0 %v7020_v52  ;;  %v7798_v46 = vpack.c.bf16 %v7072_v44, %v7071_v42 }
0x2bfd   : > { %v7997_v8 = vpop.eup %7996 }
0x2bfe   : > { %v6231_v47 = vsel %vm705_vm2, %v7997_v8, 0.0  ;;  %v7999_v49 = vpop.eup %7998 }
0x2bff   : > { %6232 = vadd.xlane.f32.xlu0 %v6231_v47  ;;  %v6236_v0 = vmul.f32 %v7999_v49, %v7995_v28  ;;  %v7074_v47 = vld [vmem:[%s9144_s12 + $0xb8] sm:$0xff] }
0x2c15   : > { %6238 = vrot.lane.b32.xlu0 %v8841_v25, %s9218_s24  ;;  %s529_s24 = scalar_lea.vmem [#allocation2], %s6881_s28 }
0x2c16   : > { %s6806_s25 = sshll.u32 %s529_s24, 4  ;;  %s9089_s25 = int_to_ptr.vmem [resolvable:$true] %s6806_s25 }
0x2c17   : > { %s8018_s16 = scalar_lea.vmem %s9089_s25, 32  ;;  %p8025_p0 = scmp.lt.s32.totalorder %s9089_s25, %s8023_s3 }
0x2c18   : > { %p8019_p11 = scmp.ne.s32.totalorder %s9089_s25, %s8018_s16  ;;  %p8026_p1 = scmp.lt.s32.totalorder %s8024_s21, %s8018_s16 }
0x2c1a   : > { %p8020_p12 = pnand %p8019_p11, %p8221_p5  ;;  %p8027_p2 = por %p8026_p1, %p8025_p0 }
0x2c1c   : > { %p8021_p13 = pneg %p8020_p12 }
0x2c1e   : > { %p8028_p3 = pnand %p8027_p2, %p8021_p13 }
0x2c8c   : > { %v6233_v51 = vpop.xlane.xlu0 %6232 }
0x2c8d   : > { %8000 = vrcp.f32 %v6233_v51  ;;  %v7064_v51 = vld [vmem:[%s9143_s11 + $0x2] ss:$0 sm:$0xff] }
0x2c90   : > { %v6239_v14 = vpop.permute.xlu0 %6238 }
0x2c91   : > { %7666 = vmatpush3.msra.mxu1 %v6239_v14 }
0x2c92   : > { %7668 = vmatmul.mubr.msk.f32.vlgmr.msra.gmra.mrb[68].mxu1 %vm705_vm2, %v6236_v0 }
0x2c97   : > { %v8001_v27 = vpop.eup %8000 }
0x2c98   : > { %v6237_v63 = vmul.f32 %v8001_v27, %v7997_v8  ;;  %v7073_v8 = vld [vmem:[%s9144_s12 + $0xb0] sm:$0xff] }
0x2c99   : > { %v7802_v50 = vpack.c.bf16 %v7074_v47, %v7073_v8 }
0x2c9a   : > { %7673 = vmatmul.mubr.msk.f32.vlgmr.msra.gmra.mrb[44].mxu0 %vm705_vm2, %v6237_v63 }
0x2c9b   : > { %7676 = vmatpush3.msra.mxu0 %v7020_v52 }
0x2c9c   : > { %7791 = vmatprep.subr.bf16.mxu0 %v7790_v34 }
0x2d65   : > { %v6310_v25 = vpop.f32.mrb[68].mxu1 }
0x2d66   : > { %v7669_v38 = vpop.f32.mrb[69].mxu1  ;;  %7677 = vmatprep.mubr.msk.f32.mxu0 %vm705_vm2, %v6310_v25 }
0x2d6d   : > { %v6386_v48 = vpop.f32.mrb[44].mxu0 }
0x2d6e   : > { %v7674_v54 = vpop.f32.mrb[45].mxu0  ;;  %7678 = vmatmul.mubr.msk.f32.vlgmr.msra.gmra.mrb[38].mxu0 %vm705_vm2, %v6386_v48 }
0x2d6f   : > { %7793 = vmatpush3.bf16.msra.mxu0 %v7790_v34 }
0x2d70   : > { %7795 = vmatprep.subr.bf16.mxu0 %v7794_v36 }
0x2d73   : > { %7797 = vmatpush3.bf16.msra.mxu0 %v7794_v36 }
0x2d74   : > { %7799 = vmatprep.subr.bf16.mxu0 %v7798_v46 }
0x2d77   : > { %7801 = vmatpush3.bf16.msra.mxu0 %v7798_v46 }
0x2d78   : > { %7803 = vmatprep.subr.bf16.mxu0 %v7802_v50 }
0x2d7b   : > { %7805 = vmatpush3.bf16.msra.mxu0 %v7802_v50 }
0x2e41   : > { %v7679_v55 = vpop.f32.mrb[38].mxu0 }
0x2e42   : > { %v6482_v56 = vadd.f32 %v7679_v55, %v7054_v59  ;;  %v6462_v57 = vpop.f32.mrb[39].mxu0 }
0x2e43   : > { %v6481_v58 = vadd.f32 %v7054_v59, %v6462_v57 }
0x2e44   : > { %v6484_v35 = vadd.f32 %v6482_v56, %v8828_v33 }
0x2e45   : > { %v6483_v60 = vadd.f32 %v6481_v58, %v8826_v20  ;;  %v7059_v20 = vld [vmem:[%s9142_s10 + $0x40] sm:$0xff] }
0x2e46   : > { %v6492_v61 = vsel %vm546_vm0, %v6484_v35, 0.0  ;;  %v7782_v12 = vpack.c.bf16 %v7060_v11, %v7059_v20 }
0x2e47   : > { %6493 = vadd.xlane.f32.xlu0 %v6492_v61  ;;  %v6489_v62 = vsel %vm546_vm0, %v6483_v60, 0.0 }
0x2e48   : > { %6490 = vadd.xlane.f32.xlu1 %v6489_v62  ;;  %7783 = vmatprep.subr.bf16.mxu1 %v7782_v12 }
0x2e49   : > { %7785 = vmatpush3.bf16.msra.mxu1 %v7782_v12 }
0x2e4a   : > { %7787 = vmatprep.subr.bf16.mxu1 %v7786_v15 }
0x2e4d   : > { %7789 = vmatpush3.bf16.msra.mxu1 %v7786_v15 }
0x2ed4   : > { %v6494_v43 = vpop.xlane.xlu0 %6493 }
0x2ed5   : > { %v6496_v39 = vmul.f32 0.03125, %v6494_v43  ;;  %v6491_v1 = vpop.xlane.xlu1 %6490 }
0x2ed6   : > { %v6495_v3 = vmul.f32 0.03125, %v6491_v1 }
0x2ed7   : > { %v6498_v5 = vsub.f32 %v6484_v35, %v6496_v39 }
0x2ed8   : > { %v6497_v29 = vsub.f32 %v6483_v60, %v6495_v3  ;;  %v7076_v3 = vld [vmem:[%s9145_s13 + $0x2] ss:$0 sm:$0xff] }
0x2ed9   : > { %v6500_v7 = vmul.f32 %v6498_v5, %v6498_v5 }
0x2eda   : > { %v6499_v9 = vmul.f32 %v6497_v29, %v6497_v29 }
0x2edb   : > { %v6504_v10 = vsel %vm546_vm0, %v6500_v7, 0.0 }
0x2edc   : > { %6505 = vadd.xlane.f32.xlu1 %v6504_v10  ;;  %v6501_v33 = vsel %vm546_vm0, %v6499_v9, 0.0 }
0x2edd   : > { %6502 = vadd.xlane.f32.xlu0 %v6501_v33 }
0x2f69   : > { %v6506_v16 = vpop.xlane.xlu1 %6505 }
0x2f6a   : > { %v6508_v17 = vmul.f32 0.03125, %v6506_v16  ;;  %v6503_v18 = vpop.xlane.xlu0 %6502 }
0x2f6b   : > { %v6507_v45 = vmul.f32 0.03125, %v6503_v18 }
0x2f6c   : > { %v6510_v19 = vadd.f32 1e-12, %v6508_v17 }
0x2f6d   : > { %v6509_v21 = vadd.f32 1e-12, %v6507_v45 }
0x2f6e   : > { %8002 = vrsqrt.f32 %v6510_v19 }
0x2f6f   : > { %8004 = vrsqrt.f32 %v6509_v21 }
0x2f78   : > { %v8003_v22 = vpop.eup %8002 }
0x2f79   : > { %v8005_v6 = vpop.eup %8004  ;;  %v6514_v2 = vmul.f32 %v8003_v22, %v6498_v5 }
0x2f7a   : > { %v6513_v23 = vmul.f32 %v8005_v6, %v6497_v29 }
0x2f7b   : > { %v6522_v24 = vmul.f32 %v7057_v53, %v6514_v2 }
0x2f7c   : > { %v6521_v26 = vmul.f32 %v7057_v53, %v6513_v23 }
0x2f7d   : > { %v6530_v30 = vadd.f32 %v7058_v4, %v6522_v24 }
0x2f7e   : > { %v6529_v28 = vadd.f32 %v7058_v4, %v6521_v26  ;;  %v7081_v26 = vld [vmem:[%s9146_s14 + $0x2] ss:$0 sm:$0xff] }
0x2f80   : > { %7688 = vmatprep.mubr.msk.f32.mxu1 %vm546_vm0, %v6529_v28 }
0x2f81   : > { %7689 = vmatmul.mubr.msk.f32.vlgmr.msra.gmra.mrb[70].mxu1 %vm546_vm0, %v6530_v30 }
0x3054   : > { %v7690_v49 = vpop.f32.mrb[70].mxu1 }
0x3055   : > { %v6622_v0 = vadd.f32 %v7690_v49, %v7064_v51  ;;  %v6616_v14 = vpop.f32.mrb[71].mxu1 }
0x3056   : > { %v6617_v27 = vadd.f32 %v7064_v51, %v6616_v14 }
0x3057   : > { %v6628_v63 = vmul.f32 0.044715, %v6622_v0  ;;  %v6626_v43 = vmul.f32 0.5, %v6622_v0 }
0x3058   : > { %v6627_v52 = vmul.f32 0.044715, %v6617_v27  ;;  %v6625_v61 = vmul.f32 0.5, %v6617_v27 }
0x3059   : > { %v6630_v25 = vmul.f32 %v6628_v63, %v6622_v0 }
0x305a   : > { %v6629_v38 = vmul.f32 %v6627_v52, %v6617_v27 }
0x305b   : > { %v6632_v48 = vmul.f32 %v6630_v25, %v6622_v0 }
0x305c   : > { %v6631_v54 = vmul.f32 %v6629_v38, %v6617_v27 }
0x305d   : > { %v6634_v59 = vadd.f32 %v6632_v48, %v6622_v0 }
0x305e   : > { %v6633_v55 = vadd.f32 %v6631_v54, %v6617_v27 }
0x305f   : > { %v6636_v56 = vmul.f32 0.7978846, %v6634_v59 }
0x3060   : > { %v6635_v57 = vmul.f32 0.7978846, %v6633_v55 }
0x3061   : > { %8006 = vtanh.f32 %v6636_v56 }
0x3062   : > { %8008 = vtanh.f32 %v6635_v57 }
0x306b   : > { %v8007_v58 = vpop.eup %8006 }
0x306c   : > { %v8009_v35 = vpop.eup %8008  ;;  %v6640_v60 = vadd.f32 1.0, %v8007_v58 }
0x306d   : > { %v6639_v62 = vadd.f32 1.0, %v8009_v35 }
0x306e   : > { %v6642_v1 = vmul.f32 %v6640_v60, %v6626_v43 }
0x306f   : > { %v6641_v39 = vmul.f32 %v6639_v62, %v6625_v61 }
0x3071   : > { %7707 = vmatprep.mubr.msk.f32.mxu0 %vm2531_vm3, %v6641_v39 }
0x3072   : > { %7708 = vmatmul.mubr.msk.f32.vlgmr.msra.gmra.mrb[46].mxu0 %vm2531_vm3, %v6642_v1 }
0x3145   : > { %v7709_v5 = vpop.f32.mrb[46].mxu0 }
0x3146   : > { %v6738_v29 = vadd.f32 %v7709_v5, %v7076_v3  ;;  %v6732_v7 = vpop.f32.mrb[47].mxu0 }
0x3147   : > { %v6733_v9 = vadd.f32 %v7076_v3, %v6732_v7 }
0x3148   : > { %v6742_v10 = vadd.f32 %v6738_v29, %v6530_v30 }
0x3149   : > { %v6741_v33 = vadd.f32 %v6733_v9, %v6529_v28 }
0x314a   : > { %v6750_v20 = vsel %vm546_vm0, %v6742_v10, 0.0 }
0x314b   : > { %6751 = vadd.xlane.f32.xlu1 %v6750_v20  ;;  %v6747_v11 = vsel %vm546_vm0, %v6741_v33, 0.0 }
0x314c   : > { %6748 = vadd.xlane.f32.xlu0 %v6747_v11 }
0x31d8   : > { %v6752_v12 = vpop.xlane.xlu1 %6751 }
0x31d9   : > { %v6754_v41 = vmul.f32 0.03125, %v6752_v12  ;;  %v6749_v13 = vpop.xlane.xlu0 %6748 }
0x31da   : > { %v6753_v15 = vmul.f32 0.03125, %v6749_v13 }
0x31db   : > { %v6756_v16 = vsub.f32 %v6742_v10, %v6754_v41 }
0x31dc   : > { %v6755_v17 = vsub.f32 %v6741_v33, %v6753_v15 }
0x31dd   : > { %v6758_v18 = vmul.f32 %v6756_v16, %v6756_v16 }
0x31de   : > { %v6757_v45 = vmul.f32 %v6755_v17, %v6755_v17 }
0x31df   : > { %v6762_v19 = vsel %vm546_vm0, %v6758_v18, 0.0 }
0x31e0   : > { %6763 = vadd.xlane.f32.xlu1 %v6762_v19  ;;  %v6759_v21 = vsel %vm546_vm0, %v6757_v45, 0.0 }
0x31e1   : > { %6760 = vadd.xlane.f32.xlu0 %v6759_v21 }
0x326d   : > { %v6764_v22 = vpop.xlane.xlu1 %6763 }
0x326e   : > { %v6766_v53 = vmul.f32 0.03125, %v6764_v22  ;;  %v6761_v6 = vpop.xlane.xlu0 %6760 }
0x326f   : > { %v6765_v2 = vmul.f32 0.03125, %v6761_v6 }
0x3270   : > { %v6768_v23 = vadd.f32 1e-12, %v6766_v53 }
0x3271   : > { %v6767_v4 = vadd.f32 1e-12, %v6765_v2 }
0x3272   : > { %8010 = vrsqrt.f32 %v6768_v23 }
0x3273   : > { %8012 = vrsqrt.f32 %v6767_v4 }
0x327c   : > { %v8011_v24 = vpop.eup %8010 }
0x327d   : > { %v8013_v28 = vpop.eup %8012  ;;  %v6772_v30 = vmul.f32 %v8011_v24, %v6756_v16 }
0x327e   : > { %v6771_v32 = vmul.f32 %v8013_v28, %v6755_v17 }
0x327f   : > { %v6780_v34 = vmul.f32 %v7081_v26, %v6772_v30 }
0x3280   : > { %v6779_v37 = vmul.f32 %v7081_v26, %v6771_v32 }
0x3281   : > { %v6788_v40 = vadd.f32 %v7082_v31, %v6780_v34 }
0x3282   : > { %v6787_v36 = vadd.f32 %v7082_v31, %v6779_v37 }
0x3283   : > { %6791 = vst.msk [vmem:[%s529_s24 + $0x1] sm:$0x1] %vm6789_vm4, %v6788_v40 }
0x3284   : > { %6790 = vst.msk [vmem:[%s529_s24] sm:$0x1] %vm6789_vm4, %v6787_v36 }
0x3285   : > { %8031 = shalt.err (!%p8028_p3)
}
0x3286   : > { %s8032_s20 = scalar_lea.hbm %s9087_s7, 32  ;;  %s8036_s2 = scalar_lea.hbm %s9225_s9, 64 }
0x3287   : > { %p8033_p4 = scmp.ne.s32.totalorder %s9087_s7, %s8032_s20  ;;  %p8037_p9 = scmp.lt.u32.totalorder %s9087_s7, %s9225_s9 }
0x3288   : > { %p8038_p10 = scmp.lt.u32.totalorder %s8036_s2, %s8032_s20  ;;  %p8040_p12 = scmp.lt.u32.totalorder %s8032_s20, %s9087_s7 }
0x3289   : > { %p8034_p7 = pnand %p8033_p4, %p8221_p5 }
0x328a   : > { %p8039_p11 = por %p8038_p10, %p8037_p9 }
0x328b   : > { %p8035_p8 = pneg %p8034_p7 }
0x328c   : > { %p8041_p13 = por %p8040_p12, %p8039_p11 }
0x328e   : > { %p8042_p0 = pnand %p8041_p13, %p8035_p8 }
0x3290   : > { %8045 = shalt.err (!%p8042_p0)
}
0x3291   : > { %s8096_s19 = smov 16   ;;  %s8097_s26 = smov 1  }
0x3292   : > { %7824 = dma.vmem_to_hbm [thread:$0]  (%p8221_p5), %s9089_s25, 32, %s9087_s7, %s9091_s22, %s8096_s19, %s8096_s19, %s8097_s26  }
0x3293 PF: > { %s9226_s29 = sld [smem:[#allocation8_spill]]  ;;  %s9227_s18 = sld [smem:[#allocation5_spill]] }
0x3299   : > { %p7830_p1 = scmp.ge.s32.totalorder %s9226_s29, 2  ;;  %s6821_s0 = sand.u32 1, %s9227_s18  }
0x329a   : > { %s6822_s8 = scalar_lea.sflag [#allocation3], %s6821_s0 }
0x329b   : > { %p7827_p2 = pnand %p7830_p1, %p8225_p6 }
0x329d   : > { %8063 = dma.done.wait (!%p7827_p2), %s6822_s8, 32  }
0x329e   : > { %8065 = vsyncadd (!%p7827_p2), %s6822_s8, 4294967264  ;;  %s9229_s24 = sld [smem:[#allocation10_spill]]  ;;  %s9230_s21 = sld [smem:[#allocation6_spill]] }
0x329f   : > { %s9231_s22 = sld [smem:[#allocation7_spill]]  ;;  %s9232_s23 = sld [smem:[#allocation11_spill]] }
0x32a4   : > { %p26_p3 = scmp.ge.s32.totalorder %s9229_s24, 4  }
0x32a6   :  { %28 = sbr.rel (!%p26_p3) target bundleno = 12 (0xc), region = 146 }
0x32ad   :  { %6827 = vsyncpa [#allocation3], 1 }
0x32ae   :  { %6829 = vsyncpa [#allocation3 + $0x1], 1 }

</bundles_post_ra>
